<compile_context>
chip_gen: v7x
topology: tpu7x:2x2x1
jax: 0.10.0
libtpu: 0.0.40
codegen_flags: <defaults>
</compile_context>

<pallas_src>
from functools import partial

import numpy as np
import jax
import jax.numpy as jnp
from jax.experimental import pallas as pl
from jax.experimental.pallas import tpu as pltpu

SQRT_HALF = 0.7071067811865476


def _erf_f32(x):
    # Abramowitz & Stegun 7.1.26, |err| <= 1.5e-7.  The divide uses the EUP
    # approximate reciprocal (rides alongside the exp), keeping VALU slots free.
    p = 0.3275911
    a1, a2, a3, a4, a5 = (0.254829592, -0.284496736, 1.421413741,
                          -1.453152027, 1.061405429)
    ax = jnp.abs(x)
    t = pl.reciprocal(1.0 + p * ax, approx=True)
    poly = ((((a5 * t + a4) * t + a3) * t + a2) * t + a1) * t
    y = 1.0 - poly * jnp.exp(-ax * ax)
    return jnp.where(x >= 0, y, -y)


def _gelu_exact(x):
    # Matches torch.nn.functional.gelu default (erf form, not tanh approx).
    return 0.5 * x * (1.0 + _erf_f32(x * SQRT_HALF))


# ---------------------------------------------------------------------------
# Fused kernel: embedding-output -> logits for seq_per_step sequences per step.
# All layers + head run in one kernel invocation; x never leaves VMEM.
# ---------------------------------------------------------------------------
def _ids4_fused_kernel(x_ref, a2_ref, pw_ref, cdwt_ref, zb_ref,
                       lnw_ref, lnb_ref, hwt_ref, hb_ref, o_ref):
    n_layers = a2_ref.shape[0]
    Bb, L, dm = x_ref.shape
    ds = pw_ref.shape[-1]
    nv = o_ref.shape[-1]
    n_levels = (L - 1).bit_length()           # ceil(log2(L)) doubling steps
    w_dtype = a2_ref.dtype                    # MXU operand dtype (f32 or bf16)

    # Identity used to pad the scan shift at each sequence start.
    rows = jax.lax.broadcasted_iota(jnp.int32, (ds, ds), 0)
    cols = jax.lax.broadcasted_iota(jnp.int32, (ds, ds), 1)
    eye = (rows == cols).astype(jnp.float32)

    # Activations stay flattened (Bb*L, dm) and f32 on-chip across all layers.
    x = x_ref[...].reshape(Bb * L, dm)

    for layer in range(n_layers):             # n_layers small -> static unroll
        # ---- Ax for every (b, l) position in ONE lane-dense MXU matmul ------
        ax = jnp.dot(x.astype(w_dtype), a2_ref[layer],
                     preferred_element_type=jnp.float32)         # (Bb*L, ds*ds)
        ax = _gelu_exact(ax).reshape(Bb, L, ds, ds)              # f32, 1 reshape

        # ---- inclusive left-product scan over L (Hillis-Steele doubling) ----
        # After level k: S[b,l] = Ax[b,max(0,l-2^k+1)] @ ... @ Ax[b,l].
        # Within a level all products are independent batched matmuls, so the
        # MXU pipelines them instead of serializing L data-dependent steps.
        # Carries stay f32 for the whole chain.
        S = ax
        for k in range(n_levels):
            off = 1 << k
            pad = jnp.broadcast_to(eye, (Bb, off, ds, ds))       # I for l < off
            prev = jnp.concatenate([pad, S[:, :L - off]], axis=1)
            S = jnp.einsum(
                "nij,njk->nik",
                prev.reshape(Bb * L, ds, ds), S.reshape(Bb * L, ds, ds),
                preferred_element_type=jnp.float32).reshape(Bb, L, ds, ds)

        # ---- proj(cum_prod) fused as a lane reduce (proj_b folded into zb) --
        cp = jnp.sum(S.reshape(Bb * L, ds, ds) * pw_ref[layer],
                     axis=-1)                                    # (Bb*L, ds)

        # ---- z = C(cum_prod) + D(x) as ONE matmul over [cp ; x] lanes -------
        zin = jnp.concatenate([cp, x], axis=-1).astype(w_dtype)  # (Bb*L, ds+dm)
        z = (jnp.dot(zin, cdwt_ref[layer],
                     preferred_element_type=jnp.float32)
             + zb_ref[layer])                                    # (Bb*L, dm)

        # ---- residual + post-LayerNorm (eval-mode dropout = identity) -------
        # TODO(synk): prenorm=True branch unhandled (module default is False).
        h = x + z
        mu = jnp.mean(h, axis=-1, keepdims=True)
        var = jnp.mean(jnp.square(h - mu), axis=-1, keepdims=True)
        x = ((h - mu) * jax.lax.rsqrt(var + 1e-5) * lnw_ref[layer]
             + lnb_ref[layer])

    # ---- classifier head, fused into the same kernel -------------------------
    # TODO(synk): tile over n_vocab with 128/256-multiple lane blocks once the
    # vocab is non-toy (lane-dense stores; head weight won't fit VMEM).
    logits = (jnp.dot(x.astype(w_dtype), hwt_ref[...],
                      preferred_element_type=jnp.float32) + hb_ref[...])
    o_ref[...] = logits.reshape(Bb, L, nv).astype(o_ref.dtype)


def ids4_forward_pallas(x_emb, packed, *, seq_per_step=1,
                        vmem_limit_bytes=64 * 1024 * 1024):
    """One fused pallas_call: embedding output (B, L, dm) -> logits (B, L, nv)."""
    B, L, dm = x_emb.shape
    nv = packed["head_wT"].shape[-1]
    assert B % seq_per_step == 0
    grid = (B // seq_per_step,)

    w_args = (packed["A2"], packed["proj_w"], packed["CD_wT"], packed["z_b"],
              packed["ln_w"], packed["ln_b"], packed["head_wT"],
              packed["head_b"])

    def w_spec(a):
        # Full-array block, constant index map: DMA'd once, resident in VMEM
        # for the whole grid.  TODO(synk): at real d_model/n_layers stream
        # per-layer weights (extra 'arbitrary' grid axis / emit_pipeline) so
        # only ~1 layer of weights is VMEM-resident (v7x has 64 MiB per TC).
        nd = a.ndim
        return pl.BlockSpec(a.shape, lambda b, nd=nd: (0,) * nd)

    return pl.pallas_call(
        _ids4_fused_kernel,
        out_shape=jax.ShapeDtypeStruct((B, L, nv), x_emb.dtype),
        grid=grid,
        in_specs=[pl.BlockSpec((seq_per_step, L, dm), lambda b: (b, 0, 0))]
                 + [w_spec(a) for a in w_args],
        out_specs=pl.BlockSpec((seq_per_step, L, nv), lambda b: (b, 0, 0)),
        compiler_params=pltpu.CompilerParams(
            dimension_semantics=("parallel",),       # shard grid over v7x TCs
            vmem_limit_bytes=vmem_limit_bytes),
    )(x_emb, *w_args)


@partial(jax.jit, static_argnames=("seq_per_step",))
def ids4_token_classifier_forward(tokens, packed, seq_per_step=1):
    # TODO(synk): fuse the embedding gather via scalar-prefetch + pl.Element
    # row gather once B*L*d_model HBM traffic matters.
    x = jnp.take(packed["embedding"], tokens, axis=0)   # (B, L, dm) glue
    return ids4_forward_pallas(x, packed, seq_per_step=seq_per_step)


# ---------------------------------------------------------------------------
# Parameters (deterministic synthetic init; shapes match the PyTorch module)
# and the one-time kernel-layout packing (done at init, NOT per forward).
# ---------------------------------------------------------------------------
def init_params(key, d_model, d_state, n_layers, n_vocab):
    k_emb, k_head, *k_layers = jax.random.split(key, 2 + n_layers)
    params = {
        "embedding": 0.1 * jax.random.normal(k_emb, (n_vocab, d_model), jnp.float32),
        "layers": [],
    }
    for i in range(n_layers):
        ks = jax.random.split(k_layers[i], 8)
        # Spirit of the torch init (eye + noise); noise scaled down for
        # numerical conditioning of the length-L cumulative matrix product.
        A = (jnp.eye(d_state, dtype=jnp.float32)[None, :, :]
             + jax.random.normal(ks[0], (d_model, d_state, d_state), jnp.float32)
             * (0.5 / d_state))
        params["layers"].append(dict(
            A=A,
            proj_w=0.3 * jax.random.normal(ks[1], (1, d_state), jnp.float32),
            proj_b=0.1 * jax.random.normal(ks[2], (1, 1), jnp.float32),
            C_w=0.3 * jax.random.normal(ks[3], (d_model, d_state), jnp.float32),
            C_b=0.05 * jax.random.normal(ks[4], (d_model,), jnp.float32),
            D_w=0.2 * jax.random.normal(ks[5], (d_model, d_model), jnp.float32),
            D_b=jnp.zeros((d_model,), jnp.float32),
            ln_w=1.0 + 0.1 * jax.random.normal(ks[6], (d_model,), jnp.float32),
            ln_b=0.05 * jax.random.normal(ks[7], (d_model,), jnp.float32),
        ))
    kw, kb = jax.random.split(k_head)
    params["head_w"] = 0.2 * jax.random.normal(kw, (n_vocab, d_model), jnp.float32)
    params["head_b"] = 0.05 * jax.random.normal(kb, (n_vocab,), jnp.float32)
    return params


def pack_params(params, mxu_dtype=jnp.float32):
    """One-time re-layout of torch-style parameters for the fused kernel.

    All transposes / flattening / bias folds / MXU-dtype casts happen here,
    so the kernel reads weights in their matmul-ready layout and dtype
    (no in-kernel weight casts), stacked along a leading n_layers axis.
    """
    layers = params["layers"]
    dm = layers[0]["A"].shape[0]
    ds = layers[0]["A"].shape[1]

    def stk(fn, dtype=jnp.float32):
        return jnp.stack([fn(lp) for lp in layers], axis=0).astype(dtype)

    return dict(
        embedding=params["embedding"],                                # f32
        # A[d, s, t] flattened so x @ A2 yields Ax rows lane-dense.
        A2=stk(lambda lp: lp["A"].reshape(dm, ds * ds), mxu_dtype),   # (nl,dm,ds*ds)
        proj_w=stk(lambda lp: lp["proj_w"]),                          # (nl,1,ds) f32
        # [C^T ; D^T] stacked so C(cp)+D(x) is one matmul on [cp ; x] lanes.
        CD_wT=stk(lambda lp: jnp.concatenate([lp["C_w"].T, lp["D_w"].T], axis=0),
                  mxu_dtype),                                         # (nl,ds+dm,dm)
        # proj bias folded through C, combined with C_b and D_b:
        #   z_b = C_b + proj_b * sum_s C_w[:, s] + D_b
        z_b=stk(lambda lp: (lp["C_b"]
                            + lp["proj_b"][0, 0] * jnp.sum(lp["C_w"], axis=1)
                            + lp["D_b"])[None, :]),                   # (nl,1,dm) f32
        ln_w=stk(lambda lp: lp["ln_w"][None, :]),                     # (nl,1,dm) f32
        ln_b=stk(lambda lp: lp["ln_b"][None, :]),                     # (nl,1,dm) f32
        head_wT=params["head_w"].T.astype(mxu_dtype),                 # (dm,nv)
        head_b=params["head_b"][None, :],                             # (1,nv) f32
    )


# ---------------------------------------------------------------------------
# Plain-JAX reference (mirrors the PyTorch forward) for a sanity check.
# ---------------------------------------------------------------------------
def ref_forward(tokens, params):
    P = jax.lax.Precision.HIGHEST
    x = params["embedding"][tokens]
    L = x.shape[1]
    for lp in params["layers"]:
        z = x
        Ax = jnp.einsum("bld,dst->blst", z, lp["A"], precision=P)
        Ax = 0.5 * Ax * (1.0 + jax.scipy.special.erf(Ax * SQRT_HALF))
        carry = Ax[:, 0]
        prods = [carry]
        for l in range(1, L):
            carry = jnp.einsum("bij,bjk->bik", carry, Ax[:, l], precision=P)
            prods.append(carry)
        cp = jnp.stack(prods, axis=1)                                  # (B,L,ds,ds)
        cp = (jnp.einsum("blst,t->bls", cp, lp["proj_w"][0], precision=P)
              + lp["proj_b"][0, 0])
        z = (jnp.einsum("bls,ms->blm", cp, lp["C_w"], precision=P) + lp["C_b"]
             + jnp.einsum("bld,md->blm", z, lp["D_w"], precision=P) + lp["D_b"])
        x = x + z
        mu = jnp.mean(x, axis=-1, keepdims=True)
        var = jnp.mean(jnp.square(x - mu), axis=-1, keepdims=True)
        x = (x - mu) * jax.lax.rsqrt(var + 1e-5) * lp["ln_w"] + lp["ln_b"]
    return jnp.einsum("bld,vd->blv", x, params["head_w"], precision=P) + params["head_b"]


if __name__ == "__main__":
    B, L = 4, 8
    d_model, d_state, n_layers, n_vocab = 32, 8, 2, 16

    key = jax.random.PRNGKey(0)
    k_params, k_tok = jax.random.split(key)
    params = init_params(k_params, d_model, d_state, n_layers, n_vocab)
    tokens = jax.random.randint(k_tok, (B, L), 0, n_vocab, dtype=jnp.int32)

    # f32 MXU operands: checked tightly against the plain-JAX reference.
    packed_f32 = pack_params(params, mxu_dtype=jnp.float32)
    out = jax.block_until_ready(
        ids4_token_classifier_forward(tokens, packed_f32, seq_per_step=2))
    assert out.shape == (B, L, n_vocab), out.shape
    assert bool(jnp.all(jnp.isfinite(out)))
    ref = ref_forward(tokens, params)
    if not np.allclose(np.asarray(out), np.asarray(ref), rtol=5e-2, atol=5e-2):
        raise AssertionError(
            f"kernel/reference mismatch, max abs err = "
            f"{np.max(np.abs(np.asarray(out) - np.asarray(ref)))}")

    # bf16 MXU-operand path (v6e/v7x throughput; halves weight DMA/VMEM).
    # Same kernel; weights pre-cast once in pack_params.  Chain carries,
    # GELU/erf polynomial and LayerNorm statistics remain f32.
    packed_bf16 = pack_params(params, mxu_dtype=jnp.bfloat16)
    out_bf16 = jax.block_until_ready(
        ids4_token_classifier_forward(tokens, packed_bf16, seq_per_step=2))
    assert out_bf16.shape == (B, L, n_vocab), out_bf16.shape
    assert bool(jnp.all(jnp.isfinite(out_bf16)))

    print("KERNEL_OK")
</pallas_src>

<mosaic_0001>
module attributes {stable_mosaic.version = 11 : i64} {
  func.func @_ids4_fused_kernel(%arg0: i32, %arg1: memref<2x8x32xf32, #tpu.memory_space<vmem>>, %arg2: memref<2x32x64xf32, #tpu.memory_space<vmem>>, %arg3: memref<2x1x8xf32, #tpu.memory_space<vmem>>, %arg4: memref<2x40x32xf32, #tpu.memory_space<vmem>>, %arg5: memref<2x1x32xf32, #tpu.memory_space<vmem>>, %arg6: memref<2x1x32xf32, #tpu.memory_space<vmem>>, %arg7: memref<2x1x32xf32, #tpu.memory_space<vmem>>, %arg8: memref<32x16xf32, #tpu.memory_space<vmem>>, %arg9: memref<1x16xf32, #tpu.memory_space<vmem>>, %arg10: memref<2x8x16xf32, #tpu.memory_space<vmem>>) attributes {dimension_semantics = [#tpu.dimension_semantics<parallel>], iteration_bounds = array<i64: 2>, scalar_prefetch = 0 : i64, scratch_operands = 0 : i64, tpu.core_type = #tpu.core_type<tc>, window_params = [{transform_indices = @transform_0, window_bounds = array<i64: 2, 8, 32>}, {pipeline_mode = #tpu.pipeline_mode<synchronous>, transform_indices = @transform_1, window_bounds = array<i64: 2, 32, 64>}, {pipeline_mode = #tpu.pipeline_mode<synchronous>, transform_indices = @transform_2, window_bounds = array<i64: 2, 1, 8>}, {pipeline_mode = #tpu.pipeline_mode<synchronous>, transform_indices = @transform_3, window_bounds = array<i64: 2, 40, 32>}, {pipeline_mode = #tpu.pipeline_mode<synchronous>, transform_indices = @transform_4, window_bounds = array<i64: 2, 1, 32>}, {pipeline_mode = #tpu.pipeline_mode<synchronous>, transform_indices = @transform_5, window_bounds = array<i64: 2, 1, 32>}, {pipeline_mode = #tpu.pipeline_mode<synchronous>, transform_indices = @transform_6, window_bounds = array<i64: 2, 1, 32>}, {pipeline_mode = #tpu.pipeline_mode<synchronous>, transform_indices = @transform_7, window_bounds = array<i64: 32, 16>}, {pipeline_mode = #tpu.pipeline_mode<synchronous>, transform_indices = @transform_8, window_bounds = array<i64: 1, 16>}, {transform_indices = @transform_9, window_bounds = array<i64: 2, 8, 16>}]} {
    %0 = tpu.iota {dimensions = array<i32: 0>} : vector<8x8xi32>
    %1 = tpu.iota {dimensions = array<i32: 1>} : vector<8x8xi32>
    %2 = arith.cmpi eq, %0, %1 : vector<8x8xi32>
    %3 = arith.extui %2 : vector<8x8xi1> to vector<8x8xi32>
    %4 = arith.sitofp %3 : vector<8x8xi32> to vector<8x8xf32>
    %c0 = arith.constant 0 : index
    %c0_0 = arith.constant 0 : index
    %c0_1 = arith.constant 0 : index
    %5 = vector.load %arg1[%c0, %c0_0, %c0_1] : memref<2x8x32xf32, #tpu.memory_space<vmem>>, vector<2x8x32xf32>
    %6 = vector.shape_cast %5 : vector<2x8x32xf32> to vector<16x32xf32>
    %c0_2 = arith.constant 0 : index
    %c0_3 = arith.constant 0 : index
    %c0_4 = arith.constant 0 : index
    %7 = vector.load %arg2[%c0_2, %c0_3, %c0_4] : memref<2x32x64xf32, #tpu.memory_space<vmem>>, vector<1x32x64xf32>
    %8 = vector.shape_cast %7 : vector<1x32x64xf32> to vector<32x64xf32>
    %cst = arith.constant dense<0.000000e+00> : vector<16x64xf32>
    %9 = tpu.matmul %6, %8, %cst {dimension_numbers = #tpu.dot_dimension_numbers<[1], [0], [0], [1], [0, 0, 1, 1], [], []>} : vector<16x32xf32>, vector<32x64xf32>, vector<16x64xf32> -> vector<16x64xf32>
    %cst_5 = arith.constant 5.000000e-01 : f32
    %10 = vector.broadcast %cst_5 : f32 to vector<16x64xf32>
    %11 = arith.mulf %10, %9 : vector<16x64xf32>
    %cst_6 = arith.constant 0.707106769 : f32
    %12 = vector.broadcast %cst_6 : f32 to vector<16x64xf32>
    %13 = arith.mulf %9, %12 : vector<16x64xf32>
    %14 = math.absf %13 : vector<16x64xf32>
    %cst_7 = arith.constant 0.327591091 : f32
    %15 = vector.broadcast %cst_7 : f32 to vector<16x64xf32>
    %16 = arith.mulf %15, %14 : vector<16x64xf32>
    %cst_8 = arith.constant 1.000000e+00 : f32
    %17 = vector.broadcast %cst_8 : f32 to vector<16x64xf32>
    %18 = arith.addf %17, %16 : vector<16x64xf32>
    %19 = tpu.reciprocal %18 {approx = true} : vector<16x64xf32> -> vector<16x64xf32>
    %cst_9 = arith.constant 1.06140542 : f32
    %20 = vector.broadcast %cst_9 : f32 to vector<16x64xf32>
    %21 = arith.mulf %20, %19 : vector<16x64xf32>
    %cst_10 = arith.constant -1.45315206 : f32
    %22 = vector.broadcast %cst_10 : f32 to vector<16x64xf32>
    %23 = arith.addf %21, %22 : vector<16x64xf32>
    %24 = arith.mulf %23, %19 : vector<16x64xf32>
    %cst_11 = arith.constant 1.42141378 : f32
    %25 = vector.broadcast %cst_11 : f32 to vector<16x64xf32>
    %26 = arith.addf %24, %25 : vector<16x64xf32>
    %27 = arith.mulf %26, %19 : vector<16x64xf32>
    %cst_12 = arith.constant -0.284496725 : f32
    %28 = vector.broadcast %cst_12 : f32 to vector<16x64xf32>
    %29 = arith.addf %27, %28 : vector<16x64xf32>
    %30 = arith.mulf %29, %19 : vector<16x64xf32>
    %cst_13 = arith.constant 0.254829586 : f32
    %31 = vector.broadcast %cst_13 : f32 to vector<16x64xf32>
    %32 = arith.addf %30, %31 : vector<16x64xf32>
    %33 = arith.mulf %32, %19 : vector<16x64xf32>
    %cst_14 = arith.constant 0.000000e+00 : f32
    %34 = vector.broadcast %cst_14 : f32 to vector<16x64xf32>
    %35 = arith.subf %34, %14 : vector<16x64xf32>
    %36 = arith.mulf %35, %14 : vector<16x64xf32>
    %37 = math.exp %36 : vector<16x64xf32>
    %38 = arith.mulf %33, %37 : vector<16x64xf32>
    %cst_15 = arith.constant 1.000000e+00 : f32
    %39 = vector.broadcast %cst_15 : f32 to vector<16x64xf32>
    %40 = arith.subf %39, %38 : vector<16x64xf32>
    %cst_16 = arith.constant 0.000000e+00 : f32
    %41 = vector.broadcast %cst_16 : f32 to vector<16x64xf32>
    %42 = arith.cmpf oge, %13, %41 : vector<16x64xf32>
    %cst_17 = arith.constant 0.000000e+00 : f32
    %43 = vector.broadcast %cst_17 : f32 to vector<16x64xf32>
    %44 = arith.subf %43, %40 : vector<16x64xf32>
    %45 = arith.select %42, %40, %44 : vector<16x64xi1>, vector<16x64xf32>
    %cst_18 = arith.constant 1.000000e+00 : f32
    %46 = vector.broadcast %cst_18 : f32 to vector<16x64xf32>
    %47 = arith.addf %46, %45 : vector<16x64xf32>
    %48 = arith.mulf %11, %47 : vector<16x64xf32>
    %49 = vector.shape_cast %48 : vector<16x64xf32> to vector<2x8x8x8xf32>
    %50 = vector.shape_cast %4 : vector<8x8xf32> to vector<1x1x8x8xf32>
    %51 = vector.broadcast %50 : vector<1x1x8x8xf32> to vector<2x1x8x8xf32>
    %52 = vector.extract_strided_slice %49 {offsets = [0, 0, 0, 0], sizes = [2, 7, 8, 8], strides = [1, 1, 1, 1]} : vector<2x8x8x8xf32> to vector<2x7x8x8xf32>
    %53 = tpu.concatenate %51, %52 in 1 : vector<2x1x8x8xf32>, vector<2x7x8x8xf32> -> vector<2x8x8x8xf32>
    %54 = vector.shape_cast %53 : vector<2x8x8x8xf32> to vector<16x8x8xf32>
    %55 = vector.shape_cast %49 : vector<2x8x8x8xf32> to vector<16x8x8xf32>
    "tpu.trace_start"() <{level = 10 : i32, message = "nij,njk->nik"}> : () -> ()
    %cst_19 = arith.constant dense<0.000000e+00> : vector<16x8x8xf32>
    %56 = tpu.matmul %54, %55, %cst_19 {dimension_numbers = #tpu.dot_dimension_numbers<[2], [1], [1], [2], [0, 0, 0, 1, 1, 2], [0], [0]>} : vector<16x8x8xf32>, vector<16x8x8xf32>, vector<16x8x8xf32> -> vector<16x8x8xf32>
    "tpu.trace_stop"() : () -> ()
    %57 = vector.shape_cast %56 : vector<16x8x8xf32> to vector<2x8x8x8xf32>
    %58 = vector.shape_cast %4 : vector<8x8xf32> to vector<1x1x8x8xf32>
    %59 = vector.broadcast %58 : vector<1x1x8x8xf32> to vector<2x2x8x8xf32>
    %60 = vector.extract_strided_slice %57 {offsets = [0, 0, 0, 0], sizes = [2, 6, 8, 8], strides = [1, 1, 1, 1]} : vector<2x8x8x8xf32> to vector<2x6x8x8xf32>
    %61 = tpu.concatenate %59, %60 in 1 : vector<2x2x8x8xf32>, vector<2x6x8x8xf32> -> vector<2x8x8x8xf32>
    %62 = vector.shape_cast %61 : vector<2x8x8x8xf32> to vector<16x8x8xf32>
    %63 = vector.shape_cast %57 : vector<2x8x8x8xf32> to vector<16x8x8xf32>
    "tpu.trace_start"() <{level = 10 : i32, message = "nij,njk->nik"}> : () -> ()
    %cst_20 = arith.constant dense<0.000000e+00> : vector<16x8x8xf32>
    %64 = tpu.matmul %62, %63, %cst_20 {dimension_numbers = #tpu.dot_dimension_numbers<[2], [1], [1], [2], [0, 0, 0, 1, 1, 2], [0], [0]>} : vector<16x8x8xf32>, vector<16x8x8xf32>, vector<16x8x8xf32> -> vector<16x8x8xf32>
    "tpu.trace_stop"() : () -> ()
    %65 = vector.shape_cast %64 : vector<16x8x8xf32> to vector<2x8x8x8xf32>
    %66 = vector.shape_cast %4 : vector<8x8xf32> to vector<1x1x8x8xf32>
    %67 = vector.broadcast %66 : vector<1x1x8x8xf32> to vector<2x4x8x8xf32>
    %68 = vector.extract_strided_slice %65 {offsets = [0, 0, 0, 0], sizes = [2, 4, 8, 8], strides = [1, 1, 1, 1]} : vector<2x8x8x8xf32> to vector<2x4x8x8xf32>
    %69 = tpu.concatenate %67, %68 in 1 : vector<2x4x8x8xf32>, vector<2x4x8x8xf32> -> vector<2x8x8x8xf32>
    %70 = vector.shape_cast %69 : vector<2x8x8x8xf32> to vector<16x8x8xf32>
    %71 = vector.shape_cast %65 : vector<2x8x8x8xf32> to vector<16x8x8xf32>
    "tpu.trace_start"() <{level = 10 : i32, message = "nij,njk->nik"}> : () -> ()
    %cst_21 = arith.constant dense<0.000000e+00> : vector<16x8x8xf32>
    %72 = tpu.matmul %70, %71, %cst_21 {dimension_numbers = #tpu.dot_dimension_numbers<[2], [1], [1], [2], [0, 0, 0, 1, 1, 2], [0], [0]>} : vector<16x8x8xf32>, vector<16x8x8xf32>, vector<16x8x8xf32> -> vector<16x8x8xf32>
    "tpu.trace_stop"() : () -> ()
    %73 = vector.shape_cast %72 : vector<16x8x8xf32> to vector<2x8x8x8xf32>
    %74 = vector.shape_cast %73 : vector<2x8x8x8xf32> to vector<16x8x8xf32>
    %c0_22 = arith.constant 0 : index
    %c0_23 = arith.constant 0 : index
    %c0_24 = arith.constant 0 : index
    %75 = vector.load %arg3[%c0_22, %c0_23, %c0_24] : memref<2x1x8xf32, #tpu.memory_space<vmem>>, vector<1x1x8xf32>
    %76 = vector.shape_cast %75 : vector<1x1x8xf32> to vector<1x8xf32>
    %77 = vector.shape_cast %76 : vector<1x8xf32> to vector<1x1x8xf32>
    %78 = vector.broadcast %77 : vector<1x1x8xf32> to vector<16x8x8xf32>
    %79 = arith.mulf %74, %78 : vector<16x8x8xf32>
    %cst_25 = arith.constant dense<0.000000e+00> : vector<16x8xf32>
    %80 = vector.multi_reduction <add>, %79, %cst_25 [2] : vector<16x8x8xf32> to vector<16x8xf32>
    %81 = tpu.concatenate %80, %6 in 1 : vector<16x8xf32>, vector<16x32xf32> -> vector<16x40xf32>
    %c0_26 = arith.constant 0 : index
    %c0_27 = arith.constant 0 : index
    %c0_28 = arith.constant 0 : index
    %82 = vector.load %arg4[%c0_26, %c0_27, %c0_28] : memref<2x40x32xf32, #tpu.memory_space<vmem>>, vector<1x40x32xf32>
    %83 = vector.shape_cast %82 : vector<1x40x32xf32> to vector<40x32xf32>
    %cst_29 = arith.constant dense<0.000000e+00> : vector<16x32xf32>
    %84 = tpu.matmul %81, %83, %cst_29 {dimension_numbers = #tpu.dot_dimension_numbers<[1], [0], [0], [1], [0, 0, 1, 1], [], []>} : vector<16x40xf32>, vector<40x32xf32>, vector<16x32xf32> -> vector<16x32xf32>
    %c0_30 = arith.constant 0 : index
    %c0_31 = arith.constant 0 : index
    %c0_32 = arith.constant 0 : index
    %85 = vector.load %arg5[%c0_30, %c0_31, %c0_32] : memref<2x1x32xf32, #tpu.memory_space<vmem>>, vector<1x1x32xf32>
    %86 = vector.shape_cast %85 : vector<1x1x32xf32> to vector<1x32xf32>
    %87 = vector.broadcast %86 : vector<1x32xf32> to vector<16x32xf32>
    %88 = arith.addf %84, %87 : vector<16x32xf32>
    %89 = arith.addf %6, %88 : vector<16x32xf32>
    %cst_33 = arith.constant dense<0.000000e+00> : vector<16xf32>
    %90 = vector.multi_reduction <add>, %89, %cst_33 [1] : vector<16x32xf32> to vector<16xf32>
    %91 = vector.shape_cast %90 : vector<16xf32> to vector<16x1xf32>
    %cst_34 = arith.constant 3.200000e+01 : f32
    %92 = vector.broadcast %cst_34 : f32 to vector<16x1xf32>
    %93 = arith.divf %91, %92 : vector<16x1xf32>
    %94 = vector.broadcast %93 : vector<16x1xf32> to vector<16x32xf32>
    %95 = arith.subf %89, %94 : vector<16x32xf32>
    %96 = arith.mulf %95, %95 : vector<16x32xf32>
    %cst_35 = arith.constant dense<0.000000e+00> : vector<16xf32>
    %97 = vector.multi_reduction <add>, %96, %cst_35 [1] : vector<16x32xf32> to vector<16xf32>
    %98 = vector.shape_cast %97 : vector<16xf32> to vector<16x1xf32>
    %cst_36 = arith.constant 3.200000e+01 : f32
    %99 = vector.broadcast %cst_36 : f32 to vector<16x1xf32>
    %100 = arith.divf %98, %99 : vector<16x1xf32>
    %101 = vector.broadcast %93 : vector<16x1xf32> to vector<16x32xf32>
    %102 = arith.subf %89, %101 : vector<16x32xf32>
    %cst_37 = arith.constant 9.99999974E-6 : f32
    %103 = vector.broadcast %cst_37 : f32 to vector<16x1xf32>
    %104 = arith.addf %100, %103 : vector<16x1xf32>
    %105 = math.rsqrt %104 : vector<16x1xf32>
    %106 = vector.broadcast %105 : vector<16x1xf32> to vector<16x32xf32>
    %107 = arith.mulf %102, %106 : vector<16x32xf32>
    %c0_38 = arith.constant 0 : index
    %c0_39 = arith.constant 0 : index
    %c0_40 = arith.constant 0 : index
    %108 = vector.load %arg6[%c0_38, %c0_39, %c0_40] : memref<2x1x32xf32, #tpu.memory_space<vmem>>, vector<1x1x32xf32>
    %109 = vector.shape_cast %108 : vector<1x1x32xf32> to vector<1x32xf32>
    %110 = vector.broadcast %109 : vector<1x32xf32> to vector<16x32xf32>
    %111 = arith.mulf %107, %110 : vector<16x32xf32>
    %c0_41 = arith.constant 0 : index
    %c0_42 = arith.constant 0 : index
    %c0_43 = arith.constant 0 : index
    %112 = vector.load %arg7[%c0_41, %c0_42, %c0_43] : memref<2x1x32xf32, #tpu.memory_space<vmem>>, vector<1x1x32xf32>
    %113 = vector.shape_cast %112 : vector<1x1x32xf32> to vector<1x32xf32>
    %114 = vector.broadcast %113 : vector<1x32xf32> to vector<16x32xf32>
    %115 = arith.addf %111, %114 : vector<16x32xf32>
    %c1 = arith.constant 1 : index
    %c0_44 = arith.constant 0 : index
    %c0_45 = arith.constant 0 : index
    %116 = vector.load %arg2[%c1, %c0_44, %c0_45] : memref<2x32x64xf32, #tpu.memory_space<vmem>>, vector<1x32x64xf32>
    %117 = vector.shape_cast %116 : vector<1x32x64xf32> to vector<32x64xf32>
    %cst_46 = arith.constant dense<0.000000e+00> : vector<16x64xf32>
    %118 = tpu.matmul %115, %117, %cst_46 {dimension_numbers = #tpu.dot_dimension_numbers<[1], [0], [0], [1], [0, 0, 1, 1], [], []>} : vector<16x32xf32>, vector<32x64xf32>, vector<16x64xf32> -> vector<16x64xf32>
    %cst_47 = arith.constant 5.000000e-01 : f32
    %119 = vector.broadcast %cst_47 : f32 to vector<16x64xf32>
    %120 = arith.mulf %119, %118 : vector<16x64xf32>
    %cst_48 = arith.constant 0.707106769 : f32
    %121 = vector.broadcast %cst_48 : f32 to vector<16x64xf32>
    %122 = arith.mulf %118, %121 : vector<16x64xf32>
    %123 = math.absf %122 : vector<16x64xf32>
    %cst_49 = arith.constant 0.327591091 : f32
    %124 = vector.broadcast %cst_49 : f32 to vector<16x64xf32>
    %125 = arith.mulf %124, %123 : vector<16x64xf32>
    %cst_50 = arith.constant 1.000000e+00 : f32
    %126 = vector.broadcast %cst_50 : f32 to vector<16x64xf32>
    %127 = arith.addf %126, %125 : vector<16x64xf32>
    %128 = tpu.reciprocal %127 {approx = true} : vector<16x64xf32> -> vector<16x64xf32>
    %cst_51 = arith.constant 1.06140542 : f32
    %129 = vector.broadcast %cst_51 : f32 to vector<16x64xf32>
    %130 = arith.mulf %129, %128 : vector<16x64xf32>
    %cst_52 = arith.constant -1.45315206 : f32
    %131 = vector.broadcast %cst_52 : f32 to vector<16x64xf32>
    %132 = arith.addf %130, %131 : vector<16x64xf32>
    %133 = arith.mulf %132, %128 : vector<16x64xf32>
    %cst_53 = arith.constant 1.42141378 : f32
    %134 = vector.broadcast %cst_53 : f32 to vector<16x64xf32>
    %135 = arith.addf %133, %134 : vector<16x64xf32>
    %136 = arith.mulf %135, %128 : vector<16x64xf32>
    %cst_54 = arith.constant -0.284496725 : f32
    %137 = vector.broadcast %cst_54 : f32 to vector<16x64xf32>
    %138 = arith.addf %136, %137 : vector<16x64xf32>
    %139 = arith.mulf %138, %128 : vector<16x64xf32>
    %cst_55 = arith.constant 0.254829586 : f32
    %140 = vector.broadcast %cst_55 : f32 to vector<16x64xf32>
    %141 = arith.addf %139, %140 : vector<16x64xf32>
    %142 = arith.mulf %141, %128 : vector<16x64xf32>
    %cst_56 = arith.constant 0.000000e+00 : f32
    %143 = vector.broadcast %cst_56 : f32 to vector<16x64xf32>
    %144 = arith.subf %143, %123 : vector<16x64xf32>
    %145 = arith.mulf %144, %123 : vector<16x64xf32>
    %146 = math.exp %145 : vector<16x64xf32>
    %147 = arith.mulf %142, %146 : vector<16x64xf32>
    %cst_57 = arith.constant 1.000000e+00 : f32
    %148 = vector.broadcast %cst_57 : f32 to vector<16x64xf32>
    %149 = arith.subf %148, %147 : vector<16x64xf32>
    %cst_58 = arith.constant 0.000000e+00 : f32
    %150 = vector.broadcast %cst_58 : f32 to vector<16x64xf32>
    %151 = arith.cmpf oge, %122, %150 : vector<16x64xf32>
    %cst_59 = arith.constant 0.000000e+00 : f32
    %152 = vector.broadcast %cst_59 : f32 to vector<16x64xf32>
    %153 = arith.subf %152, %149 : vector<16x64xf32>
    %154 = arith.select %151, %149, %153 : vector<16x64xi1>, vector<16x64xf32>
    %cst_60 = arith.constant 1.000000e+00 : f32
    %155 = vector.broadcast %cst_60 : f32 to vector<16x64xf32>
    %156 = arith.addf %155, %154 : vector<16x64xf32>
    %157 = arith.mulf %120, %156 : vector<16x64xf32>
    %158 = vector.shape_cast %157 : vector<16x64xf32> to vector<2x8x8x8xf32>
    %159 = vector.shape_cast %4 : vector<8x8xf32> to vector<1x1x8x8xf32>
    %160 = vector.broadcast %159 : vector<1x1x8x8xf32> to vector<2x1x8x8xf32>
    %161 = vector.extract_strided_slice %158 {offsets = [0, 0, 0, 0], sizes = [2, 7, 8, 8], strides = [1, 1, 1, 1]} : vector<2x8x8x8xf32> to vector<2x7x8x8xf32>
    %162 = tpu.concatenate %160, %161 in 1 : vector<2x1x8x8xf32>, vector<2x7x8x8xf32> -> vector<2x8x8x8xf32>
    %163 = vector.shape_cast %162 : vector<2x8x8x8xf32> to vector<16x8x8xf32>
    %164 = vector.shape_cast %158 : vector<2x8x8x8xf32> to vector<16x8x8xf32>
    "tpu.trace_start"() <{level = 10 : i32, message = "nij,njk->nik"}> : () -> ()
    %cst_61 = arith.constant dense<0.000000e+00> : vector<16x8x8xf32>
    %165 = tpu.matmul %163, %164, %cst_61 {dimension_numbers = #tpu.dot_dimension_numbers<[2], [1], [1], [2], [0, 0, 0, 1, 1, 2], [0], [0]>} : vector<16x8x8xf32>, vector<16x8x8xf32>, vector<16x8x8xf32> -> vector<16x8x8xf32>
    "tpu.trace_stop"() : () -> ()
    %166 = vector.shape_cast %165 : vector<16x8x8xf32> to vector<2x8x8x8xf32>
    %167 = vector.shape_cast %4 : vector<8x8xf32> to vector<1x1x8x8xf32>
    %168 = vector.broadcast %167 : vector<1x1x8x8xf32> to vector<2x2x8x8xf32>
    %169 = vector.extract_strided_slice %166 {offsets = [0, 0, 0, 0], sizes = [2, 6, 8, 8], strides = [1, 1, 1, 1]} : vector<2x8x8x8xf32> to vector<2x6x8x8xf32>
    %170 = tpu.concatenate %168, %169 in 1 : vector<2x2x8x8xf32>, vector<2x6x8x8xf32> -> vector<2x8x8x8xf32>
    %171 = vector.shape_cast %170 : vector<2x8x8x8xf32> to vector<16x8x8xf32>
    %172 = vector.shape_cast %166 : vector<2x8x8x8xf32> to vector<16x8x8xf32>
    "tpu.trace_start"() <{level = 10 : i32, message = "nij,njk->nik"}> : () -> ()
    %cst_62 = arith.constant dense<0.000000e+00> : vector<16x8x8xf32>
    %173 = tpu.matmul %171, %172, %cst_62 {dimension_numbers = #tpu.dot_dimension_numbers<[2], [1], [1], [2], [0, 0, 0, 1, 1, 2], [0], [0]>} : vector<16x8x8xf32>, vector<16x8x8xf32>, vector<16x8x8xf32> -> vector<16x8x8xf32>
    "tpu.trace_stop"() : () -> ()
    %174 = vector.shape_cast %173 : vector<16x8x8xf32> to vector<2x8x8x8xf32>
    %175 = vector.shape_cast %4 : vector<8x8xf32> to vector<1x1x8x8xf32>
    %176 = vector.broadcast %175 : vector<1x1x8x8xf32> to vector<2x4x8x8xf32>
    %177 = vector.extract_strided_slice %174 {offsets = [0, 0, 0, 0], sizes = [2, 4, 8, 8], strides = [1, 1, 1, 1]} : vector<2x8x8x8xf32> to vector<2x4x8x8xf32>
    %178 = tpu.concatenate %176, %177 in 1 : vector<2x4x8x8xf32>, vector<2x4x8x8xf32> -> vector<2x8x8x8xf32>
    %179 = vector.shape_cast %178 : vector<2x8x8x8xf32> to vector<16x8x8xf32>
    %180 = vector.shape_cast %174 : vector<2x8x8x8xf32> to vector<16x8x8xf32>
    "tpu.trace_start"() <{level = 10 : i32, message = "nij,njk->nik"}> : () -> ()
    %cst_63 = arith.constant dense<0.000000e+00> : vector<16x8x8xf32>
    %181 = tpu.matmul %179, %180, %cst_63 {dimension_numbers = #tpu.dot_dimension_numbers<[2], [1], [1], [2], [0, 0, 0, 1, 1, 2], [0], [0]>} : vector<16x8x8xf32>, vector<16x8x8xf32>, vector<16x8x8xf32> -> vector<16x8x8xf32>
    "tpu.trace_stop"() : () -> ()
    %182 = vector.shape_cast %181 : vector<16x8x8xf32> to vector<2x8x8x8xf32>
    %183 = vector.shape_cast %182 : vector<2x8x8x8xf32> to vector<16x8x8xf32>
    %c1_64 = arith.constant 1 : index
    %c0_65 = arith.constant 0 : index
    %c0_66 = arith.constant 0 : index
    %184 = vector.load %arg3[%c1_64, %c0_65, %c0_66] : memref<2x1x8xf32, #tpu.memory_space<vmem>>, vector<1x1x8xf32>
    %185 = vector.shape_cast %184 : vector<1x1x8xf32> to vector<1x8xf32>
    %186 = vector.shape_cast %185 : vector<1x8xf32> to vector<1x1x8xf32>
    %187 = vector.broadcast %186 : vector<1x1x8xf32> to vector<16x8x8xf32>
    %188 = arith.mulf %183, %187 : vector<16x8x8xf32>
    %cst_67 = arith.constant dense<0.000000e+00> : vector<16x8xf32>
    %189 = vector.multi_reduction <add>, %188, %cst_67 [2] : vector<16x8x8xf32> to vector<16x8xf32>
    %190 = tpu.concatenate %189, %115 in 1 : vector<16x8xf32>, vector<16x32xf32> -> vector<16x40xf32>
    %c1_68 = arith.constant 1 : index
    %c0_69 = arith.constant 0 : index
    %c0_70 = arith.constant 0 : index
    %191 = vector.load %arg4[%c1_68, %c0_69, %c0_70] : memref<2x40x32xf32, #tpu.memory_space<vmem>>, vector<1x40x32xf32>
    %192 = vector.shape_cast %191 : vector<1x40x32xf32> to vector<40x32xf32>
    %cst_71 = arith.constant dense<0.000000e+00> : vector<16x32xf32>
    %193 = tpu.matmul %190, %192, %cst_71 {dimension_numbers = #tpu.dot_dimension_numbers<[1], [0], [0], [1], [0, 0, 1, 1], [], []>} : vector<16x40xf32>, vector<40x32xf32>, vector<16x32xf32> -> vector<16x32xf32>
    %c1_72 = arith.constant 1 : index
    %c0_73 = arith.constant 0 : index
    %c0_74 = arith.constant 0 : index
    %194 = vector.load %arg5[%c1_72, %c0_73, %c0_74] : memref<2x1x32xf32, #tpu.memory_space<vmem>>, vector<1x1x32xf32>
    %195 = vector.shape_cast %194 : vector<1x1x32xf32> to vector<1x32xf32>
    %196 = vector.broadcast %195 : vector<1x32xf32> to vector<16x32xf32>
    %197 = arith.addf %193, %196 : vector<16x32xf32>
    %198 = arith.addf %115, %197 : vector<16x32xf32>
    %cst_75 = arith.constant dense<0.000000e+00> : vector<16xf32>
    %199 = vector.multi_reduction <add>, %198, %cst_75 [1] : vector<16x32xf32> to vector<16xf32>
    %200 = vector.shape_cast %199 : vector<16xf32> to vector<16x1xf32>
    %cst_76 = arith.constant 3.200000e+01 : f32
    %201 = vector.broadcast %cst_76 : f32 to vector<16x1xf32>
    %202 = arith.divf %200, %201 : vector<16x1xf32>
    %203 = vector.broadcast %202 : vector<16x1xf32> to vector<16x32xf32>
    %204 = arith.subf %198, %203 : vector<16x32xf32>
    %205 = arith.mulf %204, %204 : vector<16x32xf32>
    %cst_77 = arith.constant dense<0.000000e+00> : vector<16xf32>
    %206 = vector.multi_reduction <add>, %205, %cst_77 [1] : vector<16x32xf32> to vector<16xf32>
    %207 = vector.shape_cast %206 : vector<16xf32> to vector<16x1xf32>
    %cst_78 = arith.constant 3.200000e+01 : f32
    %208 = vector.broadcast %cst_78 : f32 to vector<16x1xf32>
    %209 = arith.divf %207, %208 : vector<16x1xf32>
    %210 = vector.broadcast %202 : vector<16x1xf32> to vector<16x32xf32>
    %211 = arith.subf %198, %210 : vector<16x32xf32>
    %cst_79 = arith.constant 9.99999974E-6 : f32
    %212 = vector.broadcast %cst_79 : f32 to vector<16x1xf32>
    %213 = arith.addf %209, %212 : vector<16x1xf32>
    %214 = math.rsqrt %213 : vector<16x1xf32>
    %215 = vector.broadcast %214 : vector<16x1xf32> to vector<16x32xf32>
    %216 = arith.mulf %211, %215 : vector<16x32xf32>
    %c1_80 = arith.constant 1 : index
    %c0_81 = arith.constant 0 : index
    %c0_82 = arith.constant 0 : index
    %217 = vector.load %arg6[%c1_80, %c0_81, %c0_82] : memref<2x1x32xf32, #tpu.memory_space<vmem>>, vector<1x1x32xf32>
    %218 = vector.shape_cast %217 : vector<1x1x32xf32> to vector<1x32xf32>
    %219 = vector.broadcast %218 : vector<1x32xf32> to vector<16x32xf32>
    %220 = arith.mulf %216, %219 : vector<16x32xf32>
    %c1_83 = arith.constant 1 : index
    %c0_84 = arith.constant 0 : index
    %c0_85 = arith.constant 0 : index
    %221 = vector.load %arg7[%c1_83, %c0_84, %c0_85] : memref<2x1x32xf32, #tpu.memory_space<vmem>>, vector<1x1x32xf32>
    %222 = vector.shape_cast %221 : vector<1x1x32xf32> to vector<1x32xf32>
    %223 = vector.broadcast %222 : vector<1x32xf32> to vector<16x32xf32>
    %224 = arith.addf %220, %223 : vector<16x32xf32>
    %c0_86 = arith.constant 0 : index
    %c0_87 = arith.constant 0 : index
    %225 = vector.load %arg8[%c0_86, %c0_87] : memref<32x16xf32, #tpu.memory_space<vmem>>, vector<32x16xf32>
    %cst_88 = arith.constant dense<0.000000e+00> : vector<16x16xf32>
    %226 = tpu.matmul %224, %225, %cst_88 {dimension_numbers = #tpu.dot_dimension_numbers<[1], [0], [0], [1], [0, 0, 1, 1], [], []>} : vector<16x32xf32>, vector<32x16xf32>, vector<16x16xf32> -> vector<16x16xf32>
    %c0_89 = arith.constant 0 : index
    %c0_90 = arith.constant 0 : index
    %227 = vector.load %arg9[%c0_89, %c0_90] : memref<1x16xf32, #tpu.memory_space<vmem>>, vector<1x16xf32>
    %228 = vector.broadcast %227 : vector<1x16xf32> to vector<16x16xf32>
    %229 = arith.addf %226, %228 : vector<16x16xf32>
    %230 = vector.shape_cast %229 : vector<16x16xf32> to vector<2x8x16xf32>
    %c0_91 = arith.constant 0 : index
    %c0_92 = arith.constant 0 : index
    %c0_93 = arith.constant 0 : index
    %231 = vector.load %arg10[%c0_91, %c0_92, %c0_93] : memref<2x8x16xf32, #tpu.memory_space<vmem>>, vector<2x8x16xf32>
    tpu.vector_store %arg10[%c0_91, %c0_92, %c0_93], %230 {strides = array<i32>} : memref<2x8x16xf32, #tpu.memory_space<vmem>>, vector<2x8x16xf32>,
    return
  }
  func.func @transform_0(%arg0: i32) -> (i32, i32, i32) {
    %c0_i32 = arith.constant 0 : i32
    %c0_i32_0 = arith.constant 0 : i32
    %c0_i32_1 = arith.constant 0 : i32
    return %arg0, %c0_i32, %c0_i32_0 : i32, i32, i32
  }
  func.func @transform_1(%arg0: i32) -> (i32, i32, i32) {
    %c0_i32 = arith.constant 0 : i32
    %c0_i32_0 = arith.constant 0 : i32
    %c0_i32_1 = arith.constant 0 : i32
    %c0_i32_2 = arith.constant 0 : i32
    return %c0_i32, %c0_i32_0, %c0_i32_1 : i32, i32, i32
  }
  func.func @transform_2(%arg0: i32) -> (i32, i32, i32) {
    %c0_i32 = arith.constant 0 : i32
    %c0_i32_0 = arith.constant 0 : i32
    %c0_i32_1 = arith.constant 0 : i32
    %c0_i32_2 = arith.constant 0 : i32
    return %c0_i32, %c0_i32_0, %c0_i32_1 : i32, i32, i32
  }
  func.func @transform_3(%arg0: i32) -> (i32, i32, i32) {
    %c0_i32 = arith.constant 0 : i32
    %c0_i32_0 = arith.constant 0 : i32
    %c0_i32_1 = arith.constant 0 : i32
    %c0_i32_2 = arith.constant 0 : i32
    return %c0_i32, %c0_i32_0, %c0_i32_1 : i32, i32, i32
  }
  func.func @transform_4(%arg0: i32) -> (i32, i32, i32) {
    %c0_i32 = arith.constant 0 : i32
    %c0_i32_0 = arith.constant 0 : i32
    %c0_i32_1 = arith.constant 0 : i32
    %c0_i32_2 = arith.constant 0 : i32
    return %c0_i32, %c0_i32_0, %c0_i32_1 : i32, i32, i32
  }
  func.func @transform_5(%arg0: i32) -> (i32, i32, i32) {
    %c0_i32 = arith.constant 0 : i32
    %c0_i32_0 = arith.constant 0 : i32
    %c0_i32_1 = arith.constant 0 : i32
    %c0_i32_2 = arith.constant 0 : i32
    return %c0_i32, %c0_i32_0, %c0_i32_1 : i32, i32, i32
  }
  func.func @transform_6(%arg0: i32) -> (i32, i32, i32) {
    %c0_i32 = arith.constant 0 : i32
    %c0_i32_0 = arith.constant 0 : i32
    %c0_i32_1 = arith.constant 0 : i32
    %c0_i32_2 = arith.constant 0 : i32
    return %c0_i32, %c0_i32_0, %c0_i32_1 : i32, i32, i32
  }
  func.func @transform_7(%arg0: i32) -> (i32, i32) {
    %c0_i32 = arith.constant 0 : i32
    %c0_i32_0 = arith.constant 0 : i32
    %c0_i32_1 = arith.constant 0 : i32
    return %c0_i32, %c0_i32_0 : i32, i32
  }
  func.func @transform_8(%arg0: i32) -> (i32, i32) {
    %c0_i32 = arith.constant 0 : i32
    %c0_i32_0 = arith.constant 0 : i32
    %c0_i32_1 = arith.constant 0 : i32
    return %c0_i32, %c0_i32_0 : i32, i32
  }
  func.func @transform_9(%arg0: i32) -> (i32, i32, i32) {
    %c0_i32 = arith.constant 0 : i32
    %c0_i32_0 = arith.constant 0 : i32
    %c0_i32_1 = arith.constant 0 : i32
    return %arg0, %c0_i32, %c0_i32_0 : i32, i32, i32
  }
}

</mosaic_0001>

<bundles_post_ra>
// kernel: ids4_token_classifier_forward.1
= control target key start
LH: loop header
LB: loop body
LE: loop exit
PB: predicated region body
PF: predicated region fallthrough
CT: control target
= control target key end

     0   :  { %s11907_s0 = inlined_call_operand.hbm [shape: f32[4,8,32], index: 0, kind: input, shape index: {}]   ;;  %s11908_s1 = inlined_call_operand.hbm [shape: f32[2,32,64], index: 1, kind: input, shape index: {}]   ;;  %s11909_s2 = inlined_call_operand.hbm [shape: f32[2,1,8], index: 2, kind: input, shape index: {}]   ;;  %s11910_s3 = inlined_call_operand.hbm [shape: f32[2,40,32], index: 3, kind: input, shape index: {}]   ;;  %s11911_s4 = inlined_call_operand.hbm [shape: f32[2,1,32], index: 4, kind: input, shape index: {}]   ;;  %s11912_s5 = inlined_call_operand.hbm [shape: f32[2,1,32], index: 5, kind: input, shape index: {}]   ;;  %s11913_s6 = inlined_call_operand.hbm [shape: f32[2,1,32], index: 6, kind: input, shape index: {}]   ;;  %s11914_s7 = inlined_call_operand.hbm [shape: f32[32,16], index: 7, kind: input, shape index: {}]   ;;  %s11915_s8 = inlined_call_operand.hbm [shape: f32[1,16], index: 8, kind: input, shape index: {}]   ;;  %s11916_s9 = inlined_call_operand.hbm [shape: f32[4,8,16], index: 9, kind: output, shape index: {}]  }
   0x1   :  { %11925 = sst [smem:[#allocation24_spill]] %s11908_s1 }
   0x2   :  { %11926 = sst [smem:[#allocation25_spill]] %s11910_s3 }
   0x3   :  { %11927 = sst [smem:[#allocation26_spill]] %s11912_s5 }
   0x4   :  { %11928 = sst [smem:[#allocation27_spill]] %s11916_s9 }
   0x5   :  { %14 = vsyncpa [#allocation3], 0 }
   0x6   :  { %16 = vsyncpa [#allocation3 + $0x1], 0 }
   0x7   :  { %17 = vsyncpa [#allocation6], 0 }
   0x8   :  { %18 = vsyncpa [#allocation9], 0 }
   0x9   :  { %19 = vsyncpa [#allocation12], 0 }
   0xa   :  { %20 = vsyncpa [#allocation15], 0 }
   0xb   :  { %21 = vsyncpa [#allocation4], 0 }
   0xc   :  { %23 = vsyncpa [#allocation4 + $0x1], 0  ;;  %s10748_s30 = smov 0   ;;  %s10750_s10 = smov 0  }
   0xd   :  { %s10752_s11 = smov 0   ;;  %s10754_s12 = smov 0  }
   0xe LB: > { %s10671_s13 = smov [#allocation5]   ;;  %s10769_s15 = sadd.s32 4294967295, %s10669_s12   ;;  %s10669_s12 = sphi %s10754_s12, %s11959_s12   ;;  %s10665_s11 = sphi %s10752_s11, %s11958_s11   ;;  %s10661_s10 = sphi %s10750_s10, %s11957_s10   ;;  %s10657_s30 = sphi %s10748_s30, %s11956_s30  }
   0xf   : > { %s266_s14 = sshll.u32 %s10671_s13, 4  ;;  %p9213_p0 = scmp.ge.s32.totalorder %s10669_s12, 1  ;;  %s10774_s14 = int_to_ptr.vmem [resolvable:$true] %s266_s14 }
  0x10   : > { %p11918_p1 = scmp.eq.s32.totalorder %s10769_s15, 0  ;;  %p254_p2 = scmp.lt.s32.totalorder %s10669_s12, 3 }
  0x11   : > { %s10672_s17 = smov [#allocation8]   ;;  %s10673_s20 = smov [#allocation11]  }
  0x12   : > { %p10776_p3 = pnand %p9213_p0, %p254_p2  ;;  %s292_s18 = sshll.u32 %s10672_s17, 4  ;;  %s10789_s18 = int_to_ptr.vmem [resolvable:$true] %s292_s18 }
  0x13   : > { %s10791_s21 = sshll.u32 %s10673_s20, 4  ;;  %s11931_s1 = sld [smem:[#allocation24_spill]]  ;;  %s319_s21 = int_to_ptr.vmem [resolvable:$true] %s10791_s21 }
  0x14   : > { %s11929_s16 = scalar_select %p10776_p3, 1, 0 }
  0x15   : > { %p10199_p5 = pneg %p10776_p3 }
  0x17   : > { %p10785_p6 = pnand %p10199_p5, %p11918_p1 }
  0x19   : > { %s10333_s24 = scalar_lea.hbm %s11931_s1, 1024  ;;  %p10801_p8 = pneg %p10785_p6 }
  0x1a   : > { %p10334_p7 = scmp.ne.s32.totalorder %s11931_s1, %s10333_s24  ;;  %p10340_p11 = scmp.lt.u32.totalorder %s10333_s24, %s11931_s1 }
  0x1c   : > { %p10336_p9 = pnand %p10801_p8, %p10334_p7 }
  0x1e   : > { %p10337_p10 = pneg %p10336_p9 }
  0x20   : > { %p10342_p12 = pnand %p10340_p11, %p10337_p10 }
  0x22   : > { %10345 = shalt.err (!%p10342_p12)
}
  0x23   : > { %s10346_s13 = scalar_lea.vmem %s10774_s14, 1024  ;;  %p10354_p5 = scmp.lt.s32.totalorder %s10774_s14, %s10774_s14 }
  0x24   : > { %p10347_p13 = scmp.ne.s32.totalorder %s10774_s14, %s10346_s13  ;;  %p10355_p4 = scmp.lt.s32.totalorder %s10346_s13, %s10346_s13 }
  0x26   : > { %p10349_p0 = pnand %p10347_p13, %p10801_p8  ;;  %p10356_p7 = por %p10355_p4, %p10354_p5 }
  0x28   : > { %p10350_p2 = pneg %p10349_p0 }
  0x2a   : > { %p10357_p9 = pnand %p10356_p7, %p10350_p2 }
  0x2c   : > { %10360 = shalt.err (!%p10357_p9)
}
  0x2d   : > { %s11920_s17 = smov 128   ;;  %s11922_s20 = smov 8  }
  0x2e   : > { %10202 = dma.hbm_to_vmem [thread:$0]  (!%p10785_p6), %s11931_s1, 1024, %s10774_s14, [#allocation6], %s11920_s17, %s11920_s17, %s11922_s20  }
  0x2f   : > { %s11933_s3 = sld [smem:[#allocation25_spill]] }
  0x35   : > { %s10361_s26 = scalar_lea.hbm %s11933_s3, 1280 }
  0x36   : > { %p10362_p4 = scmp.ne.s32.totalorder %s11933_s3, %s10361_s26  ;;  %p10368_p12 = scmp.lt.u32.totalorder %s10361_s26, %s11933_s3 }
  0x38   : > { %p10364_p10 = pnand %p10362_p4, %p10801_p8 }
  0x3a   : > { %p10365_p11 = pneg %p10364_p10 }
  0x3c   : > { %p10370_p13 = pnand %p10368_p12, %p10365_p11 }
  0x3e   : > { %10373 = shalt.err (!%p10370_p13)
}
  0x3f   : > { %s10374_s14 = scalar_lea.vmem %s10789_s18, 1280  ;;  %p10382_p7 = scmp.lt.s32.totalorder %s10789_s18, %s10789_s18 }
  0x40   : > { %p10375_p0 = scmp.ne.s32.totalorder %s10789_s18, %s10374_s14  ;;  %p10383_p9 = scmp.lt.s32.totalorder %s10374_s14, %s10374_s14 }
  0x42   : > { %p10377_p2 = pnand %p10375_p0, %p10801_p8  ;;  %p10384_p4 = por %p10383_p9, %p10382_p7 }
  0x44   : > { %p10378_p5 = pneg %p10377_p2 }
  0x46   : > { %p10385_p10 = pnand %p10384_p4, %p10378_p5 }
  0x48   : > { %10388 = shalt.err (!%p10385_p10)
}
  0x49   : > { %10208 = dma.hbm_to_vmem [thread:$0]  (!%p10785_p6), %s11933_s3, 1280, %s10789_s18, [#allocation9], %s11920_s17, %s11920_s17, %s11922_s20  }
  0x4a   : > { %s11934_s5 = sld [smem:[#allocation26_spill]] }
  0x50   : > { %s10389_s25 = scalar_lea.hbm %s11934_s5, 32 }
  0x51   : > { %p10390_p11 = scmp.ne.s32.totalorder %s11934_s5, %s10389_s25  ;;  %p10396_p0 = scmp.lt.u32.totalorder %s10389_s25, %s11934_s5 }
  0x53   : > { %p10392_p12 = pnand %p10390_p11, %p10801_p8 }
  0x55   : > { %p10393_p13 = pneg %p10392_p12 }
  0x57   : > { %p10398_p2 = pnand %p10396_p0, %p10393_p13 }
  0x59   : > { %10401 = shalt.err (!%p10398_p2)
}
  0x5a   : > { %s10402_s14 = scalar_lea.vmem %s319_s21, 32  ;;  %p10410_p4 = scmp.lt.s32.totalorder %s319_s21, %s319_s21 }
  0x5b   : > { %p10403_p5 = scmp.ne.s32.totalorder %s319_s21, %s10402_s14  ;;  %p10411_p10 = scmp.lt.s32.totalorder %s10402_s14, %s10402_s14 }
  0x5d   : > { %p10405_p7 = pnand %p10403_p5, %p10801_p8  ;;  %p10412_p1 = por %p10411_p10, %p10410_p4 }
  0x5f   : > { %p10406_p9 = pneg %p10405_p7 }
  0x61   : > { %p10413_p3 = pnand %p10412_p1, %p10406_p9 }
  0x63   : > { %10416 = shalt.err (!%p10413_p3)
}
  0x64   : > { %s10676_s18 = smov 16   ;;  %s10677_s9 = smov 1  }
  0x65   : > { %10214 = dma.hbm_to_vmem [thread:$0]  (!%p10785_p6), %s11934_s5, 32, %s319_s21, [#allocation12], %s10676_s18, %s10676_s18, %s10677_s9  }
  0x66   : > { %s10678_s24 = smov [#allocation14]   ;;  %s10679_s26 = smov [#allocation7]  }
  0x67   : > { %s344_s25 = sshll.u32 %s10678_s24, 4  ;;  %s279_s28 = sshll.u32 %s10679_s26, 4  ;;  %s345_s25 = int_to_ptr.vmem [resolvable:$true] %s344_s25  ;;  %s280_s28 = int_to_ptr.vmem [resolvable:$true] %s279_s28 }
  0x68   : > { %s10417_s14 = scalar_lea.hbm %s11914_s7, 512 }
  0x69   : > { %p10418_p1 = scmp.ne.s32.totalorder %s11914_s7, %s10417_s14  ;;  %p10424_p12 = scmp.lt.u32.totalorder %s10417_s14, %s11914_s7 }
  0x6b   : > { %p10420_p3 = pnand %p10418_p1, %p10801_p8 }
  0x6d   : > { %p10421_p11 = pneg %p10420_p3 }
  0x6f   : > { %p10426_p13 = pnand %p10424_p12, %p10421_p11 }
  0x71   : > { %10429 = shalt.err (!%p10426_p13)
}
  0x72   : > { %s10430_s21 = scalar_lea.vmem %s345_s25, 512  ;;  %p10438_p7 = scmp.lt.s32.totalorder %s345_s25, %s345_s25 }
  0x73   : > { %p10431_p0 = scmp.ne.s32.totalorder %s345_s25, %s10430_s21  ;;  %p10439_p9 = scmp.lt.s32.totalorder %s10430_s21, %s10430_s21 }
  0x75   : > { %p10433_p2 = pnand %p10431_p0, %p10801_p8  ;;  %p10440_p4 = por %p10439_p9, %p10438_p7 }
  0x77   : > { %p10434_p5 = pneg %p10433_p2 }
  0x79   : > { %p10441_p10 = pnand %p10440_p4, %p10434_p5 }
  0x7b   : > { %10444 = shalt.err (!%p10441_p10)
}
  0x7c   : > { %s11935_s17 = smov 8   ;;  %s11936_s20 = smov 128  }
  0x7d   : > { %10220 = dma.hbm_to_vmem [thread:$0]  (!%p10785_p6), %s11914_s7, 512, %s345_s25, [#allocation15], %s11936_s20, %s11936_s20, %s11935_s17  }
  0x7e   : > { %s10445_s24 = scalar_lea.hbm %s11909_s2, 32 }
  0x7f   : > { %p10446_p1 = scmp.ne.s32.totalorder %s11909_s2, %s10445_s24  ;;  %p10452_p12 = scmp.lt.u32.totalorder %s10445_s24, %s11909_s2 }
  0x81   : > { %p10448_p3 = pnand %p10446_p1, %p10801_p8 }
  0x83   : > { %p10449_p11 = pneg %p10448_p3 }
  0x85   : > { %p10454_p13 = pnand %p10452_p12, %p10449_p11 }
  0x87   : > { %10457 = shalt.err (!%p10454_p13)
}
  0x88   : > { %s10458_s21 = scalar_lea.vmem %s280_s28, 32  ;;  %p10466_p7 = scmp.lt.s32.totalorder %s280_s28, %s280_s28 }
  0x89   : > { %p10459_p0 = scmp.ne.s32.totalorder %s280_s28, %s10458_s21  ;;  %p10467_p9 = scmp.lt.s32.totalorder %s10458_s21, %s10458_s21 }
  0x8b   : > { %p10461_p2 = pnand %p10459_p0, %p10801_p8  ;;  %p10468_p4 = por %p10467_p9, %p10466_p7 }
  0x8d   : > { %p10462_p5 = pneg %p10461_p2 }
  0x8f   : > { %p10469_p10 = pnand %p10468_p4, %p10462_p5 }
  0x91   : > { %10472 = shalt.err (!%p10469_p10)
}
  0x92   : > { %10205 = dma.hbm_to_vmem [thread:$0]  (!%p10785_p6), %s11909_s2, 32, %s280_s28, [#allocation6], %s10676_s18, %s10676_s18, %s10677_s9  }
  0x93   : > { %s10680_s3 = smov [#allocation10]   ;;  %s10681_s23 = smov [#allocation13]  }
  0x94   : > { %s305_s22 = sshll.u32 %s10680_s3, 4  ;;  %s331_s24 = sshll.u32 %s10681_s23, 4  ;;  %s306_s22 = int_to_ptr.vmem [resolvable:$true] %s305_s22  ;;  %s332_s24 = int_to_ptr.vmem [resolvable:$true] %s331_s24 }
  0x95   : > { %s10473_s13 = scalar_lea.hbm %s11911_s4, 32 }
  0x96   : > { %p10474_p1 = scmp.ne.s32.totalorder %s11911_s4, %s10473_s13  ;;  %p10480_p12 = scmp.lt.u32.totalorder %s10473_s13, %s11911_s4 }
  0x98   : > { %p10476_p3 = pnand %p10474_p1, %p10801_p8 }
  0x9a   : > { %p10477_p11 = pneg %p10476_p3 }
  0x9c   : > { %p10482_p13 = pnand %p10480_p12, %p10477_p11 }
  0x9e   : > { %10485 = shalt.err (!%p10482_p13)
}
  0x9f   : > { %s10486_s28 = scalar_lea.vmem %s306_s22, 32  ;;  %p10494_p7 = scmp.lt.s32.totalorder %s306_s22, %s306_s22 }
  0xa0   : > { %p10487_p0 = scmp.ne.s32.totalorder %s306_s22, %s10486_s28  ;;  %p10495_p9 = scmp.lt.s32.totalorder %s10486_s28, %s10486_s28 }
  0xa2   : > { %p10489_p2 = pnand %p10487_p0, %p10801_p8  ;;  %p10496_p4 = por %p10495_p9, %p10494_p7 }
  0xa4   : > { %p10490_p5 = pneg %p10489_p2 }
  0xa6   : > { %p10497_p10 = pnand %p10496_p4, %p10490_p5 }
  0xa8   : > { %10500 = shalt.err (!%p10497_p10)
}
  0xa9   : > { %10211 = dma.hbm_to_vmem [thread:$0]  (!%p10785_p6), %s11911_s4, 32, %s306_s22, [#allocation9], %s10676_s18, %s10676_s18, %s10677_s9  }
  0xaa   : > { %s10501_s26 = scalar_lea.hbm %s11913_s6, 32 }
  0xab   : > { %p10502_p1 = scmp.ne.s32.totalorder %s11913_s6, %s10501_s26  ;;  %p10508_p12 = scmp.lt.u32.totalorder %s10501_s26, %s11913_s6 }
  0xad   : > { %p10504_p3 = pnand %p10502_p1, %p10801_p8 }
  0xaf   : > { %p10505_p11 = pneg %p10504_p3 }
  0xb1   : > { %p10510_p13 = pnand %p10508_p12, %p10505_p11 }
  0xb3   : > { %10513 = shalt.err (!%p10510_p13)
}
  0xb4   : > { %s10514_s25 = scalar_lea.vmem %s332_s24, 32  ;;  %p10522_p7 = scmp.lt.s32.totalorder %s332_s24, %s332_s24 }
  0xb5   : > { %p10515_p0 = scmp.ne.s32.totalorder %s332_s24, %s10514_s25  ;;  %p10523_p9 = scmp.lt.s32.totalorder %s10514_s25, %s10514_s25 }
  0xb7   : > { %p10517_p2 = pnand %p10515_p0, %p10801_p8  ;;  %p10524_p4 = por %p10523_p9, %p10522_p7 }
  0xb9   : > { %p10518_p5 = pneg %p10517_p2 }
  0xbb   : > { %p10525_p10 = pnand %p10524_p4, %p10518_p5 }
  0xbd   : > { %10528 = shalt.err (!%p10525_p10)
}
  0xbe   : > { %10217 = dma.hbm_to_vmem [thread:$0]  (!%p10785_p6), %s11913_s6, 32, %s332_s24, [#allocation12], %s10676_s18, %s10676_s18, %s10677_s9  }
  0xbf   : > { %s10682_s5 = smov [#allocation16]   ;;  %s10529_s26 = scalar_lea.hbm %s11915_s8, 16 }
  0xc0   : > { %s358_s1 = sshll.u32 %s10682_s5, 4  ;;  %p10530_p1 = scmp.ne.s32.totalorder %s11915_s8, %s10529_s26  ;;  %s359_s1 = int_to_ptr.vmem [resolvable:$true] %s358_s1 }
  0xc1   : > { %p10536_p12 = scmp.lt.u32.totalorder %s10529_s26, %s11915_s8 }
  0xc2   : > { %p10532_p3 = pnand %p10530_p1, %p10801_p8 }
  0xc4   : > { %p10533_p11 = pneg %p10532_p3 }
  0xc6   : > { %p10538_p13 = pnand %p10536_p12, %p10533_p11 }
  0xc8   : > { %10541 = shalt.err (!%p10538_p13)
}
  0xc9   : > { %s10542_s18 = scalar_lea.vmem %s359_s1, 16  ;;  %s10549_s9 = scalar_lea.vmem %s359_s1, 32 }
  0xca   : > { %p10543_p0 = scmp.ne.s32.totalorder %s359_s1, %s10542_s18  ;;  %p10550_p7 = scmp.lt.s32.totalorder %s359_s1, %s359_s1 }
  0xcb   : > { %p10551_p9 = scmp.lt.s32.totalorder %s10549_s9, %s10542_s18 }
  0xcc   : > { %p10545_p2 = pnand %p10543_p0, %p10801_p8 }
  0xcd   : > { %p10552_p4 = por %p10551_p9, %p10550_p7 }
  0xce   : > { %p10546_p5 = pneg %p10545_p2 }
  0xd0   : > { %p10553_p10 = pnand %p10552_p4, %p10546_p5 }
  0xd2   : > { %10556 = shalt.err (!%p10553_p10)
}
  0xd3   : > { %10223 = dma.hbm_to_vmem [thread:$0]  (!%p10785_p6), %s11915_s8, 16, %s359_s1, [#allocation15]  }
  0xd4   : > { %s9212_s27 = sadd.s32 4294967294, %s10669_s12   ;;  %s10977_s19 = sadd.s32 1, %s10669_s12  }
  0xd5   : > { %s33_s22 = ssub.s32 %s10669_s12, %s10977_s19  ;;  %s36_s28 = sadd.s32 1, %s10665_s11 }
  0xd6   : > { %p34_p8 = scmp.eq.s32.totalorder %s33_s22, 0  ;;  %p43_p1 = scmp.ne.s32.totalorder %s10665_s11, %s10661_s10 }
  0xd7   : > { %p44_p3 = scmp.eq.s32.totalorder %s10669_s12, 0  ;;  %p49_p11 = scmp.ne.s32.totalorder %s10661_s10, %s10657_s30 }
  0xd8   : > { %s10988_s5 = scalar_select %p34_p8, %s10665_s11, %s36_s28  }
  0xd9   : > { %p10990_p12 = por %p44_p3, %p43_p1  ;;  %p11938_p13 = scmp.eq.s32.totalorder %s10769_s15, 0 }
  0xda   : > { %p241_p0 = scmp.eq.s32.totalorder %s10769_s15, 1  ;;  %p247_p2 = scmp.eq.s32.totalorder %s9212_s27, 1 }
  0xdb   : > { %p10996_p6 = por %p11938_p13, %p49_p11  ;;  %p10240_p5 = scmp.lt.s32.totalorder %s10669_s12, 2 }
  0xdc   : > { %s369_s23 = sand.u32 1, %s10665_s11   ;;  %p11003_p7 = por %p241_p0, %p43_p1 }
  0xdd   : > { %p11007_p9 = por %p247_p2, %p49_p11  ;;  %s9223_s13 = sshll.u32 %s369_s23, 4 }
  0xde   : > { %s11940_s26 = scalar_select %p11003_p7, 1, 0 }
  0xdf   : > { %s11941_s29 = scalar_select %p11007_p9, 1, 0 }
  0xe0   : > { %s9358_s14 = sshll.u32 %s10669_s12, 8  ;;  %s373_s24 = scalar_lea.vmem [#allocation2], %s9223_s13 }
  0xe1   : > { %s11015_s9 = scalar_lea.hbm %s11907_s0, %s9358_s14  ;;  %s380_s25 = sshll.u32 %s373_s24, 4  ;;  %s11017_s25 = int_to_ptr.vmem [resolvable:$true] %s380_s25 }
  0xe2   : > { %p11021_p4 = pnand %p10240_p5, %p10990_p12  ;;  %s11025_s22 = scalar_lea.sflag [#allocation3], %s369_s23 }
  0xe3   : > { %s10557_s28 = scalar_lea.hbm %s11015_s9, 256  ;;  %s10562_s3 = scalar_lea.hbm %s11907_s0, 512 }
  0xe4   : > { %p10558_p10 = scmp.ne.s32.totalorder %s11015_s9, %s10557_s28  ;;  %p10559_p8 = pneg %p11021_p4 }
  0xe5   : > { %p10563_p11 = scmp.lt.u32.totalorder %s11015_s9, %s11907_s0  ;;  %p10564_p12 = scmp.lt.u32.totalorder %s10562_s3, %s10557_s28 }
  0xe6   : > { %p10560_p1 = pnand %p10559_p8, %p10558_p10  ;;  %p10566_p0 = scmp.lt.u32.totalorder %s10557_s28, %s11015_s9 }
  0xe7   : > { %p10565_p13 = por %p10564_p12, %p10563_p11 }
  0xe8   : > { %p10561_p3 = pneg %p10560_p1 }
  0xe9   : > { %p10567_p2 = por %p10566_p0, %p10565_p13 }
  0xeb   : > { %p10568_p5 = pnand %p10567_p2, %p10561_p3 }
  0xed   : > { %10571 = shalt.err (!%p10568_p5)
}
  0xee   : > { %s10572_s23 = scalar_lea.vmem %s11017_s25, 256  ;;  %s10683_s24 = smov [#allocation2]  }
  0xef   : > { %p10573_p10 = scmp.ne.s32.totalorder %s11017_s25, %s10572_s23  ;;  %s10577_s13 = sshll.u32 %s10683_s24, 4  ;;  %s10578_s13 = int_to_ptr.vmem [resolvable:$false] %s10577_s13 }
  0xf0   : > { %s10579_s14 = scalar_lea.vmem %s10578_s13, 512  ;;  %p10580_p7 = scmp.lt.s32.totalorder %s11017_s25, %s10578_s13 }
  0xf1   : > { %p10575_p1 = pnand %p10573_p10, %p10559_p8  ;;  %p10581_p11 = scmp.lt.s32.totalorder %s10579_s14, %s10572_s23 }
  0xf3   : > { %p10576_p9 = pneg %p10575_p1  ;;  %p10582_p12 = por %p10581_p11, %p10580_p7 }
  0xf5   : > { %p10583_p13 = pnand %p10582_p12, %p10576_p9 }
  0xf7   : > { %10586 = shalt.err (!%p10583_p13)
}
  0xf8   : > { %10227 = dma.hbm_to_vmem [thread:$0]  (!%p11021_p4), %s11015_s9, 256, %s11017_s25, %s11025_s22, %s11936_s20, %s11936_s20, %s11935_s17  }
  0xf9   : > { %p11943_p8 = scmp.ne.s32.totalorder %s11929_s16, 0 }
  0xfa   : > { %s11059_s28 = sand.u32 (!%p11943_p8), 1, %s10661_s10  }
  0xfb   : > { %392 = sbr.rel (%p11943_p8) target bundleno = 4029 (0xfbd), region = 56  ;;  %s9227_s3 = sshll.u32 (!%p11943_p8), %s11059_s28, 4 }
  0xfc   : > { %s395_s21 = scalar_lea.sflag (!%p11943_p8), [#allocation3], %s11059_s28  ;;  %s11065_s27 = scalar_lea.vmem (!%p11943_p8), [#allocation2], %s9227_s3 }
 0x102   : > { %10632 = dma.done.wait (%p10996_p6), %s395_s21, 256  }
 0x103   : > { %10634 = vsyncadd (%p10996_p6), %s395_s21, 4294967040  ;;  %p11944_p7 = scmp.eq.s32.totalorder %s10769_s15, 0 }
 0x105   : > { %10636 = dma.done.wait (%p11944_p7), [#allocation6], 1056   ;;  %p11945_p9 = pmov %p11944_p7 }
 0x106   : > { %p11946_p4 = pmov %p11944_p7 }
 0x107   : > { %10638 = vsyncadd (%p11945_p9), [#allocation6], 4294966240 }
 0x108   : > { %10640 = dma.done.wait (%p11946_p4), [#allocation9], 1312   ;;  %p11947_p3 = pmov %p11946_p4 }
 0x10a   : > { %10642 = vsyncadd (%p11947_p3), [#allocation9], 4294965984  ;;  %p11948_p0 = pmov %p11947_p3 }
 0x10c   : > { %10644 = dma.done.wait (%p11948_p0), [#allocation12], 64   ;;  %p11949_p2 = pmov %p11948_p0 }
 0x10d   : > { %p11950_p6 = pmov %p11948_p0 }
 0x10e   : > { %10646 = vsyncadd (%p11949_p2), [#allocation12], 4294967232 }
 0x10f   : > { %10648 = dma.done.wait (%p11950_p6), [#allocation15], 528   ;;  %p11951_p5 = pmov %p11948_p0 }
 0x110   : > { %vm480_vm0 = vcmask 261120   ;;  %v476_v0 = vld [vmem:[#allocation5] sm:$0xff]  ;;  %v477_v1 = vld [vmem:[#allocation5 + $0x8] sm:$0xff]  ;;  %v478_v2 = vld [vmem:[#allocation5 + $0x10] sm:$0xff]  ;;  %s10684_s16 = smov 104   ;;  %s10685_s17 = smov 120   ;;  %v467_v58 = vlaneseq }
 0x111   : > { %10650 = vsyncadd (%p11951_p5), [#allocation15], 4294966768  ;;  %v10123_v3 = vpack.c.bf16 %v477_v1, %v476_v0  ;;  %v479_v4 = vld [vmem:[#allocation5 + $0x18] sm:$0xff]  ;;  %v474_v5 = vld [vmem:[%s11065_s27] sm:$0xff]  ;;  %s10686_s20 = smov 96   ;;  %s10687_s1 = smov 112  }
 0x112   : > { %v10127_v6 = vpack.c.bf16 %v479_v4, %v478_v2  ;;  %9592 = vmatprep.mubr.msk.f32.mxu0 %vm480_vm0, %v474_v5  ;;  %v475_v7 = vld [vmem:[%s11065_s27 + $0x8] sm:$0xff]  ;;  %s10688_s9 = smov 80   ;;  %s10689_s25 = smov 88   ;;  %v10690_v60 = vmov 0.0   ;;  %v11113_v62 = vshrl.u32 %v467_v58, 7  ;;  %vm10691_vm3 = vmmov 0  }
 0x113   : > { %10124 = vmatprep.subr.bf16.mxu0 %v10123_v3  ;;  %9595 = vmatprep.subr.mxu1 %v10690_v60  ;;  %v11119_v63 = vand.u32 127, %v467_v58  ;;  %s10692_s22 = smov 72   ;;  %v10693_v2 = vmov 1983009808   ;;  %vm930_vm5 = vcmask 64512   ;;  %s10695_s18 = smov 8  }
 0x114   : > { %10126 = vmatpush3.bf16.msra.mxu0 %v10123_v3  ;;  %9597 = vmatprep.mubr.msk.f32.mxu1 %vm10691_vm3, %v10690_v60  ;;  %v661_v3 = vunpack.c.l.s4 %v10693_v2  ;;  %vm4547_vm6 = vcmask 1041409   ;;  %vm4549_vm7 = vcmask 1042434   ;;  %vm4551_vm8 = vcmask 1043459   ;;  %s464_s23 = scalar_lea.vmem [#allocation17], %s9227_s3  ;;  %s9359_s13 = sshll.u32 %s10769_s15, 8 }
 0x115   : > { %10128 = vmatprep.subr.bf16.mxu0 %v10127_v6  ;;  %v11127_v0 = vsub.s32 %v11119_v63, %v11113_v62  ;;  %vm471_vm4 = vcmp.eq.s32.totalorder %v11113_v62, %v11119_v63  ;;  %vm4553_vm9 = vcmask 1044484   ;;  %vm4555_vm10 = vcmask 1045509   ;;  %s9063_s24 = sshll.u32 %s464_s23, 4  ;;  %s9050_s3 = scalar_lea.sflag [#allocation4], %s11059_s28  ;;  %s11857_s24 = int_to_ptr.vmem [resolvable:$true] %s9063_s24 }
 0x116   : > { %v662_v5 = vunpack.c.0.s8 %v661_v3  ;;  %v11178_v58 = vsel %vm471_vm4, 1.0, %v10690_v60  ;;  %vm4557_vm11 = vcmask 1046534   ;;  %vm4559_vm12 = vcmask 1047559   ;;  %p11953_p1 = scmp.ne.s32.totalorder %s11940_s26, 0  ;;  %s10696_s15 = smov [#allocation17]  }
 0x117   : > { %vm4590_vm13 = vcmask 326656  }
 0x118   : > { %10130 = vmatpush3.bf16.msra.mxu0 %v10127_v6 }
 0x119   : > { %9610 = vmatprep.subr.mxu0 %v10690_v60 }
 0x11b   : > { %9593 = vmatmul.mubr.msk.f32.vlgmr.msra.gmra.mrb[0].mxu0 %vm480_vm0, %v475_v7 }
 0x11c   : > { %9612 = vmatprep.mubr.msk.f32.mxu0 %vm10691_vm3, %v10690_v60 }
 0x1ee   : > { %v11091_v8 = vpop.f32.mrb[0].mxu0 }
 0x1ef   : > { %v565_v9 = vmul.f32 0.70710677, %v11091_v8  ;;  %v553_v10 = vpop.f32.mrb[1].mxu0  ;;  %v563_v59 = vmul.f32 0.5, %v11091_v8  ;;  %v10694_v8 = vmov 1934713408  }
 0x1f0   : > { %v564_v11 = vmul.f32 0.70710677, %v553_v10  ;;  %v562_v52 = vmul.f32 0.5, %v553_v10 }
 0x1f1   : > { %v567_v12 = vand.u32 2147483647, %v565_v9  ;;  %vm605_vm2 = vcmp.ge.f32.partialorder %v565_v9, 0.0  ;;  %v725_v9 = vunpack.c.l.s4 %v10694_v8 }
 0x1f2   : > { %v566_v13 = vand.u32 2147483647, %v564_v11  ;;  %vm604_vm1 = vcmp.ge.f32.partialorder %v564_v11, 0.0  ;;  %v11143_v11 = vsub.s32 %v662_v5, %v11113_v62 }
 0x1f3   : > { %v569_v14 = vmul.f32 0.3275911, %v567_v12  ;;  %v593_v19 = vsub.f32 0.0, %v567_v12 }
 0x1f4   : > { %v568_v15 = vmul.f32 0.3275911, %v566_v13  ;;  %v592_v18 = vsub.f32 0.0, %v566_v13 }
 0x1f5   : > { %v571_v16 = vadd.f32 1.0, %v569_v14  ;;  %v595_v26 = vmul.f32 %v593_v19, %v567_v12 }
 0x1f6   : > { %v570_v17 = vadd.f32 1.0, %v568_v15  ;;  %v594_v23 = vmul.f32 %v592_v18, %v566_v13  ;;  %v726_v15 = vunpack.c.0.s8 %v725_v9 }
 0x1f7   : > { %10307 = vrcp.f32 %v571_v16  ;;  %v598_v32 = vmul.f32 1.442695, %v595_v26 }
 0x1f8   : > { %10309 = vrcp.f32 %v570_v17  ;;  %v596_v29 = vmul.f32 1.442695, %v594_v23  ;;  %v11151_v26 = vsub.s32 %v726_v15, %v11113_v62 }
 0x1fa   : > { %10311 = vpow2.f32 %v596_v29 }
 0x1fb   : > { %10313 = vpow2.f32 %v598_v32 }
 0x201   : > { %v10308_v20 = vpop.eup %10307 }
 0x202   : > { %v10310_v21 = vpop.eup %10309  ;;  %v575_v22 = vmul.f32 1.0614054, %v10308_v20 }
 0x203   : > { %v574_v24 = vmul.f32 1.0614054, %v10310_v21 }
 0x204   : > { %v577_v25 = vadd.f32 -1.4531521, %v575_v22  ;;  %v10312_v44 = vpop.eup %10311 }
 0x205   : > { %v576_v27 = vadd.f32 -1.4531521, %v574_v24  ;;  %v10314_v46 = vpop.eup %10313 }
 0x206   : > { %v579_v28 = vmul.f32 %v10308_v20, %v577_v25 }
 0x207   : > { %v578_v30 = vmul.f32 %v10310_v21, %v576_v27 }
 0x208   : > { %v581_v31 = vadd.f32 1.4214138, %v579_v28 }
 0x209   : > { %v580_v33 = vadd.f32 1.4214138, %v578_v30 }
 0x20a   : > { %v583_v34 = vmul.f32 %v10308_v20, %v581_v31 }
 0x20b   : > { %v582_v35 = vmul.f32 %v10310_v21, %v580_v33 }
 0x20c   : > { %v585_v36 = vadd.f32 -0.28449672, %v583_v34 }
 0x20d   : > { %v584_v37 = vadd.f32 -0.28449672, %v582_v35 }
 0x20e   : > { %v587_v38 = vmul.f32 %v10308_v20, %v585_v36 }
 0x20f   : > { %v586_v39 = vmul.f32 %v10310_v21, %v584_v37 }
 0x210   : > { %v589_v40 = vadd.f32 0.2548296, %v587_v38 }
 0x211   : > { %v588_v41 = vadd.f32 0.2548296, %v586_v39 }
 0x212   : > { %v591_v42 = vmul.f32 %v10308_v20, %v589_v40 }
 0x213   : > { %v590_v43 = vmul.f32 %v10310_v21, %v588_v41 }
 0x214   : > { %v601_v47 = vmul.f32 %v10314_v46, %v591_v42 }
 0x215   : > { %v600_v45 = vmul.f32 %v10312_v44, %v590_v43 }
 0x216   : > { %v603_v50 = vsub.f32 1.0, %v601_v47 }
 0x217   : > { %v602_v48 = vsub.f32 1.0, %v600_v45 }
 0x218   : > { %v607_v55 = vsub.f32 0.0, %v603_v50 }
 0x219   : > { %v606_v49 = vsub.f32 0.0, %v602_v48 }
 0x21a   : > { %v609_v56 = vsel %vm605_vm2, %v603_v50, %v607_v55 }
 0x21b   : > { %v608_v51 = vsel %vm604_vm1, %v602_v48, %v606_v49  ;;  %v611_v57 = vadd.f32 1.0, %v609_v56  ;;  %vm9046_vm1 = vcmask 130048  }
 0x21c   : > { %v610_v53 = vadd.f32 1.0, %v608_v51 }
 0x21d   : > { %v11111_v61 = vmul.f32 %v611_v57, %v563_v59 }
 0x21e   : > { %v11094_v54 = vmul.f32 %v610_v53, %v562_v52 }
 0x220   : > { %628 = vrot.lane.b32.xlu1 %v11094_v54, %s10684_s16  ;;  %616 = vrot.lane.b32.xlu0 %v11094_v54, %s10685_s17 }
 0x224   : > { %634 = vrot.lane.b32.xlu1 %v11094_v54, %s10686_s20  ;;  %622 = vrot.lane.b32.xlu0 %v11094_v54, %s10687_s1 }
 0x228   : > { %646 = vrot.lane.b32.xlu1 %v11094_v54, %s10688_s9  ;;  %640 = vrot.lane.b32.xlu0 %v11094_v54, %s10689_s25 }
 0x22c   : > { %618 = vrot.lane.b32.xlu1 %v11111_v61, %s10685_s17  ;;  %652 = vrot.lane.b32.xlu0 %v11094_v54, %s10692_s22 }
 0x230   : > { %630 = vrot.lane.b32.xlu1 %v11111_v61, %s10684_s16  ;;  %624 = vrot.lane.b32.xlu0 %v11111_v61, %s10687_s1 }
 0x234   : > { %642 = vrot.lane.b32.xlu1 %v11111_v61, %s10689_s25  ;;  %636 = vrot.lane.b32.xlu0 %v11111_v61, %s10686_s20 }
 0x238   : > { %654 = vrot.lane.b32.xlu1 %v11111_v61, %s10692_s22  ;;  %648 = vrot.lane.b32.xlu0 %v11111_v61, %s10688_s9 }
 0x292   : > { %v629_v1 = vpop.permute.xlu1 %628  ;;  %v617_v4 = vpop.permute.xlu0 %616 }
 0x293   : > { %v674_v12 = vcombine.low %v617_v4, %v629_v1  ;;  %v675_v20 = vcombine.high %v617_v4, %v629_v1 }
 0x295   : > { %v682_v21 = vrot.slane %v674_v12, %v11143_v11  ;;  %v689_v33 = vrot.slane %v675_v20, %v11143_v11 }
 0x296   : > { %v635_v6 = vpop.permute.xlu1 %634  ;;  %v623_v7 = vpop.permute.xlu0 %622 }
 0x297   : > { %v658_v10 = vcombine.low %v11094_v54, %v623_v7  ;;  %v659_v16 = vcombine.high %v11094_v54, %v623_v7 }
 0x299   : > { %v666_v17 = vrot.slane %v658_v10, %v11143_v11  ;;  %v673_v27 = vrot.slane %v659_v16, %v11143_v11 }
 0x29a   : > { %v647_v13 = vpop.permute.xlu1 %646  ;;  %v641_v14 = vpop.permute.xlu0 %640 }
 0x29b   : > { %v690_v18 = vcombine.low %v635_v6, %v647_v13  ;;  %v691_v19 = vcombine.high %v635_v6, %v647_v13  ;;  %v723_v28 = vcombine.high %v666_v17, %v682_v21  ;;  %v722_v38 = vcombine.low %v666_v17, %v682_v21 }
 0x29c   : > { %v738_v39 = vcombine.low %v673_v27, %v689_v33  ;;  %v739_v45 = vcombine.high %v673_v27, %v689_v33 }
 0x29d   : > { %v698_v29 = vrot.slane %v690_v18, %v11143_v11  ;;  %v705_v30 = vrot.slane %v691_v19, %v11143_v11  ;;  %v737_v41 = vrot.slane %v723_v28, %v11151_v26  ;;  %v730_v52 = vrot.slane %v722_v38, %v11151_v26 }
 0x29e   : > { %v11148_v22 = vpop.permute.xlu1 %618  ;;  %v653_v23 = vpop.permute.xlu0 %652  ;;  %v746_v54 = vrot.slane %v738_v39, %v11151_v26  ;;  %v753_v59 = vrot.slane %v739_v45, %v11151_v26 }
 0x29f   : > { %v706_v24 = vcombine.low %v641_v14, %v653_v23  ;;  %v707_v25 = vcombine.high %v641_v14, %v653_v23 }
 0x2a1   : > { %v714_v31 = vrot.slane %v706_v24, %v11143_v11  ;;  %v721_v32 = vrot.slane %v707_v25, %v11143_v11 }
 0x2a2   : > { %v631_v34 = vpop.permute.xlu1 %630  ;;  %v625_v35 = vpop.permute.xlu0 %624 }
 0x2a3   : > { %v755_v36 = vcombine.high %v698_v29, %v714_v31  ;;  %v770_v37 = vcombine.low %v705_v30, %v721_v32  ;;  %v754_v40 = vcombine.low %v698_v29, %v714_v31  ;;  %v810_v43 = vcombine.low %v11148_v22, %v631_v34 }
 0x2a4   : > { %v794_v44 = vcombine.low %v11111_v61, %v625_v35  ;;  %v771_v46 = vcombine.high %v705_v30, %v721_v32  ;;  %v811_v62 = vcombine.high %v11148_v22, %v631_v34  ;;  %v795_v63 = vcombine.high %v11111_v61, %v625_v35 }
 0x2a5   : > { %v769_v42 = vrot.slane %v755_v36, %v11151_v26  ;;  %v778_v47 = vrot.slane %v770_v37, %v11151_v26  ;;  %v762_v50 = vrot.slane %v754_v40, %v11151_v26  ;;  %v818_v55 = vrot.slane %v810_v43, %v11143_v11 }
 0x2a6   : > { %v643_v48 = vpop.permute.xlu1 %642  ;;  %v637_v49 = vpop.permute.xlu0 %636  ;;  %v802_v56 = vrot.slane %v794_v44, %v11143_v11  ;;  %v785_v1 = vrot.slane %v771_v46, %v11151_v26  ;;  %v825_v19 = vrot.slane %v811_v62, %v11143_v11  ;;  %v809_v20 = vrot.slane %v795_v63, %v11143_v11 }
 0x2a7   : > { %v788_v51 = vcombine.low %v737_v41, %v769_v42  ;;  %v11168_v53 = vcombine.high %v737_v41, %v769_v42  ;;  %v786_v57 = vcombine.low %v730_v52, %v762_v50  ;;  %v787_v2 = vcombine.high %v730_v52, %v762_v50 }
 0x2a8   : > { %v11183_v5 = vcombine.high %v746_v54, %v778_v47  ;;  %v858_v10 = vcombine.low %v802_v56, %v818_v55  ;;  %v790_v14 = vcombine.low %v746_v54, %v778_v47  ;;  %v793_v61 = vcombine.high %v753_v59, %v785_v1 }
 0x2a9   : > { %9611 = vmatpush3.msra.mxu0 %v11168_v53  ;;  %9596 = vmatpush3.msra.mxu1 %v786_v57  ;;  %v859_v21 = vcombine.high %v802_v56, %v818_v55  ;;  %v792_v24 = vcombine.low %v753_v59, %v785_v1  ;;  %v874_v31 = vcombine.low %v809_v20, %v825_v19 }
 0x2aa   : > { %v655_v3 = vpop.permute.xlu1 %654  ;;  %9613 = vmatmul.mubr.msk.f32.vlgmr.msra.gmra.mrb[2].mxu0 %vm930_vm5, %v788_v51  ;;  %v649_v4 = vpop.permute.xlu0 %648  ;;  %9620 = vmatprep.subr.mxu0 %v10690_v60  ;;  %v866_v22 = vrot.slane %v858_v10, %v11151_v26  ;;  %v875_v35 = vcombine.high %v809_v20, %v825_v19 }
 0x2ab   : > { %v842_v6 = vcombine.low %v643_v48, %v655_v3  ;;  %v843_v7 = vcombine.high %v643_v48, %v655_v3  ;;  %v826_v8 = vcombine.low %v637_v49, %v649_v4  ;;  %9598 = vmatmul.mubr.msk.f32.vlgmr.msra.gmra.mrb[0].mxu1 %vm930_vm5, %v11178_v58  ;;  %9600 = vmatprep.subr.mxu1 %v10690_v60 }
 0x2ac   : > { %v827_v9 = vcombine.high %v637_v49, %v649_v4  ;;  %9601 = vmatpush3.msra.mxu1 %v787_v2  ;;  %9621 = vmatpush3.msra.mxu0 %v11183_v5  ;;  %v873_v30 = vrot.slane %v859_v21, %v11151_v26  ;;  %v882_v36 = vrot.slane %v874_v31, %v11151_v26 }
 0x2ad   : > { %v850_v12 = vrot.slane %v842_v6, %v11143_v11  ;;  %v834_v13 = vrot.slane %v826_v8, %v11143_v11  ;;  %v857_v15 = vrot.slane %v843_v7, %v11143_v11  ;;  %9602 = vmatprep.mubr.msk.f32.mxu1 %vm10691_vm3, %v10690_v60  ;;  %9605 = vmatprep.subr.mxu1 %v10690_v60 }
 0x2ae   : > { %v841_v16 = vrot.slane %v827_v9, %v11143_v11  ;;  %9622 = vmatprep.mubr.msk.f32.mxu0 %vm10691_vm3, %v10690_v60  ;;  %9630 = vmatprep.subr.mxu0 %v10690_v60  ;;  %v889_v40 = vrot.slane %v875_v35, %v11151_v26 }
 0x2af   : > { %v890_v17 = vcombine.low %v834_v13, %v850_v12  ;;  %v891_v18 = vcombine.high %v834_v13, %v850_v12  ;;  %9603 = vmatmul.mubr.msk.f32.vlgmr.msra.gmra.mrb[2].mxu1 %vm930_vm5, %v786_v57  ;;  %9623 = vmatmul.mubr.msk.f32.vlgmr.msra.gmra.mrb[4].mxu0 %vm930_vm5, %v790_v14 }
 0x2b0   : > { %9606 = vmatpush3.msra.mxu1 %v788_v51  ;;  %9631 = vmatpush3.msra.mxu0 %v793_v61  ;;  %v906_v27 = vcombine.low %v841_v16, %v857_v15  ;;  %v907_v32 = vcombine.high %v841_v16, %v857_v15 }
 0x2b1   : > { %v898_v23 = vrot.slane %v890_v17, %v11151_v26  ;;  %9607 = vmatprep.mubr.msk.f32.mxu1 %vm10691_vm3, %v10690_v60  ;;  %9615 = vmatprep.subr.mxu1 %v10690_v60  ;;  %v905_v25 = vrot.slane %v891_v18, %v11151_v26 }
 0x2b2   : > { %9632 = vmatprep.mubr.msk.f32.mxu0 %vm10691_vm3, %v10690_v60  ;;  %9640 = vmatprep.subr.mxu0 %v10690_v60  ;;  %v914_v33 = vrot.slane %v906_v27, %v11151_v26  ;;  %v921_v38 = vrot.slane %v907_v32, %v11151_v26 }
 0x2b3   : > { %v923_v28 = vcombine.high %v866_v22, %v898_v23  ;;  %v922_v29 = vcombine.low %v866_v22, %v898_v23  ;;  %9608 = vmatmul.mubr.msk.f32.vlgmr.msra.gmra.mrb[4].mxu1 %vm930_vm5, %v787_v2  ;;  %9633 = vmatmul.mubr.msk.f32.vlgmr.msra.gmra.mrb[6].mxu0 %vm930_vm5, %v792_v24  ;;  %v925_v34 = vcombine.high %v873_v30, %v905_v25 }
 0x2b4   : > { %9616 = vmatpush3.msra.mxu1 %v790_v14  ;;  %9617 = vmatprep.mubr.msk.f32.mxu1 %vm10691_vm3, %v10690_v60  ;;  %v924_v37 = vcombine.low %v873_v30, %v905_v25  ;;  %v927_v39 = vcombine.high %v882_v36, %v914_v33  ;;  %v926_v41 = vcombine.low %v882_v36, %v914_v33 }
 0x2b5   : > { %9625 = vmatprep.subr.mxu1 %v10690_v60  ;;  %9641 = vmatpush3.msra.mxu0 %v923_v28  ;;  %v929_v42 = vcombine.high %v889_v40, %v921_v38  ;;  %v928_v43 = vcombine.low %v889_v40, %v921_v38 }
 0x2b6   : > { %9642 = vmatprep.mubr.msk.f32.mxu0 %vm10691_vm3, %v10690_v60  ;;  %9650 = vmatprep.subr.mxu0 %v10690_v60 }
 0x2b7   : > { %9618 = vmatmul.mubr.msk.f32.vlgmr.msra.gmra.mrb[6].mxu1 %vm930_vm5, %v11168_v53  ;;  %9643 = vmatmul.mubr.msk.f32.vlgmr.msra.gmra.mrb[8].mxu0 %vm930_vm5, %v922_v29 }
 0x2b8   : > { %9626 = vmatpush3.msra.mxu1 %v792_v24  ;;  %9651 = vmatpush3.msra.mxu0 %v925_v34 }
 0x2b9   : > { %9627 = vmatprep.mubr.msk.f32.mxu1 %vm10691_vm3, %v10690_v60  ;;  %9635 = vmatprep.subr.mxu1 %v10690_v60 }
 0x2ba   : > { %9652 = vmatprep.mubr.msk.f32.mxu0 %vm10691_vm3, %v10690_v60  ;;  %9660 = vmatprep.subr.mxu0 %v10690_v60 }
 0x2bb   : > { %9628 = vmatmul.mubr.msk.f32.vlgmr.msra.gmra.mrb[8].mxu1 %vm930_vm5, %v11183_v5  ;;  %9653 = vmatmul.mubr.msk.f32.vlgmr.msra.gmra.mrb[10].mxu0 %vm930_vm5, %v924_v37 }
 0x2bc   : > { %9636 = vmatpush3.msra.mxu1 %v922_v29  ;;  %9661 = vmatpush3.msra.mxu0 %v927_v39 }
 0x2bd   : > { %9637 = vmatprep.mubr.msk.f32.mxu1 %vm10691_vm3, %v10690_v60  ;;  %9645 = vmatprep.subr.mxu1 %v10690_v60 }
 0x2be   : > { %9662 = vmatprep.mubr.msk.f32.mxu0 %vm10691_vm3, %v10690_v60  ;;  %9670 = vmatprep.subr.mxu0 %v10690_v60 }
 0x2bf   : > { %9638 = vmatmul.mubr.msk.f32.vlgmr.msra.gmra.mrb[10].mxu1 %vm930_vm5, %v11178_v58  ;;  %9663 = vmatmul.mubr.msk.f32.vlgmr.msra.gmra.mrb[12].mxu0 %vm930_vm5, %v926_v41 }
 0x2c0   : > { %9646 = vmatpush3.msra.mxu1 %v924_v37  ;;  %9671 = vmatpush3.msra.mxu0 %v929_v42 }
 0x2c1   : > { %9647 = vmatprep.mubr.msk.f32.mxu1 %vm10691_vm3, %v10690_v60  ;;  %9655 = vmatprep.subr.mxu1 %v10690_v60 }
 0x2c2   : > { %9672 = vmatprep.mubr.msk.f32.mxu0 %vm10691_vm3, %v10690_v60  ;;  %9680 = vmatprep.subr.mxu0 %v10690_v60 }
 0x2c3   : > { %9648 = vmatmul.mubr.msk.f32.vlgmr.msra.gmra.mrb[12].mxu1 %vm930_vm5, %v923_v28  ;;  %9673 = vmatmul.mubr.msk.f32.vlgmr.msra.gmra.mrb[14].mxu0 %vm930_vm5, %v928_v43 }
 0x2c4   : > { %9656 = vmatpush3.msra.mxu1 %v926_v41  ;;  %9657 = vmatprep.mubr.msk.f32.mxu1 %vm10691_vm3, %v10690_v60 }
 0x2c5   : > { %9665 = vmatprep.subr.mxu1 %v10690_v60  ;;  %9682 = vmatprep.mubr.msk.f32.mxu0 %vm10691_vm3, %v10690_v60 }
 0x2c7   : > { %9658 = vmatmul.mubr.msk.f32.vlgmr.msra.gmra.mrb[14].mxu1 %vm930_vm5, %v925_v34 }
 0x2c8   : > { %9666 = vmatpush3.msra.mxu1 %v928_v43  ;;  %9667 = vmatprep.mubr.msk.f32.mxu1 %vm10691_vm3, %v10690_v60 }
 0x2c9   : > { %9675 = vmatprep.subr.mxu1 %v10690_v60 }
 0x2cb   : > { %9668 = vmatmul.mubr.msk.f32.vlgmr.msra.gmra.mrb[16].mxu1 %vm930_vm5, %v927_v39 }
 0x2cc   : > { %9677 = vmatprep.mubr.msk.f32.mxu1 %vm10691_vm3, %v10690_v60 }
 0x37d   : > { %v1219_v44 = vpop.f32.mrb[2].mxu0 }
 0x37e   : > { %v9614_v45 = vpop.f32.mrb[3].mxu0  ;;  %v1000_v46 = vpop.f32.mrb[0].mxu1 }
 0x37f   : > { %v9599_v47 = vpop.f32.mrb[1].mxu1  ;;  %9676 = vmatpush3.msra.mxu1 %v1000_v46 }
 0x380   : > { %9678 = vmatmul.mubr.msk.f32.vlgmr.msra.gmra.mrb[18].mxu1 %vm930_vm5, %v11178_v58  ;;  %9685 = vmatprep.subr.mxu1 %v10690_v60 }
 0x381   : > { %9687 = vmatprep.mubr.msk.f32.mxu1 %vm10691_vm3, %v10690_v60 }
 0x382   : > { %v1073_v48 = vpop.f32.mrb[2].mxu1  ;;  %v1365_v49 = vpop.f32.mrb[4].mxu0 }
 0x383   : > { %v9604_v50 = vpop.f32.mrb[3].mxu1  ;;  %v9624_v51 = vpop.f32.mrb[5].mxu0  ;;  %9681 = vmatpush3.msra.mxu0 %v1073_v48 }
 0x384   : > { %9683 = vmatmul.mubr.msk.f32.vlgmr.msra.gmra.mrb[16].mxu0 %vm930_vm5, %v11178_v58  ;;  %9690 = vmatprep.subr.mxu0 %v10690_v60 }
 0x385   : > { %9691 = vmatpush3.msra.mxu0 %v1219_v44  ;;  %9692 = vmatprep.mubr.msk.f32.mxu0 %vm10691_vm3, %v10690_v60 }
 0x386   : > { %v1146_v52 = vpop.f32.mrb[4].mxu1  ;;  %v1511_v53 = vpop.f32.mrb[6].mxu0  ;;  %9700 = vmatprep.subr.mxu0 %v10690_v60 }
 0x387   : > { %v9609_v54 = vpop.f32.mrb[5].mxu1  ;;  %v9634_v55 = vpop.f32.mrb[7].mxu0  ;;  %9686 = vmatpush3.msra.mxu1 %v1146_v52 }
 0x388   : > { %9688 = vmatmul.mubr.msk.f32.vlgmr.msra.gmra.mrb[20].mxu1 %vm930_vm5, %v1000_v46  ;;  %9693 = vmatmul.mubr.msk.f32.vlgmr.msra.gmra.mrb[18].mxu0 %vm930_vm5, %v1073_v48 }
 0x389   : > { %9701 = vmatpush3.msra.mxu0 %v1365_v49  ;;  %9695 = vmatprep.subr.mxu1 %v10690_v60 }
 0x38a   : > { %v1292_v56 = vpop.f32.mrb[6].mxu1  ;;  %v1654_v57 = vpop.f32.mrb[8].mxu0  ;;  %9697 = vmatprep.mubr.msk.f32.mxu1 %vm10691_vm3, %v10690_v60  ;;  %9702 = vmatprep.mubr.msk.f32.mxu0 %vm10691_vm3, %v10690_v60 }
 0x38b   : > { %v9619_v59 = vpop.f32.mrb[7].mxu1  ;;  %v9644_v1 = vpop.f32.mrb[9].mxu0  ;;  %9696 = vmatpush3.msra.mxu1 %v1292_v56  ;;  %9710 = vmatprep.subr.mxu0 %v10690_v60 }
 0x38c   : > { %9698 = vmatmul.mubr.msk.f32.vlgmr.msra.gmra.mrb[22].mxu1 %vm930_vm5, %v1146_v52  ;;  %9703 = vmatmul.mubr.msk.f32.vlgmr.msra.gmra.mrb[20].mxu0 %vm930_vm5, %v1219_v44 }
 0x38d   : > { %9711 = vmatpush3.msra.mxu0 %v1511_v53  ;;  %9705 = vmatprep.subr.mxu1 %v10690_v60 }
 0x38e   : > { %v1438_v2 = vpop.f32.mrb[8].mxu1  ;;  %v1800_v3 = vpop.f32.mrb[10].mxu0  ;;  %9707 = vmatprep.mubr.msk.f32.mxu1 %vm10691_vm3, %v10690_v60  ;;  %9712 = vmatprep.mubr.msk.f32.mxu0 %vm10691_vm3, %v10690_v60 }
 0x38f   : > { %v9629_v4 = vpop.f32.mrb[9].mxu1  ;;  %v9654_v5 = vpop.f32.mrb[11].mxu0  ;;  %9706 = vmatpush3.msra.mxu1 %v1438_v2  ;;  %9720 = vmatprep.subr.mxu0 %v10690_v60 }
 0x390   : > { %9708 = vmatmul.mubr.msk.f32.vlgmr.msra.gmra.mrb[24].mxu1 %vm930_vm5, %v1292_v56  ;;  %9713 = vmatmul.mubr.msk.f32.vlgmr.msra.gmra.mrb[22].mxu0 %vm930_vm5, %v1365_v49  ;;  %v11403_v49 = vld [vmem:[#allocation7] ss:$0 sm:$0xff] }
 0x391   : > { %9721 = vmatpush3.msra.mxu0 %v1654_v57  ;;  %9715 = vmatprep.subr.mxu1 %v10690_v60 }
 0x392   : > { %v1581_v6 = vpop.f32.mrb[10].mxu1  ;;  %v1946_v7 = vpop.f32.mrb[12].mxu0  ;;  %9717 = vmatprep.mubr.msk.f32.mxu1 %vm10691_vm3, %v10690_v60  ;;  %9722 = vmatprep.mubr.msk.f32.mxu0 %vm10691_vm3, %v10690_v60 }
 0x393   : > { %v9639_v8 = vpop.f32.mrb[11].mxu1  ;;  %v9664_v62 = vpop.f32.mrb[13].mxu0  ;;  %9716 = vmatpush3.msra.mxu1 %v1581_v6  ;;  %9730 = vmatprep.subr.mxu0 %v10690_v60 }
 0x394   : > { %9718 = vmatmul.mubr.msk.f32.vlgmr.msra.gmra.mrb[26].mxu1 %vm930_vm5, %v11178_v58  ;;  %9723 = vmatmul.mubr.msk.f32.vlgmr.msra.gmra.mrb[24].mxu0 %vm930_vm5, %v11178_v58 }
 0x395   : > { %9731 = vmatpush3.msra.mxu0 %v1800_v3  ;;  %9725 = vmatprep.subr.mxu1 %v10690_v60 }
 0x396   : > { %v1727_v63 = vpop.f32.mrb[12].mxu1  ;;  %v2092_v9 = vpop.f32.mrb[14].mxu0  ;;  %9727 = vmatprep.mubr.msk.f32.mxu1 %vm10691_vm3, %v10690_v60  ;;  %9732 = vmatprep.mubr.msk.f32.mxu0 %vm10691_vm3, %v10690_v60 }
 0x397   : > { %v9649_v10 = vpop.f32.mrb[13].mxu1  ;;  %v9674_v12 = vpop.f32.mrb[15].mxu0  ;;  %9726 = vmatpush3.msra.mxu1 %v1727_v63  ;;  %9740 = vmatprep.subr.mxu0 %v10690_v60 }
 0x398   : > { %9728 = vmatmul.mubr.msk.f32.vlgmr.msra.gmra.mrb[28].mxu1 %vm930_vm5, %v1581_v6  ;;  %9733 = vmatmul.mubr.msk.f32.vlgmr.msra.gmra.mrb[26].mxu0 %vm930_vm5, %v1654_v57 }
 0x399   : > { %9741 = vmatpush3.msra.mxu0 %v1946_v7  ;;  %9735 = vmatprep.subr.mxu1 %v10690_v60 }
 0x39a   : > { %v1873_v13 = vpop.f32.mrb[14].mxu1  ;;  %9737 = vmatprep.mubr.msk.f32.mxu1 %vm10691_vm3, %v10690_v60  ;;  %9742 = vmatprep.mubr.msk.f32.mxu0 %vm10691_vm3, %v10690_v60 }
 0x39b   : > { %v9659_v14 = vpop.f32.mrb[15].mxu1  ;;  %9736 = vmatpush3.msra.mxu1 %v1873_v13  ;;  %9750 = vmatprep.subr.mxu0 %v10690_v60 }
 0x39c   : > { %9738 = vmatmul.mubr.msk.f32.vlgmr.msra.gmra.mrb[30].mxu1 %vm930_vm5, %v1727_v63  ;;  %9743 = vmatmul.mubr.msk.f32.vlgmr.msra.gmra.mrb[28].mxu0 %vm930_vm5, %v1800_v3 }
 0x39d   : > { %9751 = vmatpush3.msra.mxu0 %v2092_v9  ;;  %9745 = vmatprep.subr.mxu1 %v10690_v60 }
 0x39e   : > { %v2019_v15 = vpop.f32.mrb[16].mxu1  ;;  %9747 = vmatprep.mubr.msk.f32.mxu1 %vm10691_vm3, %v10690_v60  ;;  %9752 = vmatprep.mubr.msk.f32.mxu0 %vm10691_vm3, %v10690_v60 }
 0x39f   : > { %v9669_v61 = vpop.f32.mrb[17].mxu1  ;;  %9746 = vmatpush3.msra.mxu1 %v2019_v15  ;;  %9760 = vmatprep.subr.mxu0 %v10690_v60 }
 0x3a0   : > { %9748 = vmatmul.mubr.msk.f32.vlgmr.msra.gmra.mrb[32].mxu1 %vm930_vm5, %v1873_v13  ;;  %9753 = vmatmul.mubr.msk.f32.vlgmr.msra.gmra.mrb[30].mxu0 %vm930_vm5, %v1946_v7 }
 0x3a1   : > { %9755 = vmatprep.subr.mxu1 %v10690_v60  ;;  %9757 = vmatprep.mubr.msk.f32.mxu1 %vm10691_vm3, %v10690_v60 }
 0x3a2   : > { %9762 = vmatprep.mubr.msk.f32.mxu0 %vm10691_vm3, %v10690_v60 }
 0x453   : > { %v2162_v16 = vpop.f32.mrb[18].mxu1 }
 0x454   : > { %v9679_v17 = vpop.f32.mrb[19].mxu1  ;;  %9756 = vmatpush3.msra.mxu1 %v2162_v16 }
 0x455   : > { %9758 = vmatmul.mubr.msk.f32.vlgmr.msra.gmra.mrb[34].mxu1 %vm930_vm5, %v11178_v58  ;;  %9765 = vmatprep.subr.mxu1 %v10690_v60 }
 0x456   : > { %9767 = vmatprep.mubr.msk.f32.mxu1 %vm10691_vm3, %v10690_v60 }
 0x457   : > { %v2232_v18 = vpop.f32.mrb[16].mxu0 }
 0x458   : > { %v9684_v19 = vpop.f32.mrb[17].mxu0  ;;  %9761 = vmatpush3.msra.mxu0 %v2232_v18 }
 0x459   : > { %9763 = vmatmul.mubr.msk.f32.vlgmr.msra.gmra.mrb[32].mxu0 %vm930_vm5, %v11178_v58  ;;  %9770 = vmatprep.subr.mxu0 %v10690_v60 }
 0x45a   : > { %9772 = vmatprep.mubr.msk.f32.mxu0 %vm10691_vm3, %v10690_v60 }
 0x45b   : > { %v2305_v20 = vpop.f32.mrb[20].mxu1  ;;  %v2378_v21 = vpop.f32.mrb[18].mxu0 }
 0x45c   : > { %v9689_v22 = vpop.f32.mrb[21].mxu1  ;;  %v9694_v23 = vpop.f32.mrb[19].mxu0  ;;  %9766 = vmatpush3.msra.mxu1 %v2305_v20  ;;  %9771 = vmatpush3.msra.mxu0 %v2378_v21 }
 0x45d   : > { %9768 = vmatmul.mubr.msk.f32.vlgmr.msra.gmra.mrb[36].mxu1 %vm930_vm5, %v11178_v58  ;;  %9773 = vmatmul.mubr.msk.f32.vlgmr.msra.gmra.mrb[34].mxu0 %vm930_vm5, %v11178_v58 }
 0x45e   : > { %9775 = vmatprep.subr.mxu1 %v10690_v60  ;;  %9780 = vmatprep.subr.mxu0 %v10690_v60 }
 0x45f   : > { %v2451_v24 = vpop.f32.mrb[22].mxu1  ;;  %v2524_v25 = vpop.f32.mrb[20].mxu0  ;;  %9777 = vmatprep.mubr.msk.f32.mxu1 %vm10691_vm3, %v10690_v60  ;;  %9782 = vmatprep.mubr.msk.f32.mxu0 %vm10691_vm3, %v10690_v60 }
 0x460   : > { %v9699_v27 = vpop.f32.mrb[23].mxu1  ;;  %v9704_v28 = vpop.f32.mrb[21].mxu0  ;;  %9776 = vmatpush3.msra.mxu1 %v2451_v24  ;;  %9781 = vmatpush3.msra.mxu0 %v2524_v25 }
 0x461   : > { %9778 = vmatmul.mubr.msk.f32.vlgmr.msra.gmra.mrb[38].mxu1 %vm930_vm5, %v2162_v16  ;;  %9783 = vmatmul.mubr.msk.f32.vlgmr.msra.gmra.mrb[36].mxu0 %vm930_vm5, %v2232_v18 }
 0x462   : > { %9785 = vmatprep.subr.mxu1 %v10690_v60  ;;  %9790 = vmatprep.subr.mxu0 %v10690_v60 }
 0x463   : > { %v2597_v29 = vpop.f32.mrb[24].mxu1  ;;  %v2670_v30 = vpop.f32.mrb[22].mxu0  ;;  %9787 = vmatprep.mubr.msk.f32.mxu1 %vm10691_vm3, %v10690_v60  ;;  %9792 = vmatprep.mubr.msk.f32.mxu0 %vm10691_vm3, %v10690_v60 }
 0x464   : > { %v9709_v31 = vpop.f32.mrb[25].mxu1  ;;  %v9714_v32 = vpop.f32.mrb[23].mxu0  ;;  %9786 = vmatpush3.msra.mxu1 %v2597_v29  ;;  %9791 = vmatpush3.msra.mxu0 %v2670_v30 }
 0x465   : > { %9788 = vmatmul.mubr.msk.f32.vlgmr.msra.gmra.mrb[40].mxu1 %vm930_vm5, %v2305_v20  ;;  %9793 = vmatmul.mubr.msk.f32.vlgmr.msra.gmra.mrb[38].mxu0 %vm930_vm5, %v2378_v21 }
 0x466   : > { %9795 = vmatprep.subr.mxu1 %v10690_v60  ;;  %9800 = vmatprep.subr.mxu0 %v10690_v60 }
 0x467   : > { %v2740_v33 = vpop.f32.mrb[26].mxu1  ;;  %v2810_v34 = vpop.f32.mrb[24].mxu0  ;;  %9797 = vmatprep.mubr.msk.f32.mxu1 %vm10691_vm3, %v10690_v60  ;;  %9802 = vmatprep.mubr.msk.f32.mxu0 %vm10691_vm3, %v10690_v60 }
 0x468   : > { %v9719_v35 = vpop.f32.mrb[27].mxu1  ;;  %v9724_v36 = vpop.f32.mrb[25].mxu0  ;;  %9796 = vmatpush3.msra.mxu1 %v2740_v33  ;;  %9801 = vmatpush3.msra.mxu0 %v2810_v34 }
 0x469   : > { %9798 = vmatmul.mubr.msk.f32.vlgmr.msra.gmra.mrb[42].mxu1 %vm930_vm5, %v11178_v58  ;;  %9803 = vmatmul.mubr.msk.f32.vlgmr.msra.gmra.mrb[40].mxu0 %vm930_vm5, %v11178_v58 }
 0x46a   : > { %9805 = vmatprep.subr.mxu1 %v10690_v60  ;;  %9810 = vmatprep.subr.mxu0 %v10690_v60 }
 0x46b   : > { %v2883_v37 = vpop.f32.mrb[28].mxu1  ;;  %v2956_v38 = vpop.f32.mrb[26].mxu0  ;;  %9807 = vmatprep.mubr.msk.f32.mxu1 %vm10691_vm3, %v10690_v60  ;;  %9812 = vmatprep.mubr.msk.f32.mxu0 %vm10691_vm3, %v10690_v60 }
 0x46c   : > { %v9729_v39 = vpop.f32.mrb[29].mxu1  ;;  %v9734_v40 = vpop.f32.mrb[27].mxu0  ;;  %9806 = vmatpush3.msra.mxu1 %v2883_v37  ;;  %9811 = vmatpush3.msra.mxu0 %v2956_v38 }
 0x46d   : > { %9808 = vmatmul.mubr.msk.f32.vlgmr.msra.gmra.mrb[44].mxu1 %vm930_vm5, %v11178_v58  ;;  %9813 = vmatmul.mubr.msk.f32.vlgmr.msra.gmra.mrb[42].mxu0 %vm930_vm5, %v11178_v58 }
 0x46e   : > { %9815 = vmatprep.subr.mxu1 %v10690_v60  ;;  %9820 = vmatprep.subr.mxu0 %v10690_v60 }
 0x46f   : > { %v3029_v41 = vpop.f32.mrb[30].mxu1  ;;  %v3102_v42 = vpop.f32.mrb[28].mxu0  ;;  %9817 = vmatprep.mubr.msk.f32.mxu1 %vm10691_vm3, %v10690_v60  ;;  %9822 = vmatprep.mubr.msk.f32.mxu0 %vm10691_vm3, %v10690_v60 }
 0x470   : > { %v9739_v43 = vpop.f32.mrb[31].mxu1  ;;  %v9744_v44 = vpop.f32.mrb[29].mxu0  ;;  %9816 = vmatpush3.msra.mxu1 %v3029_v41  ;;  %9821 = vmatpush3.msra.mxu0 %v3102_v42 }
 0x471   : > { %9818 = vmatmul.mubr.msk.f32.vlgmr.msra.gmra.mrb[46].mxu1 %vm930_vm5, %v2740_v33  ;;  %9823 = vmatmul.mubr.msk.f32.vlgmr.msra.gmra.mrb[44].mxu0 %vm930_vm5, %v2810_v34 }
 0x472   : > { %9825 = vmatprep.subr.mxu1 %v10690_v60  ;;  %9830 = vmatprep.subr.mxu0 %v10690_v60 }
 0x473   : > { %v3175_v45 = vpop.f32.mrb[32].mxu1  ;;  %v3248_v46 = vpop.f32.mrb[30].mxu0  ;;  %9827 = vmatprep.mubr.msk.f32.mxu1 %vm10691_vm3, %v10690_v60  ;;  %9832 = vmatprep.mubr.msk.f32.mxu0 %vm10691_vm3, %v10690_v60 }
 0x474   : > { %v9749_v47 = vpop.f32.mrb[33].mxu1  ;;  %v9754_v48 = vpop.f32.mrb[31].mxu0  ;;  %9826 = vmatpush3.msra.mxu1 %v3175_v45  ;;  %9831 = vmatpush3.msra.mxu0 %v3248_v46 }
 0x475   : > { %9828 = vmatmul.mubr.msk.f32.vlgmr.msra.gmra.mrb[48].mxu1 %vm930_vm5, %v2883_v37  ;;  %9833 = vmatmul.mubr.msk.f32.vlgmr.msra.gmra.mrb[46].mxu0 %vm930_vm5, %v2956_v38 }
 0x528   : > { %v3318_v50 = vpop.f32.mrb[34].mxu1 }
 0x529   : > { %v4403_v51 = vmul.f32 %v11403_v49, %v3318_v50  ;;  %v9759_v52 = vpop.f32.mrb[35].mxu1 }
 0x52b   : > { %v4419_v53 = vsel %vm930_vm5, %v4403_v51, 0.0 }
 0x52c   : > { %v3388_v54 = vpop.f32.mrb[32].mxu0  ;;  %4420 = vadd.xlane.f32.xlu0 %v4419_v53 }
 0x52d   : > { %v4404_v55 = vmul.f32 %v11403_v49, %v3388_v54  ;;  %v9764_v56 = vpop.f32.mrb[33].mxu0 }
 0x52e   : > { %v4578_v56 = vld [vmem:[#allocation8] sm:$0xff] }
 0x52f   : > { %v4422_v57 = vsel %vm930_vm5, %v4404_v55, 0.0 }
 0x530   : > { %4423 = vadd.xlane.f32.xlu1 %v4422_v57  ;;  %v3528_v59 = vpop.f32.mrb[34].mxu0  ;;  %v3458_v1 = vpop.f32.mrb[36].mxu1  ;;  %v4579_v57 = vld [vmem:[#allocation8 + $0x8] sm:$0xff] }
 0x531   : > { %v4405_v2 = vmul.f32 %v11403_v49, %v3458_v1  ;;  %v9769_v3 = vpop.f32.mrb[37].mxu1  ;;  %v9774_v4 = vpop.f32.mrb[35].mxu0  ;;  %v4406_v5 = vmul.f32 %v11403_v49, %v3528_v59  ;;  %v10131_v59 = vpack.c.bf16 %v4579_v57, %v4578_v56  ;;  %v4580_v1 = vld [vmem:[#allocation8 + $0x10] sm:$0xff] }
 0x532   : > { %v11443_v4 = vld [vmem:[%s11065_s27 + $0x8] sm:$0xff]  ;;  %v9289_v56 = vld [vmem:[#allocation10] ss:$0 sm:$0xff] }
 0x533   : > { %v4425_v6 = vsel %vm930_vm5, %v4405_v2, 0.0  ;;  %v4428_v10 = vsel %vm930_vm5, %v4406_v5, 0.0  ;;  %10132 = vmatprep.subr.bf16.mxu1 %v10131_v59  ;;  %v4581_v2 = vld [vmem:[#allocation8 + $0x18] sm:$0xff]  ;;  %v4582_v5 = vld [vmem:[#allocation8 + $0x20] sm:$0xff] }
 0x534   : > { %v3674_v7 = vpop.f32.mrb[36].mxu0  ;;  %4426 = vadd.xlane.f32.xlu0 %v4425_v6  ;;  %v3601_v8 = vpop.f32.mrb[38].mxu1  ;;  %10134 = vmatpush3.bf16.msra.mxu1 %v10131_v59  ;;  %v10135_v3 = vpack.c.bf16 %v4581_v2, %v4580_v1 }
 0x535   : > { %v9779_v62 = vpop.f32.mrb[39].mxu1  ;;  %v9784_v63 = vpop.f32.mrb[37].mxu0  ;;  %v4407_v9 = vmul.f32 %v11403_v49, %v3601_v8  ;;  %v4408_v61 = vmul.f32 %v11403_v49, %v3674_v7 }
 0x536   : > { %10136 = vmatprep.subr.bf16.mxu1 %v10135_v3 }
 0x537   : > { %v4431_v16 = vsel %vm930_vm5, %v4407_v9, 0.0  ;;  %v4434_v24 = vsel %vm930_vm5, %v4408_v61, 0.0 }
 0x538   : > { %v3820_v12 = vpop.f32.mrb[38].mxu0  ;;  %4429 = vadd.xlane.f32.xlu0 %v4428_v10  ;;  %v3747_v13 = vpop.f32.mrb[40].mxu1  ;;  %10138 = vmatpush3.bf16.msra.mxu1 %v10135_v3 }
 0x539   : > { %v9789_v14 = vpop.f32.mrb[41].mxu1  ;;  %v9794_v15 = vpop.f32.mrb[39].mxu0  ;;  %v4409_v22 = vmul.f32 %v11403_v49, %v3747_v13  ;;  %v4410_v32 = vmul.f32 %v11403_v49, %v3820_v12  ;;  %9843 = vmatprep.subr.mxu1 %v4582_v5 }
 0x53b   : > { %v4437_v33 = vsel %vm930_vm5, %v4409_v22, 0.0  ;;  %v4440_v42 = vsel %vm930_vm5, %v4410_v32, 0.0 }
 0x53c   : > { %v3960_v17 = vpop.f32.mrb[40].mxu0  ;;  %4432 = vadd.xlane.f32.xlu0 %v4431_v16  ;;  %v3890_v18 = vpop.f32.mrb[42].mxu1  ;;  %9844 = vmatpush3.msra.mxu1 %v4582_v5 }
 0x53d   : > { %v4412_v19 = vmul.f32 %v11403_v49, %v3960_v17  ;;  %v9799_v20 = vpop.f32.mrb[43].mxu1  ;;  %v9804_v21 = vpop.f32.mrb[41].mxu0  ;;  %v4411_v40 = vmul.f32 %v11403_v49, %v3890_v18  ;;  %9864 = vmatprep.subr.mxu1 %v10690_v60 }
 0x53f   : > { %v4446_v23 = vsel %vm930_vm5, %v4412_v19, 0.0  ;;  %v4443_v50 = vsel %vm930_vm5, %v4411_v40, 0.0 }
 0x540   : > { %4447 = vadd.xlane.f32.xlu1 %v4446_v23  ;;  %4435 = vadd.xlane.f32.xlu0 %v4434_v24  ;;  %v4030_v25 = vpop.f32.mrb[44].mxu1  ;;  %v4100_v27 = vpop.f32.mrb[42].mxu0 }
 0x541   : > { %v4413_v28 = vmul.f32 %v11403_v49, %v4030_v25  ;;  %v9809_v29 = vpop.f32.mrb[45].mxu1  ;;  %v4414_v30 = vmul.f32 %v11403_v49, %v4100_v27  ;;  %v9814_v31 = vpop.f32.mrb[43].mxu0 }
 0x543   : > { %v4449_v34 = vsel %vm930_vm5, %v4413_v28, 0.0  ;;  %v4452_v39 = vsel %vm930_vm5, %v4414_v30, 0.0 }
 0x544   : > { %v4246_v35 = vpop.f32.mrb[44].mxu0  ;;  %4438 = vadd.xlane.f32.xlu0 %v4437_v33  ;;  %4450 = vadd.xlane.f32.xlu1 %v4449_v34  ;;  %v4173_v36 = vpop.f32.mrb[46].mxu1 }
 0x545   : > { %v9819_v37 = vpop.f32.mrb[47].mxu1  ;;  %v9824_v38 = vpop.f32.mrb[45].mxu0  ;;  %v4415_v41 = vmul.f32 %v11403_v49, %v4173_v36  ;;  %v4416_v47 = vmul.f32 %v11403_v49, %v4246_v35 }
 0x547   : > { %v4455_v51 = vsel %vm930_vm5, %v4415_v41, 0.0  ;;  %v4458_v54 = vsel %vm930_vm5, %v4416_v47, 0.0 }
 0x548   : > { %v4392_v43 = vpop.f32.mrb[46].mxu0  ;;  %4441 = vadd.xlane.f32.xlu0 %v4440_v42  ;;  %4453 = vadd.xlane.f32.xlu1 %v4452_v39  ;;  %v4319_v44 = vpop.f32.mrb[48].mxu1 }
 0x549   : > { %v9829_v45 = vpop.f32.mrb[49].mxu1  ;;  %v9834_v46 = vpop.f32.mrb[47].mxu0  ;;  %v4418_v48 = vmul.f32 %v11403_v49, %v4392_v43  ;;  %v4417_v52 = vmul.f32 %v11403_v49, %v4319_v44  ;;  %v11438_v49 = vld [vmem:[%s11065_s27] sm:$0xff]  ;;  %s11952_s27 = sld [smem:[#allocation27_spill]] }
 0x54b   : > { %v4464_v53 = vsel %vm930_vm5, %v4418_v48, 0.0  ;;  %v4461_v55 = vsel %vm930_vm5, %v4417_v52, 0.0 }
 0x54c   : > { %4444 = vadd.xlane.f32.xlu0 %v4443_v50  ;;  %4456 = vadd.xlane.f32.xlu1 %v4455_v51 }
 0x550   : > { %4465 = vadd.xlane.f32.xlu0 %v4464_v53  ;;  %4459 = vadd.xlane.f32.xlu1 %v4458_v54 }
 0x554   : > { %4462 = vadd.xlane.f32.xlu1 %v4461_v55 }
 0x565   : > { %4570 = vrot.lane.b32.xlu1 %v11438_v49, %s10695_s18 }
 0x566   : > { %4572 = vrot.lane.b32.xlu0 %v11443_v4, %s10695_s18 }
 0x5b9   : > { %v4421_v6 = vpop.xlane.xlu0 %4420 }
 0x5ba   : > { %v4486_v20 = vrot.slane %v4421_v6, %v11127_v0 }
 0x5bd   : > { %v4424_v62 = vpop.xlane.xlu1 %4423 }
 0x5be   : > { %v4490_v19 = vrot.slane %v4424_v62, %v11127_v0 }
 0x5c0   : > { %v4548_v32 = vsel %vm4547_vm6, %v4490_v19, %v4486_v20 }
 0x5c1   : > { %v4427_v7 = vpop.xlane.xlu0 %4426 }
 0x5c2   : > { %v4494_v22 = vrot.slane %v4427_v7, %v11127_v0 }
 0x5c4   : > { %v4550_v36 = vsel %vm4549_vm7, %v4494_v22, %v4548_v32 }
 0x5c5   : > { %v4430_v8 = vpop.xlane.xlu0 %4429 }
 0x5c6   : > { %v4498_v25 = vrot.slane %v4430_v8, %v11127_v0 }
 0x5c8   : > { %v4552_v39 = vsel %vm4551_vm8, %v4498_v25, %v4550_v36 }
 0x5c9   : > { %v4433_v63 = vpop.xlane.xlu0 %4432 }
 0x5ca   : > { %v4502_v29 = vrot.slane %v4433_v63, %v11127_v0 }
 0x5cc   : > { %v4554_v42 = vsel %vm4553_vm9, %v4502_v29, %v4552_v39 }
 0x5cd   : > { %v4448_v9 = vpop.xlane.xlu1 %4447  ;;  %v4436_v10 = vpop.xlane.xlu0 %4435 }
 0x5ce   : > { %v4522_v17 = vrot.slane %v4448_v9, %v11127_v0  ;;  %v4506_v33 = vrot.slane %v4436_v10, %v11127_v0 }
 0x5d0   : > { %v4556_v44 = vsel %vm4555_vm10, %v4506_v33, %v4554_v42  ;;  %v9293_v33 = vld [vmem:[#allocation13] ss:$0 sm:$0xff] }
 0x5d1   : > { %v4439_v12 = vpop.xlane.xlu0 %4438  ;;  %v4451_v13 = vpop.xlane.xlu1 %4450 }
 0x5d2   : > { %v4526_v21 = vrot.slane %v4451_v13, %v11127_v0  ;;  %v4510_v37 = vrot.slane %v4439_v12, %v11127_v0 }
 0x5d4   : > { %v4558_v48 = vsel %vm4557_vm11, %v4510_v37, %v4556_v44 }
 0x5d5   : > { %v4442_v14 = vpop.xlane.xlu0 %4441  ;;  %v4454_v15 = vpop.xlane.xlu1 %4453 }
 0x5d6   : > { %v4530_v23 = vrot.slane %v4454_v15, %v11127_v0  ;;  %v4514_v40 = vrot.slane %v4442_v14, %v11127_v0 }
 0x5d8   : > { %v4560_v52 = vsel %vm4559_vm12, %v4514_v40, %v4558_v48 }
 0x5d9   : > { %v4445_v61 = vpop.xlane.xlu0 %4444  ;;  %v4457_v16 = vpop.xlane.xlu1 %4456 }
 0x5da   : > { %v4518_v18 = vrot.slane %v4445_v61, %v11127_v0  ;;  %v4534_v31 = vrot.slane %v4457_v16, %v11127_v0  ;;  %v4721_v61 = vld [vmem:[#allocation5 + $0x28] sm:$0xff] }
 0x5dc   : > { %v4561_v24 = vsel %vm4547_vm6, %v4522_v17, %v4518_v18  ;;  %v4722_v17 = vld [vmem:[#allocation5 + $0x30] sm:$0xff]  ;;  %v4723_v18 = vld [vmem:[#allocation5 + $0x38] sm:$0xff] }
 0x5dd   : > { %v4562_v27 = vsel %vm4549_vm7, %v4526_v21, %v4561_v24  ;;  %v4460_v28 = vpop.xlane.xlu1 %4459  ;;  %v4466_v34 = vpop.xlane.xlu0 %4465  ;;  %v10143_v19 = vpack.c.bf16 %v4723_v18, %v4722_v17 }
 0x5de   : > { %v4563_v30 = vsel %vm4551_vm8, %v4530_v23, %v4562_v27  ;;  %v4538_v35 = vrot.slane %v4460_v28, %v11127_v0  ;;  %v4546_v45 = vrot.slane %v4466_v34, %v11127_v0  ;;  %v9292_v28 = vld [vmem:[#allocation11] ss:$0 sm:$0xff] }
 0x5df   : > { %v4564_v38 = vsel %vm4553_vm9, %v4534_v31, %v4563_v30 }
 0x5e0   : > { %v4565_v46 = vsel %vm4555_vm10, %v4538_v35, %v4564_v38 }
 0x5e1   : > { %v4463_v41 = vpop.xlane.xlu1 %4462  ;;  %v4573_v47 = vpop.permute.xlu0 %4572 }
 0x5e2   : > { %v4542_v43 = vrot.slane %v4463_v41, %v11127_v0 }
 0x5e4   : > { %v4566_v50 = vsel %vm4557_vm11, %v4542_v43, %v4565_v46 }
 0x5e5   : > { %v4567_v51 = vsel %vm4559_vm12, %v4546_v45, %v4566_v50  ;;  %v4571_v53 = vpop.permute.xlu1 %4570 }
 0x5e6   : > { %v4577_v54 = vsel %vm930_vm5, %v4567_v51, %v4573_v47  ;;  %v4576_v55 = vsel %vm930_vm5, %v4560_v52, %v4571_v53 }
 0x5e7   : > { %9845 = vmatprep.mubr.msk.f32.mxu1 %vm4590_vm13, %v4576_v55 }
 0x5e8   : > { %9846 = vmatmul.mubr.msk.f32.vlgmr.msra.gmra.mrb[50].mxu1 %vm4590_vm13, %v4577_v54 }
 0x5e9   : > { %9866 = vmatprep.mubr.msk.f32.mxu1 %vm10691_vm3, %v10690_v60 }
 0x6bb   : > { %v9847_v57 = vpop.f32.mrb[50].mxu1 }
 0x6bc   : > { %v4669_v59 = vadd.f32 %v9847_v57, %v9289_v56  ;;  %v4663_v1 = vpop.f32.mrb[51].mxu1 }
 0x6bd   : > { %v4664_v2 = vadd.f32 %v9289_v56, %v4663_v1 }
 0x6be   : > { %v4673_v3 = vadd.f32 %v11443_v4, %v4669_v59 }
 0x6bf   : > { %v4672_v5 = vadd.f32 %v11438_v49, %v4664_v2  ;;  %v4720_v49 = vld [vmem:[#allocation5 + $0x20] sm:$0xff] }
 0x6c0   : > { %v4677_v6 = vsel %vm480_vm0, %v4673_v3, 0.0  ;;  %v10139_v16 = vpack.c.bf16 %v4721_v61, %v4720_v49 }
 0x6c1   : > { %4678 = vadd.xlane.f32.xlu0 %v4677_v6  ;;  %v4674_v7 = vsel %vm480_vm0, %v4672_v5, 0.0 }
 0x6c2   : > { %4675 = vadd.xlane.f32.xlu1 %v4674_v7  ;;  %10140 = vmatprep.subr.bf16.mxu0 %v10139_v16 }
 0x6c3   : > { %10142 = vmatpush3.bf16.msra.mxu0 %v10139_v16 }
 0x6c4   : > { %10144 = vmatprep.subr.bf16.mxu0 %v10143_v19 }
 0x6c7   : > { %10146 = vmatpush3.bf16.msra.mxu0 %v10143_v19 }
 0x6c8   : > { %9859 = vmatprep.subr.mxu0 %v10690_v60 }
 0x74e   : > { %v4679_v8 = vpop.xlane.xlu0 %4678 }
 0x74f   : > { %v4682_v62 = vmul.f32 0.03125, %v4679_v8  ;;  %v4676_v63 = vpop.xlane.xlu1 %4675 }
 0x750   : > { %v4681_v9 = vmul.f32 0.03125, %v4676_v63 }
 0x751   : > { %v4684_v10 = vsub.f32 %v4673_v3, %v4682_v62 }
 0x752   : > { %v4683_v12 = vsub.f32 %v4672_v5, %v4681_v9 }
 0x753   : > { %v4686_v13 = vmul.f32 %v4684_v10, %v4684_v10 }
 0x754   : > { %v4685_v14 = vmul.f32 %v4683_v12, %v4683_v12 }
 0x755   : > { %v4690_v15 = vsel %vm480_vm0, %v4686_v13, 0.0 }
 0x756   : > { %4691 = vadd.xlane.f32.xlu0 %v4690_v15  ;;  %v4687_v4 = vsel %vm480_vm0, %v4685_v14, 0.0 }
 0x757   : > { %4688 = vadd.xlane.f32.xlu1 %v4687_v4 }
 0x7e3   : > { %v4692_v20 = vpop.xlane.xlu0 %4691 }
 0x7e4   : > { %v4694_v21 = vmul.f32 0.03125, %v4692_v20  ;;  %v4689_v22 = vpop.xlane.xlu1 %4688 }
 0x7e5   : > { %v4693_v23 = vmul.f32 0.03125, %v4689_v22 }
 0x7e6   : > { %v4696_v24 = vadd.f32 1e-05, %v4694_v21 }
 0x7e7   : > { %v4695_v25 = vadd.f32 1e-05, %v4693_v23 }
 0x7e8   : > { %10315 = vrsqrt.f32 %v4696_v24 }
 0x7e9   : > { %10317 = vrsqrt.f32 %v4695_v25 }
 0x7f2   : > { %v10316_v27 = vpop.eup %10315 }
 0x7f3   : > { %v10318_v29 = vpop.eup %10317  ;;  %v4700_v30 = vmul.f32 %v10316_v27, %v4684_v10 }
 0x7f4   : > { %v4699_v31 = vmul.f32 %v10318_v29, %v4683_v12 }
 0x7f5   : > { %v4709_v32 = vmul.f32 %v9292_v28, %v4700_v30 }
 0x7f6   : > { %v4708_v34 = vmul.f32 %v9292_v28, %v4699_v31 }
 0x7f7   : > { %v11493_v36 = vadd.f32 %v9293_v33, %v4709_v32 }
 0x7f8   : > { %v11491_v35 = vadd.f32 %v9293_v33, %v4708_v34 }
 0x7fa   : > { %9856 = vmatprep.mubr.msk.f32.mxu0 %vm480_vm0, %v11491_v35 }
 0x7fb   : > { %9857 = vmatmul.mubr.msk.f32.vlgmr.msra.gmra.mrb[48].mxu0 %vm480_vm0, %v11493_v36 }
 0x7fc   : > { %9861 = vmatprep.mubr.msk.f32.mxu0 %vm10691_vm3, %v10690_v60 }
 0x8ce   : > { %v9858_v37 = vpop.f32.mrb[48].mxu0 }
 0x8cf   : > { %v4808_v38 = vmul.f32 0.70710677, %v9858_v37  ;;  %v4796_v39 = vpop.f32.mrb[49].mxu0  ;;  %v4806_v28 = vmul.f32 0.5, %v9858_v37 }
 0x8d0   : > { %v4807_v40 = vmul.f32 0.70710677, %v4796_v39  ;;  %v4805_v21 = vmul.f32 0.5, %v4796_v39 }
 0x8d1   : > { %v4810_v41 = vand.u32 2147483647, %v4808_v38  ;;  %vm4848_vm15 = vcmp.ge.f32.partialorder %v4808_v38, 0.0 }
 0x8d2   : > { %v4809_v42 = vand.u32 2147483647, %v4807_v40  ;;  %vm4847_vm14 = vcmp.ge.f32.partialorder %v4807_v40, 0.0 }
 0x8d3   : > { %v4812_v43 = vmul.f32 0.3275911, %v4810_v41  ;;  %v4836_v48 = vsub.f32 0.0, %v4810_v41 }
 0x8d4   : > { %v4811_v44 = vmul.f32 0.3275911, %v4809_v42  ;;  %v4835_v47 = vsub.f32 0.0, %v4809_v42 }
 0x8d5   : > { %v4814_v45 = vadd.f32 1.0, %v4812_v43  ;;  %v4838_v56 = vmul.f32 %v4836_v48, %v4810_v41 }
 0x8d6   : > { %v4813_v46 = vadd.f32 1.0, %v4811_v44  ;;  %v4837_v53 = vmul.f32 %v4835_v47, %v4809_v42 }
 0x8d7   : > { %10319 = vrcp.f32 %v4814_v45  ;;  %v4841_v5 = vmul.f32 1.442695, %v4838_v56 }
 0x8d8   : > { %10321 = vrcp.f32 %v4813_v46  ;;  %v4839_v1 = vmul.f32 1.442695, %v4837_v53 }
 0x8da   : > { %10323 = vpow2.f32 %v4839_v1 }
 0x8db   : > { %10325 = vpow2.f32 %v4841_v5 }
 0x8e1   : > { %v10320_v50 = vpop.eup %10319 }
 0x8e2   : > { %v10322_v51 = vpop.eup %10321  ;;  %v4818_v52 = vmul.f32 1.0614054, %v10320_v50 }
 0x8e3   : > { %v4817_v54 = vmul.f32 1.0614054, %v10322_v51 }
 0x8e4   : > { %v4820_v55 = vadd.f32 -1.4531521, %v4818_v52  ;;  %v10324_v4 = vpop.eup %10323 }
 0x8e5   : > { %v4819_v57 = vadd.f32 -1.4531521, %v4817_v54  ;;  %v10326_v61 = vpop.eup %10325 }
 0x8e6   : > { %v4822_v59 = vmul.f32 %v10320_v50, %v4820_v55 }
 0x8e7   : > { %v4821_v2 = vmul.f32 %v10322_v51, %v4819_v57 }
 0x8e8   : > { %v4824_v3 = vadd.f32 1.4214138, %v4822_v59 }
 0x8e9   : > { %v4823_v6 = vadd.f32 1.4214138, %v4821_v2 }
 0x8ea   : > { %v4826_v7 = vmul.f32 %v10320_v50, %v4824_v3 }
 0x8eb   : > { %v4825_v8 = vmul.f32 %v10322_v51, %v4823_v6 }
 0x8ec   : > { %v4828_v62 = vadd.f32 -0.28449672, %v4826_v7 }
 0x8ed   : > { %v4827_v63 = vadd.f32 -0.28449672, %v4825_v8 }
 0x8ee   : > { %v4830_v9 = vmul.f32 %v10320_v50, %v4828_v62 }
 0x8ef   : > { %v4829_v10 = vmul.f32 %v10322_v51, %v4827_v63 }
 0x8f0   : > { %v4832_v12 = vadd.f32 0.2548296, %v4830_v9 }
 0x8f1   : > { %v4831_v13 = vadd.f32 0.2548296, %v4829_v10 }
 0x8f2   : > { %v4834_v14 = vmul.f32 %v10320_v50, %v4832_v12 }
 0x8f3   : > { %v4833_v15 = vmul.f32 %v10322_v51, %v4831_v13 }
 0x8f4   : > { %v4844_v16 = vmul.f32 %v10326_v61, %v4834_v14 }
 0x8f5   : > { %v4843_v49 = vmul.f32 %v10324_v4, %v4833_v15 }
 0x8f6   : > { %v4846_v19 = vsub.f32 1.0, %v4844_v16 }
 0x8f7   : > { %v4845_v17 = vsub.f32 1.0, %v4843_v49 }
 0x8f8   : > { %v4850_v24 = vsub.f32 0.0, %v4846_v19 }
 0x8f9   : > { %v4849_v18 = vsub.f32 0.0, %v4845_v17 }
 0x8fa   : > { %v4852_v25 = vsel %vm4848_vm15, %v4846_v19, %v4850_v24 }
 0x8fb   : > { %v4851_v20 = vsel %vm4847_vm14, %v4845_v17, %v4849_v18  ;;  %v4854_v27 = vadd.f32 1.0, %v4852_v25 }
 0x8fc   : > { %v4853_v22 = vadd.f32 1.0, %v4851_v20 }
 0x8fd   : > { %v11507_v29 = vmul.f32 %v4854_v27, %v4806_v28 }
 0x8fe   : > { %v4855_v23 = vmul.f32 %v4853_v22, %v4805_v21 }
 0x900   : > { %4865 = vrot.lane.b32.xlu0 %v4855_v23, %s10687_s1  ;;  %4859 = vrot.lane.b32.xlu1 %v4855_v23, %s10685_s17 }
 0x904   : > { %4883 = vrot.lane.b32.xlu0 %v4855_v23, %s10689_s25  ;;  %4871 = vrot.lane.b32.xlu1 %v4855_v23, %s10684_s16 }
 0x908   : > { %4895 = vrot.lane.b32.xlu0 %v4855_v23, %s10692_s22  ;;  %4877 = vrot.lane.b32.xlu1 %v4855_v23, %s10686_s20 }
 0x90c   : > { %4867 = vrot.lane.b32.xlu0 %v11507_v29, %s10687_s1  ;;  %4889 = vrot.lane.b32.xlu1 %v4855_v23, %s10688_s9 }
 0x910   : > { %4879 = vrot.lane.b32.xlu0 %v11507_v29, %s10686_s20  ;;  %4861 = vrot.lane.b32.xlu1 %v11507_v29, %s10685_s17  ;;  %s10587_s17 = scalar_lea.vmem %s11857_s24, 256  ;;  %s10591_s20 = sshll.u32 %s10696_s15, 4  ;;  %s10592_s20 = int_to_ptr.vmem [resolvable:$false] %s10591_s20 }
 0x911   : > { %p10588_p10 = scmp.ne.s32.totalorder %s11857_s24, %s10587_s17  ;;  %s10593_s1 = scalar_lea.vmem %s10592_s20, 512 }
 0x912   : > { %p10594_p13 = scmp.lt.s32.totalorder %s11857_s24, %s10592_s20  ;;  %p10595_p8 = scmp.lt.s32.totalorder %s10593_s1, %s10587_s17 }
 0x913   : > { %p10589_p11 = pnand %p10588_p10, %p11953_p1 }
 0x914   : > { %4891 = vrot.lane.b32.xlu0 %v11507_v29, %s10688_s9  ;;  %4873 = vrot.lane.b32.xlu1 %v11507_v29, %s10684_s16  ;;  %s11862_s16 = scalar_lea.hbm %s11952_s27, %s9359_s13  ;;  %p10596_p7 = por %p10595_p8, %p10594_p13 }
 0x915   : > { %p10590_p12 = pneg %p10589_p11 }
 0x917   : > { %p10597_p9 = pnand %p10596_p7, %p10590_p12 }
 0x918   : > { %4885 = vrot.lane.b32.xlu1 %v11507_v29, %s10689_s25 }
 0x91c   : > { %4897 = vrot.lane.b32.xlu1 %v11507_v29, %s10692_s22 }
 0x972   : > { %v4866_v30 = vpop.permute.xlu0 %4865  ;;  %v4860_v31 = vpop.permute.xlu1 %4859 }
 0x973   : > { %v4901_v39 = vcombine.low %v4855_v23, %v4866_v30  ;;  %v4902_v57 = vcombine.high %v4855_v23, %v4866_v30 }
 0x975   : > { %v4909_v46 = vrot.slane %v4901_v39, %v11143_v11  ;;  %v4916_v62 = vrot.slane %v4902_v57, %v11143_v11 }
 0x976   : > { %v4884_v32 = vpop.permute.xlu0 %4883  ;;  %v4872_v33 = vpop.permute.xlu1 %4871 }
 0x977   : > { %v4917_v34 = vcombine.low %v4860_v31, %v4872_v33  ;;  %v4918_v51 = vcombine.high %v4860_v31, %v4872_v33 }
 0x979   : > { %v4925_v41 = vrot.slane %v4917_v34, %v11143_v11  ;;  %v4932_v3 = vrot.slane %v4918_v51, %v11143_v11 }
 0x97a   : > { %v4896_v37 = vpop.permute.xlu0 %4895  ;;  %v4878_v38 = vpop.permute.xlu1 %4877 }
 0x97b   : > { %v4949_v40 = vcombine.low %v4884_v32, %v4896_v37  ;;  %v4950_v47 = vcombine.high %v4884_v32, %v4896_v37  ;;  %v4965_v52 = vcombine.low %v4909_v46, %v4925_v41  ;;  %v4966_v5 = vcombine.high %v4909_v46, %v4925_v41 }
 0x97c   : > { %v4981_v15 = vcombine.low %v4916_v62, %v4932_v3  ;;  %v4982_v21 = vcombine.high %v4916_v62, %v4932_v3 }
 0x97d   : > { %v4957_v48 = vrot.slane %v4949_v40, %v11143_v11  ;;  %v4964_v1 = vrot.slane %v4950_v47, %v11143_v11  ;;  %v4973_v6 = vrot.slane %v4965_v52, %v11151_v26  ;;  %v4980_v14 = vrot.slane %v4966_v5, %v11151_v26 }
 0x97e   : > { %v11525_v42 = vpop.permute.xlu0 %4867  ;;  %v4890_v43 = vpop.permute.xlu1 %4889  ;;  %v4989_v22 = vrot.slane %v4981_v15, %v11151_v26  ;;  %v4996_v37 = vrot.slane %v4982_v21, %v11151_v26 }
 0x97f   : > { %v4933_v44 = vcombine.low %v4878_v38, %v4890_v43  ;;  %v4934_v45 = vcombine.high %v4878_v38, %v4890_v43  ;;  %v5037_v49 = vcombine.low %v11507_v29, %v11525_v42  ;;  %v5038_v41 = vcombine.high %v11507_v29, %v11525_v42 }
 0x981   : > { %v4941_v50 = vrot.slane %v4933_v44, %v11143_v11  ;;  %v4948_v54 = vrot.slane %v4934_v45, %v11143_v11  ;;  %v5045_v24 = vrot.slane %v5037_v49, %v11143_v11 }
 0x982   : > { %v11530_v53 = vpop.permute.xlu1 %4861  ;;  %v11533_v56 = vpop.permute.xlu0 %4879 }
 0x983   : > { %v4997_v55 = vcombine.low %v4941_v50, %v4957_v48  ;;  %v4998_v59 = vcombine.high %v4941_v50, %v4957_v48  ;;  %v5013_v8 = vcombine.low %v4948_v54, %v4964_v1  ;;  %v5014_v61 = vcombine.high %v4948_v54, %v4964_v1 }
 0x985   : > { %v5005_v2 = vrot.slane %v4997_v55, %v11151_v26  ;;  %v5012_v63 = vrot.slane %v4998_v59, %v11151_v26  ;;  %v5021_v16 = vrot.slane %v5013_v8, %v11151_v26  ;;  %v5028_v25 = vrot.slane %v5014_v61, %v11151_v26 }
 0x986   : > { %v11539_v7 = vpop.permute.xlu1 %4873  ;;  %v4892_v12 = vpop.permute.xlu0 %4891 }
 0x987   : > { %v5029_v9 = vcombine.low %v4973_v6, %v5005_v2  ;;  %v5030_v10 = vcombine.high %v4973_v6, %v5005_v2  ;;  %v5053_v13 = vcombine.low %v11530_v53, %v11539_v7  ;;  %v5069_v17 = vcombine.low %v11533_v56, %v4892_v12 }
 0x988   : > { %v5031_v18 = vcombine.low %v4980_v14, %v5012_v63  ;;  %v5032_v19 = vcombine.high %v4980_v14, %v5012_v63  ;;  %v5033_v30 = vcombine.low %v4989_v22, %v5021_v16  ;;  %v5034_v31 = vcombine.high %v4989_v22, %v5021_v16 }
 0x989   : > { %9860 = vmatpush3.msra.mxu0 %v5029_v9  ;;  %9865 = vmatpush3.msra.mxu1 %v5030_v10  ;;  %v5061_v20 = vrot.slane %v5053_v13, %v11143_v11  ;;  %v5077_v28 = vrot.slane %v5069_v17, %v11143_v11  ;;  %v5070_v38 = vcombine.high %v11533_v56, %v4892_v12 }
 0x98a   : > { %v4886_v4 = vpop.permute.xlu1 %4885  ;;  %9862 = vmatmul.mubr.msk.f32.vlgmr.msra.gmra.mrb[50].mxu0 %vm930_vm5, %v11178_v58  ;;  %9867 = vmatmul.mubr.msk.f32.vlgmr.msra.gmra.mrb[52].mxu1 %vm930_vm5, %v5029_v9  ;;  %v5054_v39 = vcombine.high %v11530_v53, %v11539_v7  ;;  %v5035_v43 = vcombine.low %v4996_v37, %v5028_v25  ;;  %v5036_v44 = vcombine.high %v4996_v37, %v5028_v25 }
 0x98b   : > { %9869 = vmatprep.subr.mxu0 %v10690_v60  ;;  %9874 = vmatprep.subr.mxu1 %v10690_v60  ;;  %v5101_v32 = vcombine.low %v5045_v24, %v5061_v20  ;;  %v5084_v50 = vrot.slane %v5070_v38, %v11143_v11  ;;  %v5102_v42 = vcombine.high %v5045_v24, %v5061_v20 }
 0x98c   : > { %9870 = vmatpush3.msra.mxu0 %v5031_v18  ;;  %9875 = vmatpush3.msra.mxu1 %v5032_v19  ;;  %v5068_v29 = vrot.slane %v5054_v39, %v11143_v11  ;;  %v5052_v53 = vrot.slane %v5038_v41, %v11143_v11 }
 0x98d   : > { %9871 = vmatprep.mubr.msk.f32.mxu0 %vm10691_vm3, %v10690_v60  ;;  %9876 = vmatprep.mubr.msk.f32.mxu1 %vm10691_vm3, %v10690_v60  ;;  %v5109_v45 = vrot.slane %v5101_v32, %v11151_v26  ;;  %v5116_v56 = vrot.slane %v5102_v42, %v11151_v26 }
 0x98e   : > { %v4898_v23 = vpop.permute.xlu1 %4897  ;;  %9879 = vmatprep.subr.mxu0 %v10690_v60  ;;  %9884 = vmatprep.subr.mxu1 %v10690_v60  ;;  %v5117_v57 = vcombine.low %v5052_v53, %v5068_v29  ;;  %v5118_v3 = vcombine.high %v5052_v53, %v5068_v29 }
 0x98f   : > { %v5085_v27 = vcombine.low %v4886_v4, %v4898_v23  ;;  %9872 = vmatmul.mubr.msk.f32.vlgmr.msra.gmra.mrb[52].mxu0 %vm930_vm5, %v5030_v10  ;;  %9877 = vmatmul.mubr.msk.f32.vlgmr.msra.gmra.mrb[54].mxu1 %vm930_vm5, %v5031_v18  ;;  %v5086_v33 = vcombine.high %v4886_v4, %v4898_v23 }
 0x990   : > { %9880 = vmatpush3.msra.mxu0 %v5033_v30  ;;  %9885 = vmatpush3.msra.mxu1 %v5034_v31  ;;  %v5125_v5 = vrot.slane %v5117_v57, %v11151_v26  ;;  %v5132_v62 = vrot.slane %v5118_v3, %v11151_v26 }
 0x991   : > { %v5093_v34 = vrot.slane %v5085_v27, %v11143_v11  ;;  %9881 = vmatprep.mubr.msk.f32.mxu0 %vm10691_vm3, %v10690_v60  ;;  %9886 = vmatprep.mubr.msk.f32.mxu1 %vm10691_vm3, %v10690_v60  ;;  %v5100_v46 = vrot.slane %v5086_v33, %v11143_v11 }
 0x992   : > { %9889 = vmatprep.subr.mxu0 %v10690_v60  ;;  %9894 = vmatprep.subr.mxu1 %v10690_v60 }
 0x993   : > { %v5133_v40 = vcombine.low %v5077_v28, %v5093_v34  ;;  %v5134_v47 = vcombine.high %v5077_v28, %v5093_v34  ;;  %9882 = vmatmul.mubr.msk.f32.vlgmr.msra.gmra.mrb[54].mxu0 %vm930_vm5, %v5032_v19  ;;  %9887 = vmatmul.mubr.msk.f32.vlgmr.msra.gmra.mrb[56].mxu1 %vm930_vm5, %v5033_v30  ;;  %v5149_v55 = vcombine.low %v5084_v50, %v5100_v46 }
 0x994   : > { %9890 = vmatpush3.msra.mxu0 %v5035_v43  ;;  %9895 = vmatpush3.msra.mxu1 %v5036_v44  ;;  %v5150_v59 = vcombine.high %v5084_v50, %v5100_v46 }
 0x995   : > { %v5141_v48 = vrot.slane %v5133_v40, %v11151_v26  ;;  %9891 = vmatprep.mubr.msk.f32.mxu0 %vm10691_vm3, %v10690_v60  ;;  %9896 = vmatprep.mubr.msk.f32.mxu1 %vm10691_vm3, %v10690_v60  ;;  %v5148_v54 = vrot.slane %v5134_v47, %v11151_v26  ;;  %v5157_v11 = vrot.slane %v5149_v55, %v11151_v26 }
 0x996   : > { %9899 = vmatprep.subr.mxu0 %v10690_v60  ;;  %9904 = vmatprep.subr.mxu1 %v10690_v60  ;;  %v5164_v6 = vrot.slane %v5150_v59, %v11151_v26 }
 0x997   : > { %v5165_v51 = vcombine.low %v5109_v45, %v5141_v48  ;;  %v5166_v52 = vcombine.high %v5109_v45, %v5141_v48  ;;  %9892 = vmatmul.mubr.msk.f32.vlgmr.msra.gmra.mrb[56].mxu0 %vm930_vm5, %v5034_v31  ;;  %9897 = vmatmul.mubr.msk.f32.vlgmr.msra.gmra.mrb[58].mxu1 %vm930_vm5, %v5035_v43  ;;  %v5167_v1 = vcombine.low %v5116_v56, %v5148_v54 }
 0x998   : > { %9901 = vmatprep.mubr.msk.f32.mxu0 %vm10691_vm3, %v10690_v60  ;;  %9906 = vmatprep.mubr.msk.f32.mxu1 %vm10691_vm3, %v10690_v60  ;;  %v5168_v2 = vcombine.high %v5116_v56, %v5148_v54  ;;  %v5169_v7 = vcombine.low %v5125_v5, %v5157_v11  ;;  %v5170_v8 = vcombine.high %v5125_v5, %v5157_v11 }
 0x999   : > { %9900 = vmatpush3.msra.mxu0 %v5165_v51  ;;  %9905 = vmatpush3.msra.mxu1 %v5166_v52  ;;  %v5171_v63 = vcombine.low %v5132_v62, %v5164_v6  ;;  %v5172_v9 = vcombine.high %v5132_v62, %v5164_v6 }
 0x99a   : > { %9909 = vmatprep.subr.mxu0 %v10690_v60  ;;  %9914 = vmatprep.subr.mxu1 %v10690_v60 }
 0x99b   : > { %9902 = vmatmul.mubr.msk.f32.vlgmr.msra.gmra.mrb[58].mxu0 %vm930_vm5, %v11178_v58  ;;  %9907 = vmatmul.mubr.msk.f32.vlgmr.msra.gmra.mrb[60].mxu1 %vm930_vm5, %v5165_v51 }
 0x99c   : > { %9910 = vmatpush3.msra.mxu0 %v5167_v1  ;;  %9915 = vmatpush3.msra.mxu1 %v5168_v2 }
 0x99d   : > { %9911 = vmatprep.mubr.msk.f32.mxu0 %vm10691_vm3, %v10690_v60  ;;  %9916 = vmatprep.mubr.msk.f32.mxu1 %vm10691_vm3, %v10690_v60 }
 0x99e   : > { %9919 = vmatprep.subr.mxu0 %v10690_v60  ;;  %9924 = vmatprep.subr.mxu1 %v10690_v60 }
 0x99f   : > { %9912 = vmatmul.mubr.msk.f32.vlgmr.msra.gmra.mrb[60].mxu0 %vm930_vm5, %v5166_v52  ;;  %9917 = vmatmul.mubr.msk.f32.vlgmr.msra.gmra.mrb[62].mxu1 %vm930_vm5, %v5167_v1 }
 0x9a0   : > { %9920 = vmatpush3.msra.mxu0 %v5169_v7  ;;  %9925 = vmatpush3.msra.mxu1 %v5170_v8 }
 0x9a1   : > { %9921 = vmatprep.mubr.msk.f32.mxu0 %vm10691_vm3, %v10690_v60  ;;  %9926 = vmatprep.mubr.msk.f32.mxu1 %vm10691_vm3, %v10690_v60 }
 0x9a2   : > { %9929 = vmatprep.subr.mxu0 %v10690_v60  ;;  %9934 = vmatprep.subr.mxu1 %v10690_v60 }
 0x9a3   : > { %9922 = vmatmul.mubr.msk.f32.vlgmr.msra.gmra.mrb[62].mxu0 %vm930_vm5, %v5168_v2  ;;  %9927 = vmatmul.mubr.msk.f32.vlgmr.msra.gmra.mrb[64].mxu1 %vm930_vm5, %v5169_v7 }
 0x9a4   : > { %9930 = vmatpush3.msra.mxu0 %v5171_v63  ;;  %9935 = vmatpush3.msra.mxu1 %v5172_v9 }
 0x9a5   : > { %9931 = vmatprep.mubr.msk.f32.mxu0 %vm10691_vm3, %v10690_v60  ;;  %9936 = vmatprep.mubr.msk.f32.mxu1 %vm10691_vm3, %v10690_v60 }
 0x9a6   : > { %9939 = vmatprep.subr.mxu0 %v10690_v60  ;;  %9944 = vmatprep.subr.mxu1 %v10690_v60 }
 0x9a7   : > { %9932 = vmatmul.mubr.msk.f32.vlgmr.msra.gmra.mrb[64].mxu0 %vm930_vm5, %v5170_v8  ;;  %9937 = vmatmul.mubr.msk.f32.vlgmr.msra.gmra.mrb[66].mxu1 %vm930_vm5, %v5171_v63 }
 0x9a8   : > { %9941 = vmatprep.mubr.msk.f32.mxu0 %vm10691_vm3, %v10690_v60  ;;  %9946 = vmatprep.mubr.msk.f32.mxu1 %vm10691_vm3, %v10690_v60 }
 0xa5d   : > { %v5239_v26 = vpop.f32.mrb[50].mxu0  ;;  %v5312_v10 = vpop.f32.mrb[52].mxu1 }
 0xa5e   : > { %v9863_v12 = vpop.f32.mrb[51].mxu0  ;;  %9940 = vmatpush3.msra.mxu0 %v5239_v26  ;;  %v9868_v13 = vpop.f32.mrb[53].mxu1  ;;  %9945 = vmatpush3.msra.mxu1 %v5312_v10 }
 0xa5f   : > { %9942 = vmatmul.mubr.msk.f32.vlgmr.msra.gmra.mrb[66].mxu0 %vm930_vm5, %v11178_v58  ;;  %9947 = vmatmul.mubr.msk.f32.vlgmr.msra.gmra.mrb[68].mxu1 %vm930_vm5, %v11178_v58 }
 0xa60   : > { %9949 = vmatprep.subr.mxu0 %v10690_v60  ;;  %9954 = vmatprep.subr.mxu1 %v10690_v60 }
 0xa61   : > { %9951 = vmatprep.mubr.msk.f32.mxu0 %vm10691_vm3, %v10690_v60  ;;  %9956 = vmatprep.mubr.msk.f32.mxu1 %vm10691_vm3, %v10690_v60 }
 0xa62   : > { %v5385_v14 = vpop.f32.mrb[52].mxu0  ;;  %v5458_v15 = vpop.f32.mrb[54].mxu1 }
 0xa63   : > { %v9873_v4 = vpop.f32.mrb[53].mxu0  ;;  %v9878_v49 = vpop.f32.mrb[55].mxu1  ;;  %9950 = vmatpush3.msra.mxu0 %v5385_v14  ;;  %9955 = vmatpush3.msra.mxu1 %v5458_v15 }
 0xa64   : > { %9952 = vmatmul.mubr.msk.f32.vlgmr.msra.gmra.mrb[68].mxu0 %vm930_vm5, %v5239_v26  ;;  %9957 = vmatmul.mubr.msk.f32.vlgmr.msra.gmra.mrb[70].mxu1 %vm930_vm5, %v5312_v10 }
 0xa65   : > { %9959 = vmatprep.subr.mxu0 %v10690_v60  ;;  %9964 = vmatprep.subr.mxu1 %v10690_v60 }
 0xa66   : > { %9961 = vmatprep.mubr.msk.f32.mxu0 %vm10691_vm3, %v10690_v60  ;;  %9966 = vmatprep.mubr.msk.f32.mxu1 %vm10691_vm3, %v10690_v60  ;;  %v5531_v61 = vpop.f32.mrb[54].mxu0  ;;  %v5604_v16 = vpop.f32.mrb[56].mxu1 }
 0xa67   : > { %v9883_v17 = vpop.f32.mrb[55].mxu0  ;;  %v9888_v18 = vpop.f32.mrb[57].mxu1  ;;  %9960 = vmatpush3.msra.mxu0 %v5531_v61  ;;  %9965 = vmatpush3.msra.mxu1 %v5604_v16 }
 0xa68   : > { %9962 = vmatmul.mubr.msk.f32.vlgmr.msra.gmra.mrb[70].mxu0 %vm930_vm5, %v5385_v14  ;;  %9967 = vmatmul.mubr.msk.f32.vlgmr.msra.gmra.mrb[72].mxu1 %vm930_vm5, %v5458_v15  ;;  %v11774_v14 = vld [vmem:[#allocation7 + $0x1] ss:$0 sm:$0xff] }
 0xa69   : > { %9969 = vmatprep.subr.mxu0 %v10690_v60  ;;  %9974 = vmatprep.subr.mxu1 %v10690_v60 }
 0xa6a   : > { %v5677_v19 = vpop.f32.mrb[56].mxu0  ;;  %v5750_v20 = vpop.f32.mrb[58].mxu1  ;;  %9971 = vmatprep.mubr.msk.f32.mxu0 %vm10691_vm3, %v10690_v60  ;;  %9976 = vmatprep.mubr.msk.f32.mxu1 %vm10691_vm3, %v10690_v60 }
 0xa6b   : > { %v9893_v21 = vpop.f32.mrb[57].mxu0  ;;  %v9898_v22 = vpop.f32.mrb[59].mxu1  ;;  %9970 = vmatpush3.msra.mxu0 %v5677_v19  ;;  %9975 = vmatpush3.msra.mxu1 %v5750_v20 }
 0xa6c   : > { %9972 = vmatmul.mubr.msk.f32.vlgmr.msra.gmra.mrb[72].mxu0 %vm930_vm5, %v5531_v61  ;;  %9977 = vmatmul.mubr.msk.f32.vlgmr.msra.gmra.mrb[74].mxu1 %vm930_vm5, %v5604_v16 }
 0xa6d   : > { %9979 = vmatprep.subr.mxu0 %v10690_v60  ;;  %9984 = vmatprep.subr.mxu1 %v10690_v60 }
 0xa6e   : > { %v5820_v23 = vpop.f32.mrb[58].mxu0  ;;  %v5893_v24 = vpop.f32.mrb[60].mxu1  ;;  %9981 = vmatprep.mubr.msk.f32.mxu0 %vm10691_vm3, %v10690_v60  ;;  %9986 = vmatprep.mubr.msk.f32.mxu1 %vm10691_vm3, %v10690_v60 }
 0xa6f   : > { %v9903_v25 = vpop.f32.mrb[59].mxu0  ;;  %v9908_v27 = vpop.f32.mrb[61].mxu1  ;;  %9980 = vmatpush3.msra.mxu0 %v5820_v23  ;;  %9985 = vmatpush3.msra.mxu1 %v5893_v24 }
 0xa70   : > { %9982 = vmatmul.mubr.msk.f32.vlgmr.msra.gmra.mrb[74].mxu0 %vm930_vm5, %v11178_v58  ;;  %9987 = vmatmul.mubr.msk.f32.vlgmr.msra.gmra.mrb[76].mxu1 %vm930_vm5, %v11178_v58 }
 0xa71   : > { %9989 = vmatprep.subr.mxu0 %v10690_v60  ;;  %9994 = vmatprep.subr.mxu1 %v10690_v60 }
 0xa72   : > { %v5966_v28 = vpop.f32.mrb[60].mxu0  ;;  %v6039_v30 = vpop.f32.mrb[62].mxu1  ;;  %9991 = vmatprep.mubr.msk.f32.mxu0 %vm10691_vm3, %v10690_v60  ;;  %9996 = vmatprep.mubr.msk.f32.mxu1 %vm10691_vm3, %v10690_v60 }
 0xa73   : > { %v9913_v31 = vpop.f32.mrb[61].mxu0  ;;  %v9918_v32 = vpop.f32.mrb[63].mxu1  ;;  %9990 = vmatpush3.msra.mxu0 %v5966_v28  ;;  %9995 = vmatpush3.msra.mxu1 %v6039_v30 }
 0xa74   : > { %9992 = vmatmul.mubr.msk.f32.vlgmr.msra.gmra.mrb[76].mxu0 %vm930_vm5, %v5820_v23  ;;  %9997 = vmatmul.mubr.msk.f32.vlgmr.msra.gmra.mrb[78].mxu1 %vm930_vm5, %v5893_v24 }
 0xa75   : > { %9999 = vmatprep.subr.mxu0 %v10690_v60  ;;  %10004 = vmatprep.subr.mxu1 %v10690_v60 }
 0xa76   : > { %v6112_v33 = vpop.f32.mrb[62].mxu0  ;;  %v6185_v34 = vpop.f32.mrb[64].mxu1  ;;  %10001 = vmatprep.mubr.msk.f32.mxu0 %vm10691_vm3, %v10690_v60  ;;  %10006 = vmatprep.mubr.msk.f32.mxu1 %vm10691_vm3, %v10690_v60 }
 0xa77   : > { %v9923_v37 = vpop.f32.mrb[63].mxu0  ;;  %v9928_v38 = vpop.f32.mrb[65].mxu1  ;;  %10000 = vmatpush3.msra.mxu0 %v6112_v33  ;;  %10005 = vmatpush3.msra.mxu1 %v6185_v34 }
 0xa78   : > { %10002 = vmatmul.mubr.msk.f32.vlgmr.msra.gmra.mrb[78].mxu0 %vm930_vm5, %v5966_v28  ;;  %10007 = vmatmul.mubr.msk.f32.vlgmr.msra.gmra.mrb[80].mxu1 %vm930_vm5, %v6039_v30 }
 0xa79   : > { %10009 = vmatprep.subr.mxu0 %v10690_v60  ;;  %10014 = vmatprep.subr.mxu1 %v10690_v60 }
 0xa7a   : > { %v6258_v39 = vpop.f32.mrb[64].mxu0  ;;  %v6331_v40 = vpop.f32.mrb[66].mxu1  ;;  %10011 = vmatprep.mubr.msk.f32.mxu0 %vm10691_vm3, %v10690_v60  ;;  %10016 = vmatprep.mubr.msk.f32.mxu1 %vm10691_vm3, %v10690_v60 }
 0xa7b   : > { %v9933_v41 = vpop.f32.mrb[65].mxu0  ;;  %v9938_v43 = vpop.f32.mrb[67].mxu1  ;;  %10010 = vmatpush3.msra.mxu0 %v6258_v39  ;;  %10015 = vmatpush3.msra.mxu1 %v6331_v40 }
 0xa7c   : > { %10012 = vmatmul.mubr.msk.f32.vlgmr.msra.gmra.mrb[80].mxu0 %vm930_vm5, %v6112_v33  ;;  %10017 = vmatmul.mubr.msk.f32.vlgmr.msra.gmra.mrb[82].mxu1 %vm930_vm5, %v6185_v34 }
 0xa7d   : > { %10019 = vmatprep.subr.mxu0 %v10690_v60  ;;  %10024 = vmatprep.subr.mxu1 %v10690_v60 }
 0xa7e   : > { %10021 = vmatprep.mubr.msk.f32.mxu0 %vm10691_vm3, %v10690_v60  ;;  %10026 = vmatprep.mubr.msk.f32.mxu1 %vm10691_vm3, %v10690_v60 }
 0xb32   : > { %v6401_v44 = vpop.f32.mrb[66].mxu0  ;;  %v6471_v45 = vpop.f32.mrb[68].mxu1 }
 0xb33   : > { %v9943_v46 = vpop.f32.mrb[67].mxu0  ;;  %10020 = vmatpush3.msra.mxu0 %v6401_v44  ;;  %v9948_v47 = vpop.f32.mrb[69].mxu1  ;;  %10025 = vmatpush3.msra.mxu1 %v6471_v45 }
 0xb34   : > { %10022 = vmatmul.mubr.msk.f32.vlgmr.msra.gmra.mrb[82].mxu0 %vm930_vm5, %v11178_v58  ;;  %10027 = vmatmul.mubr.msk.f32.vlgmr.msra.gmra.mrb[84].mxu1 %vm930_vm5, %v11178_v58 }
 0xb35   : > { %10029 = vmatprep.subr.mxu0 %v10690_v60  ;;  %10034 = vmatprep.subr.mxu1 %v10690_v60 }
 0xb36   : > { %10031 = vmatprep.mubr.msk.f32.mxu0 %vm10691_vm3, %v10690_v60  ;;  %10036 = vmatprep.mubr.msk.f32.mxu1 %vm10691_vm3, %v10690_v60 }
 0xb37   : > { %v6544_v48 = vpop.f32.mrb[68].mxu0  ;;  %v6617_v50 = vpop.f32.mrb[70].mxu1 }
 0xb38   : > { %v9953_v29 = vpop.f32.mrb[69].mxu0  ;;  %v9958_v42 = vpop.f32.mrb[71].mxu1  ;;  %10030 = vmatpush3.msra.mxu0 %v6544_v48  ;;  %10035 = vmatpush3.msra.mxu1 %v6617_v50 }
 0xb39   : > { %10032 = vmatmul.mubr.msk.f32.vlgmr.msra.gmra.mrb[84].mxu0 %vm930_vm5, %v11178_v58  ;;  %10037 = vmatmul.mubr.msk.f32.vlgmr.msra.gmra.mrb[86].mxu1 %vm930_vm5, %v11178_v58 }
 0xb3a   : > { %10039 = vmatprep.subr.mxu0 %v10690_v60  ;;  %10044 = vmatprep.subr.mxu1 %v10690_v60 }
 0xb3b   : > { %10041 = vmatprep.mubr.msk.f32.mxu0 %vm10691_vm3, %v10690_v60  ;;  %10046 = vmatprep.mubr.msk.f32.mxu1 %vm10691_vm3, %v10690_v60  ;;  %v6690_v51 = vpop.f32.mrb[70].mxu0  ;;  %v6763_v52 = vpop.f32.mrb[72].mxu1 }
 0xb3c   : > { %v9963_v53 = vpop.f32.mrb[71].mxu0  ;;  %v9968_v54 = vpop.f32.mrb[73].mxu1  ;;  %10040 = vmatpush3.msra.mxu0 %v6690_v51  ;;  %10045 = vmatpush3.msra.mxu1 %v6763_v52 }
 0xb3d   : > { %10042 = vmatmul.mubr.msk.f32.vlgmr.msra.gmra.mrb[86].mxu0 %vm930_vm5, %v6401_v44  ;;  %10047 = vmatmul.mubr.msk.f32.vlgmr.msra.gmra.mrb[88].mxu1 %vm930_vm5, %v6471_v45 }
 0xb3e   : > { %10049 = vmatprep.subr.mxu0 %v10690_v60  ;;  %10054 = vmatprep.subr.mxu1 %v10690_v60 }
 0xb3f   : > { %v6836_v55 = vpop.f32.mrb[72].mxu0  ;;  %v6909_v56 = vpop.f32.mrb[74].mxu1  ;;  %10051 = vmatprep.mubr.msk.f32.mxu0 %vm10691_vm3, %v10690_v60  ;;  %10056 = vmatprep.mubr.msk.f32.mxu1 %vm10691_vm3, %v10690_v60 }
 0xb40   : > { %v9973_v57 = vpop.f32.mrb[73].mxu0  ;;  %v9978_v59 = vpop.f32.mrb[75].mxu1  ;;  %10050 = vmatpush3.msra.mxu0 %v6836_v55  ;;  %10055 = vmatpush3.msra.mxu1 %v6909_v56 }
 0xb41   : > { %10052 = vmatmul.mubr.msk.f32.vlgmr.msra.gmra.mrb[88].mxu0 %vm930_vm5, %v6544_v48  ;;  %10057 = vmatmul.mubr.msk.f32.vlgmr.msra.gmra.mrb[90].mxu1 %vm930_vm5, %v6617_v50 }
 0xb42   : > { %10059 = vmatprep.subr.mxu0 %v10690_v60  ;;  %10064 = vmatprep.subr.mxu1 %v10690_v60 }
 0xb43   : > { %v6979_v11 = vpop.f32.mrb[74].mxu0  ;;  %v7049_v1 = vpop.f32.mrb[76].mxu1  ;;  %10061 = vmatprep.mubr.msk.f32.mxu0 %vm10691_vm3, %v10690_v60  ;;  %10066 = vmatprep.mubr.msk.f32.mxu1 %vm10691_vm3, %v10690_v60 }
 0xb44   : > { %v9983_v2 = vpop.f32.mrb[75].mxu0  ;;  %v9988_v3 = vpop.f32.mrb[77].mxu1  ;;  %10060 = vmatpush3.msra.mxu0 %v6979_v11  ;;  %10065 = vmatpush3.msra.mxu1 %v7049_v1 }
 0xb45   : > { %10062 = vmatmul.mubr.msk.f32.vlgmr.msra.gmra.mrb[90].mxu0 %vm930_vm5, %v11178_v58  ;;  %10067 = vmatmul.mubr.msk.f32.vlgmr.msra.gmra.mrb[92].mxu1 %vm930_vm5, %v11178_v58 }
 0xb46   : > { %10069 = vmatprep.subr.mxu0 %v10690_v60  ;;  %10074 = vmatprep.subr.mxu1 %v10690_v60 }
 0xb47   : > { %v7122_v5 = vpop.f32.mrb[76].mxu0  ;;  %v7195_v6 = vpop.f32.mrb[78].mxu1  ;;  %10071 = vmatprep.mubr.msk.f32.mxu0 %vm10691_vm3, %v10690_v60  ;;  %10076 = vmatprep.mubr.msk.f32.mxu1 %vm10691_vm3, %v10690_v60 }
 0xb48   : > { %v9993_v7 = vpop.f32.mrb[77].mxu0  ;;  %v9998_v8 = vpop.f32.mrb[79].mxu1  ;;  %10070 = vmatpush3.msra.mxu0 %v7122_v5  ;;  %10075 = vmatpush3.msra.mxu1 %v7195_v6 }
 0xb49   : > { %10072 = vmatmul.mubr.msk.f32.vlgmr.msra.gmra.mrb[92].mxu0 %vm930_vm5, %v11178_v58  ;;  %10077 = vmatmul.mubr.msk.f32.vlgmr.msra.gmra.mrb[94].mxu1 %vm930_vm5, %v11178_v58 }
 0xb4a   : > { %10079 = vmatprep.subr.mxu0 %v10690_v60  ;;  %10084 = vmatprep.subr.mxu1 %v10690_v60 }
 0xb4b   : > { %v7268_v62 = vpop.f32.mrb[78].mxu0  ;;  %v7341_v63 = vpop.f32.mrb[80].mxu1  ;;  %10081 = vmatprep.mubr.msk.f32.mxu0 %vm10691_vm3, %v10690_v60  ;;  %10086 = vmatprep.mubr.msk.f32.mxu1 %vm10691_vm3, %v10690_v60 }
 0xb4c   : > { %v10003_v9 = vpop.f32.mrb[79].mxu0  ;;  %v10008_v26 = vpop.f32.mrb[81].mxu1  ;;  %10080 = vmatpush3.msra.mxu0 %v7268_v62  ;;  %10085 = vmatpush3.msra.mxu1 %v7341_v63 }
 0xb4d   : > { %10082 = vmatmul.mubr.msk.f32.vlgmr.msra.gmra.mrb[94].mxu0 %vm930_vm5, %v6979_v11  ;;  %10087 = vmatmul.mubr.msk.f32.vlgmr.msra.gmra.mrb[96].mxu1 %vm930_vm5, %v7049_v1 }
 0xb4e   : > { %10089 = vmatprep.subr.mxu0 %v10690_v60  ;;  %10094 = vmatprep.subr.mxu1 %v10690_v60 }
 0xb4f   : > { %v7414_v58 = vpop.f32.mrb[80].mxu0  ;;  %v7487_v10 = vpop.f32.mrb[82].mxu1  ;;  %10091 = vmatprep.mubr.msk.f32.mxu0 %vm10691_vm3, %v10690_v60  ;;  %10096 = vmatprep.mubr.msk.f32.mxu1 %vm10691_vm3, %v10690_v60 }
 0xb50   : > { %v10013_v12 = vpop.f32.mrb[81].mxu0  ;;  %v10018_v13 = vpop.f32.mrb[83].mxu1  ;;  %10090 = vmatpush3.msra.mxu0 %v7414_v58  ;;  %10095 = vmatpush3.msra.mxu1 %v7487_v10 }
 0xb51   : > { %10092 = vmatmul.mubr.msk.f32.vlgmr.msra.gmra.mrb[96].mxu0 %vm930_vm5, %v7122_v5  ;;  %10097 = vmatmul.mubr.msk.f32.vlgmr.msra.gmra.mrb[98].mxu1 %vm930_vm5, %v7195_v6 }
 0xc07   : > { %v7557_v15 = vpop.f32.mrb[82].mxu0  ;;  %v7627_v49 = vpop.f32.mrb[84].mxu1 }
 0xc08   : > { %v8643_v4 = vmul.f32 %v11774_v14, %v7557_v15  ;;  %v10023_v61 = vpop.f32.mrb[83].mxu0  ;;  %v8644_v16 = vmul.f32 %v11774_v14, %v7627_v49  ;;  %v10028_v17 = vpop.f32.mrb[85].mxu1 }
 0xc09   : > { %v8813_v17 = vld [vmem:[#allocation8 + $0x30] sm:$0xff] }
 0xc0a   : > { %v8659_v60 = vsel %vm930_vm5, %v8643_v4, 0.0  ;;  %v8662_v18 = vsel %vm930_vm5, %v8644_v16, 0.0  ;;  %v8812_v16 = vld [vmem:[#allocation8 + $0x28] sm:$0xff] }
 0xc0b   : > { %8660 = vadd.xlane.f32.xlu0 %v8659_v60  ;;  %8663 = vadd.xlane.f32.xlu1 %v8662_v18  ;;  %v10147_v60 = vpack.c.bf16 %v8813_v17, %v8812_v16  ;;  %v8814_v18 = vld [vmem:[#allocation8 + $0x38] sm:$0xff] }
 0xc0c   : > { %v7697_v19 = vpop.f32.mrb[84].mxu0  ;;  %v7767_v20 = vpop.f32.mrb[86].mxu1 }
 0xc0d   : > { %v8645_v21 = vmul.f32 %v11774_v14, %v7697_v19  ;;  %v10033_v22 = vpop.f32.mrb[85].mxu0  ;;  %v10038_v23 = vpop.f32.mrb[87].mxu1  ;;  %v8646_v24 = vmul.f32 %v11774_v14, %v7767_v20  ;;  %10148 = vmatprep.subr.bf16.mxu0 %v10147_v60  ;;  %v8815_v19 = vld [vmem:[#allocation8 + $0x40] sm:$0xff] }
 0xc0e   : > { %10150 = vmatpush3.bf16.msra.mxu0 %v10147_v60  ;;  %v10151_v20 = vpack.c.bf16 %v8815_v19, %v8814_v18 }
 0xc0f   : > { %v8665_v25 = vsel %vm930_vm5, %v8645_v21, 0.0  ;;  %v8668_v33 = vsel %vm930_vm5, %v8646_v24, 0.0 }
 0xc10   : > { %8666 = vadd.xlane.f32.xlu0 %v8665_v25  ;;  %v7913_v27 = vpop.f32.mrb[88].mxu1  ;;  %v7840_v28 = vpop.f32.mrb[86].mxu0  ;;  %10152 = vmatprep.subr.bf16.mxu0 %v10151_v20 }
 0xc11   : > { %v10043_v30 = vpop.f32.mrb[87].mxu0  ;;  %v10048_v31 = vpop.f32.mrb[89].mxu1  ;;  %v8647_v32 = vmul.f32 %v11774_v14, %v7840_v28  ;;  %v8648_v40 = vmul.f32 %v11774_v14, %v7913_v27 }
 0xc12   : > { %10154 = vmatpush3.bf16.msra.mxu0 %v10151_v20 }
 0xc13   : > { %v8671_v41 = vsel %vm930_vm5, %v8647_v32, 0.0  ;;  %v8674_v50 = vsel %vm930_vm5, %v8648_v40, 0.0 }
 0xc14   : > { %8669 = vadd.xlane.f32.xlu0 %v8668_v33  ;;  %v8059_v34 = vpop.f32.mrb[90].mxu1  ;;  %v7986_v37 = vpop.f32.mrb[88].mxu0 }
 0xc15   : > { %v10053_v38 = vpop.f32.mrb[89].mxu0  ;;  %v10058_v39 = vpop.f32.mrb[91].mxu1  ;;  %v8649_v48 = vmul.f32 %v11774_v14, %v7986_v37  ;;  %v8650_v56 = vmul.f32 %v11774_v14, %v8059_v34 }
 0xc17   : > { %v8677_v57 = vsel %vm930_vm5, %v8649_v48, 0.0  ;;  %v8680_v7 = vsel %vm930_vm5, %v8650_v56, 0.0 }
 0xc18   : > { %8672 = vadd.xlane.f32.xlu0 %v8671_v41  ;;  %v8199_v43 = vpop.f32.mrb[92].mxu1  ;;  %v8129_v44 = vpop.f32.mrb[90].mxu0 }
 0xc19   : > { %v8652_v45 = vmul.f32 %v11774_v14, %v8199_v43  ;;  %v10063_v46 = vpop.f32.mrb[91].mxu0  ;;  %v10068_v47 = vpop.f32.mrb[93].mxu1  ;;  %v8651_v6 = vmul.f32 %v11774_v14, %v8129_v44 }
 0xc1b   : > { %v8686_v29 = vsel %vm930_vm5, %v8652_v45, 0.0  ;;  %v8683_v10 = vsel %vm930_vm5, %v8651_v6, 0.0 }
 0xc1c   : > { %8675 = vadd.xlane.f32.xlu0 %v8674_v50  ;;  %8687 = vadd.xlane.f32.xlu1 %v8686_v29  ;;  %v8269_v42 = vpop.f32.mrb[92].mxu0  ;;  %v8339_v51 = vpop.f32.mrb[94].mxu1 }
 0xc1d   : > { %v8653_v52 = vmul.f32 %v11774_v14, %v8269_v42  ;;  %v8654_v53 = vmul.f32 %v11774_v14, %v8339_v51  ;;  %v10073_v54 = vpop.f32.mrb[93].mxu0  ;;  %v10078_v55 = vpop.f32.mrb[95].mxu1 }
 0xc1f   : > { %v8689_v59 = vsel %vm930_vm5, %v8653_v52, 0.0  ;;  %v8692_v5 = vsel %vm930_vm5, %v8654_v53, 0.0 }
 0xc20   : > { %8678 = vadd.xlane.f32.xlu0 %v8677_v57  ;;  %v8485_v11 = vpop.f32.mrb[96].mxu1  ;;  %8690 = vadd.xlane.f32.xlu1 %v8689_v59  ;;  %v8412_v1 = vpop.f32.mrb[94].mxu0 }
 0xc21   : > { %v10083_v2 = vpop.f32.mrb[95].mxu0  ;;  %v10088_v3 = vpop.f32.mrb[97].mxu1  ;;  %v8655_v8 = vmul.f32 %v11774_v14, %v8412_v1  ;;  %v8656_v12 = vmul.f32 %v11774_v14, %v8485_v11 }
 0xc23   : > { %v8695_v13 = vsel %vm930_vm5, %v8655_v8, 0.0  ;;  %v8698_v49 = vsel %vm930_vm5, %v8656_v12, 0.0 }
 0xc24   : > { %8681 = vadd.xlane.f32.xlu0 %v8680_v7  ;;  %v8631_v62 = vpop.f32.mrb[98].mxu1  ;;  %8693 = vadd.xlane.f32.xlu1 %v8692_v5  ;;  %v8558_v63 = vpop.f32.mrb[96].mxu0 }
 0xc25   : > { %v10093_v9 = vpop.f32.mrb[97].mxu0  ;;  %v10098_v26 = vpop.f32.mrb[99].mxu1  ;;  %v8658_v58 = vmul.f32 %v11774_v14, %v8631_v62  ;;  %v8657_v4 = vmul.f32 %v11774_v14, %v8558_v63  ;;  %v8816_v14 = vld [vmem:[#allocation8 + $0x48] sm:$0xff] }
 0xc26   : > { %10107 = vmatprep.subr.mxu0 %v8816_v14 }
 0xc27   : > { %v8704_v15 = vsel %vm930_vm5, %v8658_v58, 0.0  ;;  %v8701_v61 = vsel %vm930_vm5, %v8657_v4, 0.0  ;;  %10108 = vmatpush3.msra.mxu0 %v8816_v14 }
 0xc28   : > { %8684 = vadd.xlane.f32.xlu0 %v8683_v10  ;;  %8696 = vadd.xlane.f32.xlu1 %v8695_v13 }
 0xc2c   : > { %8705 = vadd.xlane.f32.xlu0 %v8704_v15  ;;  %8699 = vadd.xlane.f32.xlu1 %v8698_v49 }
 0xc30   : > { %8702 = vadd.xlane.f32.xlu1 %v8701_v61 }
 0xc41   : > { %8803 = vrot.lane.b32.xlu1 %v11491_v35, %s10695_s18 }
 0xc42   : > { %8805 = vrot.lane.b32.xlu0 %v11493_v36, %s10695_s18 }
 0xc98   : > { %v8661_v21 = vpop.xlane.xlu0 %8660  ;;  %v8664_v25 = vpop.xlane.xlu1 %8663 }
 0xc99   : > { %v8726_v41 = vrot.slane %v8661_v21, %v11127_v0  ;;  %v8730_v43 = vrot.slane %v8664_v25, %v11127_v0 }
 0xc9b   : > { %v8787_v52 = vsel %vm4547_vm6, %v8730_v43, %v8726_v41 }
 0xc9d   : > { %v8667_v22 = vpop.xlane.xlu0 %8666 }
 0xc9e   : > { %v8734_v46 = vrot.slane %v8667_v22, %v11127_v0 }
 0xca0   : > { %v8788_v56 = vsel %vm4549_vm7, %v8734_v46, %v8787_v52  ;;  %v9350_v52 = vld [vmem:[#allocation16] ss:$0 sm:$0xff] }
 0xca1   : > { %v8670_v23 = vpop.xlane.xlu0 %8669 }
 0xca2   : > { %v8738_v48 = vrot.slane %v8670_v23, %v11127_v0 }
 0xca4   : > { %v8789_v11 = vsel %vm4551_vm8, %v8738_v48, %v8788_v56 }
 0xca5   : > { %v8673_v24 = vpop.xlane.xlu0 %8672 }
 0xca6   : > { %v8742_v42 = vrot.slane %v8673_v24, %v11127_v0 }
 0xca8   : > { %v8790_v3 = vsel %vm4553_vm9, %v8742_v42, %v8789_v11 }
 0xca9   : > { %v8676_v27 = vpop.xlane.xlu0 %8675  ;;  %v8688_v28 = vpop.xlane.xlu1 %8687 }
 0xcaa   : > { %v8762_v37 = vrot.slane %v8688_v28, %v11127_v0  ;;  %v8746_v53 = vrot.slane %v8676_v27, %v11127_v0  ;;  %v8955_v28 = vld [vmem:[#allocation14 + $0x8] sm:$0xff] }
 0xcac   : > { %v8791_v6 = vsel %vm4555_vm10, %v8746_v53, %v8790_v3 }
 0xcad   : > { %v8679_v30 = vpop.xlane.xlu0 %8678  ;;  %v8691_v31 = vpop.xlane.xlu1 %8690 }
 0xcae   : > { %v8766_v40 = vrot.slane %v8691_v31, %v11127_v0  ;;  %v8750_v57 = vrot.slane %v8679_v30, %v11127_v0  ;;  %v8956_v31 = vld [vmem:[#allocation14 + $0x10] sm:$0xff] }
 0xcb0   : > { %v8792_v62 = vsel %vm4557_vm11, %v8750_v57, %v8791_v6 }
 0xcb1   : > { %v8682_v32 = vpop.xlane.xlu0 %8681  ;;  %v8694_v33 = vpop.xlane.xlu1 %8693 }
 0xcb2   : > { %v8770_v44 = vrot.slane %v8694_v33, %v11127_v0  ;;  %v8754_v1 = vrot.slane %v8682_v32, %v11127_v0  ;;  %v8957_v32 = vld [vmem:[#allocation14 + $0x18] sm:$0xff] }
 0xcb3   : > { %v10159_v33 = vpack.c.bf16 %v8957_v32, %v8956_v31 }
 0xcb4   : > { %v8793_v58 = vsel %vm4559_vm12, %v8754_v1, %v8792_v62 }
 0xcb5   : > { %v8685_v34 = vpop.xlane.xlu0 %8684  ;;  %v8697_v39 = vpop.xlane.xlu1 %8696 }
 0xcb6   : > { %v8758_v38 = vrot.slane %v8685_v34, %v11127_v0  ;;  %v8774_v51 = vrot.slane %v8697_v39, %v11127_v0 }
 0xcb8   : > { %v8794_v45 = vsel %vm4547_vm6, %v8762_v37, %v8758_v38 }
 0xcb9   : > { %v8795_v47 = vsel %vm4549_vm7, %v8766_v40, %v8794_v45  ;;  %v8700_v29 = vpop.xlane.xlu1 %8699  ;;  %v8706_v54 = vpop.xlane.xlu0 %8705 }
 0xcba   : > { %v8796_v50 = vsel %vm4551_vm8, %v8770_v44, %v8795_v47  ;;  %v8778_v55 = vrot.slane %v8700_v29, %v11127_v0  ;;  %v8786_v7 = vrot.slane %v8706_v54, %v11127_v0  ;;  %v9348_v44 = vld [vmem:[#allocation11 + $0x1] ss:$0 sm:$0xff] }
 0xcbb   : > { %v8797_v59 = vsel %vm4553_vm9, %v8774_v51, %v8796_v50  ;;  %v9349_v50 = vld [vmem:[#allocation13 + $0x1] ss:$0 sm:$0xff] }
 0xcbc   : > { %v8798_v8 = vsel %vm4555_vm10, %v8778_v55, %v8797_v59 }
 0xcbd   : > { %v8703_v2 = vpop.xlane.xlu1 %8702  ;;  %v8806_v9 = vpop.permute.xlu0 %8805 }
 0xcbe   : > { %v8782_v5 = vrot.slane %v8703_v2, %v11127_v0  ;;  %v9345_v0 = vld [vmem:[#allocation10 + $0x1] ss:$0 sm:$0xff] }
 0xcc0   : > { %v8799_v63 = vsel %vm4557_vm11, %v8782_v5, %v8798_v8 }
 0xcc1   : > { %v8800_v26 = vsel %vm4559_vm12, %v8786_v7, %v8799_v63  ;;  %v8804_v10 = vpop.permute.xlu1 %8803 }
 0xcc2   : > { %v8809_v12 = vsel %vm930_vm5, %v8793_v58, %v8804_v10  ;;  %v8810_v13 = vsel %vm930_vm5, %v8800_v26, %v8806_v9 }
 0xcc3   : > { %10109 = vmatprep.mubr.msk.f32.mxu0 %vm4590_vm13, %v8809_v12 }
 0xcc4   : > { %10110 = vmatmul.mubr.msk.f32.vlgmr.msra.gmra.mrb[98].mxu0 %vm4590_vm13, %v8810_v13 }
 0xd97   : > { %v10111_v15 = vpop.f32.mrb[98].mxu0 }
 0xd98   : > { %v8903_v4 = vadd.f32 %v10111_v15, %v9345_v0  ;;  %v8897_v49 = vpop.f32.mrb[99].mxu0 }
 0xd99   : > { %v8898_v61 = vadd.f32 %v9345_v0, %v8897_v49 }
 0xd9a   : > { %v8907_v16 = vadd.f32 %v8903_v4, %v11493_v36 }
 0xd9b   : > { %v8906_v17 = vadd.f32 %v8898_v61, %v11491_v35  ;;  %v8954_v35 = vld [vmem:[#allocation14] sm:$0xff] }
 0xd9c   : > { %v8911_v60 = vsel %vm480_vm0, %v8907_v16, 0.0  ;;  %v10155_v30 = vpack.c.bf16 %v8955_v28, %v8954_v35 }
 0xd9d   : > { %8912 = vadd.xlane.f32.xlu0 %v8911_v60  ;;  %v8908_v18 = vsel %vm480_vm0, %v8906_v17, 0.0 }
 0xd9e   : > { %8909 = vadd.xlane.f32.xlu1 %v8908_v18  ;;  %10156 = vmatprep.subr.bf16.mxu1 %v10155_v30 }
 0xd9f   : > { %10158 = vmatpush3.bf16.msra.mxu1 %v10155_v30 }
 0xda0   : > { %10160 = vmatprep.subr.bf16.mxu1 %v10159_v33 }
 0xda3   : > { %10162 = vmatpush3.bf16.msra.mxu1 %v10159_v33 }
 0xe2a   : > { %v8913_v19 = vpop.xlane.xlu0 %8912 }
 0xe2b   : > { %v8915_v20 = vmul.f32 0.03125, %v8913_v19  ;;  %v8910_v14 = vpop.xlane.xlu1 %8909 }
 0xe2c   : > { %v8914_v21 = vmul.f32 0.03125, %v8910_v14 }
 0xe2d   : > { %v8917_v22 = vsub.f32 %v8907_v16, %v8915_v20 }
 0xe2e   : > { %v8916_v23 = vsub.f32 %v8906_v17, %v8914_v21 }
 0xe2f   : > { %v8919_v24 = vmul.f32 %v8917_v22, %v8917_v22 }
 0xe30   : > { %v8918_v25 = vmul.f32 %v8916_v23, %v8916_v23 }
 0xe31   : > { %v8923_v27 = vsel %vm480_vm0, %v8919_v24, 0.0 }
 0xe32   : > { %8924 = vadd.xlane.f32.xlu0 %v8923_v27  ;;  %v8920_v36 = vsel %vm480_vm0, %v8918_v25, 0.0 }
 0xe33   : > { %8921 = vadd.xlane.f32.xlu1 %v8920_v36 }
 0xebf   : > { %v8925_v34 = vpop.xlane.xlu0 %8924 }
 0xec0   : > { %v8927_v37 = vmul.f32 0.03125, %v8925_v34  ;;  %v8922_v38 = vpop.xlane.xlu1 %8921 }
 0xec1   : > { %v8926_v39 = vmul.f32 0.03125, %v8922_v38 }
 0xec2   : > { %v8929_v40 = vadd.f32 1e-05, %v8927_v37 }
 0xec3   : > { %v8928_v41 = vadd.f32 1e-05, %v8926_v39 }
 0xec4   : > { %10327 = vrsqrt.f32 %v8929_v40 }
 0xec5   : > { %10329 = vrsqrt.f32 %v8928_v41 }
 0xece   : > { %v10328_v43 = vpop.eup %10327 }
 0xecf   : > { %v10330_v45 = vpop.eup %10329  ;;  %v8933_v46 = vmul.f32 %v10328_v43, %v8917_v22 }
 0xed0   : > { %v8932_v47 = vmul.f32 %v10330_v45, %v8916_v23 }
 0xed1   : > { %v8943_v48 = vmul.f32 %v9348_v44, %v8933_v46 }
 0xed2   : > { %v8942_v29 = vmul.f32 %v9348_v44, %v8932_v47 }
 0xed3   : > { %v8953_v51 = vadd.f32 %v9349_v50, %v8943_v48 }
 0xed4   : > { %v8952_v42 = vadd.f32 %v9349_v50, %v8942_v29 }
 0xed6   : > { %10120 = vmatprep.mubr.msk.f32.mxu1 %vm480_vm0, %v8952_v42 }
 0xed7   : > { %10121 = vmatmul.mubr.msk.f32.vlgmr.msra.gmra.mrb[100].mxu1 %vm480_vm0, %v8953_v51 }
 0xfaa   : > { %v10122_v53 = vpop.f32.mrb[100].mxu1 }
 0xfab   : > { %v9043_v54 = vadd.f32 %v10122_v53, %v9350_v52  ;;  %v9037_v55 = vpop.f32.mrb[101].mxu1 }
 0xfac   : > { %v9038_v56 = vadd.f32 %v9350_v52, %v9037_v55 }
 0xfad   : > { %9048 = vst.msk [vmem:[%s464_s23 + $0x8] sm:$0xff] %vm9046_vm1, %v9043_v54 }
 0xfae   : > { %9047 = vst.msk [vmem:[%s464_s23] sm:$0xff] %vm9046_vm1, %v9038_v56 }
 0xfaf   : > { %10600 = shalt.err (!%p10597_p9)
}
 0xfb0   : > { %s10601_s9 = scalar_lea.hbm %s11862_s16, 256  ;;  %s10605_s23 = scalar_lea.hbm %s11952_s27, 512 }
 0xfb1   : > { %p10602_p4 = scmp.ne.s32.totalorder %s11862_s16, %s10601_s9  ;;  %p10606_p2 = scmp.lt.u32.totalorder %s11862_s16, %s11952_s27 }
 0xfb2   : > { %p10607_p6 = scmp.lt.u32.totalorder %s10605_s23, %s10601_s9  ;;  %p10609_p10 = scmp.lt.u32.totalorder %s10601_s9, %s11862_s16 }
 0xfb3   : > { %p10603_p3 = pnand %p10602_p4, %p11953_p1 }
 0xfb4   : > { %p10608_p5 = por %p10607_p6, %p10606_p2 }
 0xfb5   : > { %p10604_p0 = pneg %p10603_p3 }
 0xfb6   : > { %p10610_p11 = por %p10609_p10, %p10608_p5 }
 0xfb8   : > { %p10611_p12 = pnand %p10610_p11, %p10604_p0 }
 0xfba   : > { %10614 = shalt.err (!%p10611_p12)
}
 0xfbb   : > { %s10697_s21 = smov 128  }
 0xfbc   : > { %10197 = dma.vmem_to_hbm [thread:$0]  (%p11953_p1), %s11857_s24, 256, %s11862_s16, %s9050_s3, %s10697_s21, %s10697_s21, %s10695_s18  }
 0xfbd PF: > { %s9078_s17 = sand.u32 1, %s10657_s30   ;;  %p11954_p13 = scmp.ne.s32.totalorder %s11941_s29, 0 }
 0xfbe   : > { %p11955_p8 = scmp.ge.s32.totalorder %s10669_s12, 2  ;;  %s9079_s15 = scalar_lea.sflag [#allocation4], %s9078_s17 }
 0xfc0   : > { %p10229_p7 = pnand %p11955_p8, %p11954_p13 }
 0xfc2   : > { %10652 = dma.done.wait (!%p10229_p7), %s9079_s15, 256  }
 0xfc3   : > { %10654 = vsyncadd (!%p10229_p7), %s9079_s15, 4294967040  ;;  %p26_p9 = scmp.ge.s32.totalorder %s10977_s19, 4   ;;  %s11956_s30 = smov %s10661_s10 }
 0xfc4   : > { %s11957_s10 = smov %s10665_s11  ;;  %s11958_s11 = smov %s10988_s5 }
 0xfc5   : > { %s11959_s12 = smov %s10977_s19  ;;  %28 = sbr.rel (!%p26_p9) target bundleno = 14 (0xe), region = 139 }
 0xfcc   :  { %9084 = vsyncpa [#allocation3], 1 }
 0xfcd   :  { %9086 = vsyncpa [#allocation3 + $0x1], 1 }
 0xfce   :  { %9087 = vsyncpa [#allocation6], 1 }
 0xfcf   :  { %9088 = vsyncpa [#allocation9], 1 }
 0xfd0   :  { %9089 = vsyncpa [#allocation12], 1 }
 0xfd1   :  { %9090 = vsyncpa [#allocation15], 1 }
 0xfd2   :  { %9091 = vsyncpa [#allocation4], 1 }
 0xfd3   :  { %9093 = vsyncpa [#allocation4 + $0x1], 1 }

</bundles_post_ra>
